<compile_context>
chip_gen: v7x
topology: tpu7x:2x2x1
jax: 0.10.0
libtpu: 0.0.40
codegen_flags: <defaults>
</compile_context>

<pallas_src>
import functools

import jax
import jax.numpy as jnp
import numpy as np
from jax.experimental import pallas as pl
from jax.experimental.pallas import tpu as pltpu

INPUT_SIZE = 16
HIDDEN = 128
LEAKY_SLOPE = 0.01   # PyTorch nn.LeakyReLU default negative_slope
BN_EPS = 1e-5


# ------------------------------ fused kernel --------------------------------
def fused_rnn_kernel(x_ref, w_ref, fcw_ref, b_ref, o_ref, g_scr, *, T, Bp, H, D):
    f32, bf16 = jnp.float32, jnp.bfloat16

    # Hoisted (non-recurrent) input projection for ALL timesteps, per
    # direction; staged through VMEM scratch so the unrolled recurrence below
    # only keeps one (Bp, 4H) slab live per step.
    for d in (0, 1):
        g_scr[d] = (jnp.dot(x_ref[d], w_ref[d, 0:D, :],
                            preferred_element_type=f32)
                    + b_ref[d, :, 0:4 * H])                          # (T*Bp, 4H)

    h = [jnp.zeros((Bp, H), f32), jnp.zeros((Bp, H), f32)]
    c = [jnp.zeros((Bp, H), f32), jnp.zeros((Bp, H), f32)]

    # Fully unrolled recurrence (T static & small). Gate column order per
    # direction is [i | f | o | g]; whh slices are re-loaded inside the loop so
    # the 128 KiB weights never sit in vregs across iterations.
    for t in range(T):
        for d in (0, 1):
            gates = g_scr[d, t * Bp:(t + 1) * Bp, :] + jnp.dot(
                h[d].astype(bf16), w_ref[d, D:D + H, :],
                preferred_element_type=f32)                          # (Bp, 4H)
            sig = jax.nn.sigmoid(gates[:, 0:3 * H])                  # i | f | o
            g_g = jnp.tanh(gates[:, 3 * H:4 * H])
            c[d] = sig[:, H:2 * H] * c[d] + sig[:, 0:H] * g_g
            h[d] = sig[:, 2 * H:3 * H] * jnp.tanh(c[d])

    # Per-direction FC heads. BatchNorm1d (eval) is pre-folded into layer-2
    # weights/bias; Dropout(0.4) is identity in eval mode. Layers 2/3 are
    # zero-padded to 64 wide so no narrow lane slicing is needed in-kernel.
    for d in (0, 1):
        a1 = jnp.dot(h[d].astype(bf16), fcw_ref[d, 0:128, :],
                     preferred_element_type=f32) + b_ref[d, :, 512:576]
        a1 = jnp.where(a1 > 0, a1, LEAKY_SLOPE * a1)                 # LeakyReLU
        a2 = jnp.dot(a1.astype(bf16), fcw_ref[d, 128:192, :],
                     preferred_element_type=f32) + b_ref[d, :, 640:704]
        a2 = jnp.where(a2 > 0, a2, LEAKY_SLOPE * a2)                 # LeakyReLU
        o_ref[d] = jnp.dot(a2.astype(bf16), fcw_ref[d, 192:256, :],
                           preferred_element_type=f32) + b_ref[d, :, 768:832]


def fused_forward_call(x_stacked, fp, *, T, Bp):
    vmem = [pl.BlockSpec(memory_space=pltpu.MemorySpace.VMEM) for _ in range(4)]
    return pl.pallas_call(
        functools.partial(fused_rnn_kernel, T=T, Bp=Bp, H=HIDDEN, D=INPUT_SIZE),
        out_shape=jax.ShapeDtypeStruct((2, Bp, 64), jnp.float32),
        in_specs=vmem,
        out_specs=pl.BlockSpec(memory_space=pltpu.MemorySpace.VMEM),
        scratch_shapes=[pltpu.VMEM((2, T * Bp, 4 * HIDDEN), jnp.float32)],
    )(x_stacked, fp["w_lstm"], fp["fcw"], fp["biases"])


@jax.jit
def rnn_forward(x, fused_params):
    """x: (B, T, 2, INPUT_SIZE), same batch_first convention as the PyTorch module."""
    B, T = x.shape[0], x.shape[1]
    Bp = max(8, -(-B // 8) * 8)            # pad batch to a multiple of 8 sublanes
    xd = jnp.transpose(x.astype(jnp.float32), (2, 1, 0, 3))          # (2, T, B, D)
    xd = jnp.pad(xd, ((0, 0), (0, 0), (0, Bp - B), (0, 0)))
    x_stacked = xd.reshape(2, T * Bp, INPUT_SIZE).astype(jnp.bfloat16)
    out = fused_forward_call(x_stacked, fused_params, T=T, Bp=Bp)    # (2, Bp, 64)
    return out[0, :B, :8], out[1, :B, :8]                            # fc_x, fc_y


# --------------------------- per-direction params ----------------------------
def init_lstm_params(key, input_size, hidden):
    k1, k2, k3, k4 = jax.random.split(key, 4)
    s = 1.0 / jnp.sqrt(hidden)
    # Stored transposed for (x @ W); PyTorch layout is (4H, in) with gates i,f,g,o.
    w_ih_t = jax.random.uniform(k1, (input_size, 4 * hidden), jnp.float32, -s, s)
    w_hh_t = jax.random.uniform(k2, (hidden, 4 * hidden), jnp.float32, -s, s)
    b_ih = jax.random.uniform(k3, (4 * hidden,), jnp.float32, -s, s)
    b_hh = jax.random.uniform(k4, (4 * hidden,), jnp.float32, -s, s)
    bias = (b_ih + b_hh).reshape(1, 4 * hidden)
    return {"w_ih_t": w_ih_t, "w_hh_t": w_hh_t, "bias": bias}


def init_fc_params(key):
    ks = jax.random.split(key, 6)

    def lin(kw, kb, fan_in, fan_out):
        s = 1.0 / jnp.sqrt(fan_in)
        w = jax.random.uniform(kw, (fan_in, fan_out), jnp.float32, -s, s)
        b = jax.random.uniform(kb, (1, fan_out), jnp.float32, -s, s)
        return w, b

    w1, b1 = lin(ks[0], ks[1], 128, 64)
    w2, b2 = lin(ks[2], ks[3], 64, 32)
    w3, b3 = lin(ks[4], ks[5], 32, 8)
    return {
        "w1": w1, "b1": b1,
        "bn_gamma": jnp.ones((1, 64), jnp.float32),
        "bn_beta": jnp.zeros((1, 64), jnp.float32),
        "bn_mean": jnp.zeros((1, 64), jnp.float32),
        "bn_var": jnp.ones((1, 64), jnp.float32),
        "w2": w2, "b2": b2,
        "w3": w3, "b3": b3,
    }


def init_params(key):
    kx, ky, kfx, kfy = jax.random.split(key, 4)
    return {
        "lstm_x": init_lstm_params(kx, INPUT_SIZE, HIDDEN),
        "lstm_y": init_lstm_params(ky, INPUT_SIZE, HIDDEN),
        "fc_x": init_fc_params(kfx),
        "fc_y": init_fc_params(kfy),
    }


# --------------------------- parameter fusion (prep) -------------------------
def _fold_bn_into_linear(p):
    # BN(eval)(a) = a*s + t, with s = gamma/sqrt(var+eps), t = beta - mean*s.
    # Then BN(a) @ w2 + b2 == a @ (diag(s) w2) + (t @ w2 + b2).
    s = p["bn_gamma"] * jax.lax.rsqrt(p["bn_var"] + BN_EPS)      # (1, 64)
    t = p["bn_beta"] - p["bn_mean"] * s                          # (1, 64)
    w2_eff = s.reshape(-1, 1) * p["w2"]                          # (64, 32)
    b2_eff = t @ p["w2"] + p["b2"]                               # (1, 32)
    return w2_eff, b2_eff


def fuse_params(params):
    """Pack per-direction parameters into 3 contiguous kernel buffers."""
    H = HIDDEN

    def reorder_gates(m):   # last dim grouped i,f,g,o (PyTorch)  ->  i,f,o,g
        i, f, g, o = (m[..., k * H:(k + 1) * H] for k in range(4))
        return jnp.concatenate([i, f, o, g], axis=-1)

    def pack_dir(lstm_p, fc_p):
        # LSTM weights: rows [0:D] = W_ih^T, rows [D:D+H] = W_hh^T (bf16).
        w_lstm = jnp.concatenate(
            [reorder_gates(lstm_p["w_ih_t"]), reorder_gates(lstm_p["w_hh_t"])],
            axis=0).astype(jnp.bfloat16)                          # (D+H, 4H)
        # FC weights (BN folded into layer 2), layers 2/3 zero-padded to 64x64.
        w2_eff, b2_eff = _fold_bn_into_linear(fc_p)
        w2p = jnp.zeros((64, 64), jnp.float32).at[:, :32].set(w2_eff)
        w3p = jnp.zeros((64, 64), jnp.float32).at[:32, :8].set(fc_p["w3"])
        fcw = jnp.concatenate([fc_p["w1"], w2p, w3p],
                              axis=0).astype(jnp.bfloat16)        # (256, 64)
        # Biases packed at 128-lane-aligned offsets (f32).
        b = jnp.zeros((1, 896), jnp.float32)
        b = b.at[:, 0:4 * H].set(reorder_gates(lstm_p["bias"]))
        b = b.at[:, 512:576].set(fc_p["b1"])
        b = b.at[:, 640:672].set(b2_eff)
        b = b.at[:, 768:776].set(fc_p["b3"])
        return w_lstm, fcw, b

    wx, fx, bx = pack_dir(params["lstm_x"], params["fc_x"])
    wy, fy, by = pack_dir(params["lstm_y"], params["fc_y"])
    return {
        "w_lstm": jnp.stack([wx, wy]),     # (2, 144, 512) bf16
        "fcw":    jnp.stack([fx, fy]),     # (2, 256, 64)  bf16
        "biases": jnp.stack([bx, by]),     # (2, 1, 896)   f32
    }


# ----------------------------- pure-JAX reference ----------------------------
def _reference_forward(x, params):
    hp = jax.lax.Precision.HIGHEST

    def lstm_last(x_btd, p):
        B = x_btd.shape[0]
        h = jnp.zeros((B, HIDDEN), jnp.float32)
        c = jnp.zeros((B, HIDDEN), jnp.float32)
        for t in range(x_btd.shape[1]):
            gates = (jnp.dot(x_btd[:, t, :], p["w_ih_t"], precision=hp)
                     + jnp.dot(h, p["w_hh_t"], precision=hp) + p["bias"])
            i = jax.nn.sigmoid(gates[:, :HIDDEN])
            f = jax.nn.sigmoid(gates[:, HIDDEN:2 * HIDDEN])
            g = jnp.tanh(gates[:, 2 * HIDDEN:3 * HIDDEN])
            o = jax.nn.sigmoid(gates[:, 3 * HIDDEN:])
            c = f * c + i * g
            h = o * jnp.tanh(c)
        return h

    def fc(h, p):
        z = jnp.dot(h, p["w1"], precision=hp) + p["b1"]
        z = jnp.where(z > 0, z, LEAKY_SLOPE * z)
        z = ((z - p["bn_mean"]) * jax.lax.rsqrt(p["bn_var"] + BN_EPS)
             * p["bn_gamma"] + p["bn_beta"])
        z = jnp.dot(z, p["w2"], precision=hp) + p["b2"]
        z = jnp.where(z > 0, z, LEAKY_SLOPE * z)
        return jnp.dot(z, p["w3"], precision=hp) + p["b3"]

    hx = lstm_last(x[:, :, 0, :].astype(jnp.float32), params["lstm_x"])
    hy = lstm_last(x[:, :, 1, :].astype(jnp.float32), params["lstm_y"])
    return fc(hx, params["fc_x"]), fc(hy, params["fc_y"])


# ------------------------------------ main -----------------------------------
if __name__ == "__main__":
    key = jax.random.PRNGKey(0)
    k_param, k_data = jax.random.split(key)
    params = init_params(k_param)
    fused = fuse_params(params)

    B, T = 2, 8
    x = jax.random.normal(k_data, (B, T, 2, INPUT_SIZE), jnp.float32)

    out_x, out_y = rnn_forward(x, fused)
    jax.block_until_ready((out_x, out_y))
    assert out_x.shape == (B, 8) and out_y.shape == (B, 8)

    ref_x, ref_y = _reference_forward(x, params)
    np.testing.assert_allclose(np.asarray(out_x), np.asarray(ref_x), rtol=2e-2, atol=2e-2)
    np.testing.assert_allclose(np.asarray(out_y), np.asarray(ref_y), rtol=2e-2, atol=2e-2)
    print("KERNEL_OK")
</pallas_src>

<mosaic_0001>
module attributes {stable_mosaic.version = 11 : i64} {
  func.func @fused_rnn_kernel(%arg0: memref<2x64x16xbf16, #tpu.memory_space<vmem>>, %arg1: memref<2x144x512xbf16, #tpu.memory_space<vmem>>, %arg2: memref<2x256x64xbf16, #tpu.memory_space<vmem>>, %arg3: memref<2x1x896xf32, #tpu.memory_space<vmem>>, %arg4: memref<2x8x64xf32, #tpu.memory_space<vmem>>, %arg5: memref<2x64x512xf32, #tpu.memory_space<vmem>>) attributes {dimension_semantics = [], scalar_prefetch = 0 : i64, scratch_operands = 1 : i64, tpu.core_type = #tpu.core_type<tc>} {
    %c0 = arith.constant 0 : index
    %c0_0 = arith.constant 0 : index
    %c0_1 = arith.constant 0 : index
    %0 = vector.load %arg0[%c0, %c0_0, %c0_1] : memref<2x64x16xbf16, #tpu.memory_space<vmem>>, vector<1x64x16xbf16>
    %1 = vector.shape_cast %0 : vector<1x64x16xbf16> to vector<64x16xbf16>
    %c0_2 = arith.constant 0 : index
    %c0_3 = arith.constant 0 : index
    %c0_4 = arith.constant 0 : index
    %2 = vector.load %arg1[%c0_2, %c0_3, %c0_4] : memref<2x144x512xbf16, #tpu.memory_space<vmem>>, vector<1x16x512xbf16>
    %3 = vector.shape_cast %2 : vector<1x16x512xbf16> to vector<16x512xbf16>
    %cst = arith.constant dense<0.000000e+00> : vector<64x512xf32>
    %4 = tpu.matmul %1, %3, %cst {dimension_numbers = #tpu.dot_dimension_numbers<[1], [0], [0], [1], [0, 0, 1, 1], [], []>} : vector<64x16xbf16>, vector<16x512xbf16>, vector<64x512xf32> -> vector<64x512xf32>
    %c0_5 = arith.constant 0 : index
    %c0_6 = arith.constant 0 : index
    %c0_7 = arith.constant 0 : index
    %5 = vector.load %arg3[%c0_5, %c0_6, %c0_7] : memref<2x1x896xf32, #tpu.memory_space<vmem>>, vector<1x1x512xf32>
    %6 = vector.shape_cast %5 : vector<1x1x512xf32> to vector<1x512xf32>
    %7 = vector.broadcast %6 : vector<1x512xf32> to vector<64x512xf32>
    %8 = arith.addf %4, %7 : vector<64x512xf32>
    %c0_8 = arith.constant 0 : index
    %c0_9 = arith.constant 0 : index
    %c0_10 = arith.constant 0 : index
    %9 = vector.load %arg5[%c0_8, %c0_9, %c0_10] : memref<2x64x512xf32, #tpu.memory_space<vmem>>, vector<1x64x512xf32>
    %10 = vector.shape_cast %9 : vector<1x64x512xf32> to vector<64x512xf32>
    %11 = vector.shape_cast %8 : vector<64x512xf32> to vector<1x64x512xf32>
    tpu.vector_store %arg5[%c0_8, %c0_9, %c0_10], %11 {strides = array<i32>} : memref<2x64x512xf32, #tpu.memory_space<vmem>>, vector<1x64x512xf32>,
    %c1 = arith.constant 1 : index
    %c0_11 = arith.constant 0 : index
    %c0_12 = arith.constant 0 : index
    %12 = vector.load %arg0[%c1, %c0_11, %c0_12] : memref<2x64x16xbf16, #tpu.memory_space<vmem>>, vector<1x64x16xbf16>
    %13 = vector.shape_cast %12 : vector<1x64x16xbf16> to vector<64x16xbf16>
    %c1_13 = arith.constant 1 : index
    %c0_14 = arith.constant 0 : index
    %c0_15 = arith.constant 0 : index
    %14 = vector.load %arg1[%c1_13, %c0_14, %c0_15] : memref<2x144x512xbf16, #tpu.memory_space<vmem>>, vector<1x16x512xbf16>
    %15 = vector.shape_cast %14 : vector<1x16x512xbf16> to vector<16x512xbf16>
    %cst_16 = arith.constant dense<0.000000e+00> : vector<64x512xf32>
    %16 = tpu.matmul %13, %15, %cst_16 {dimension_numbers = #tpu.dot_dimension_numbers<[1], [0], [0], [1], [0, 0, 1, 1], [], []>} : vector<64x16xbf16>, vector<16x512xbf16>, vector<64x512xf32> -> vector<64x512xf32>
    %c1_17 = arith.constant 1 : index
    %c0_18 = arith.constant 0 : index
    %c0_19 = arith.constant 0 : index
    %17 = vector.load %arg3[%c1_17, %c0_18, %c0_19] : memref<2x1x896xf32, #tpu.memory_space<vmem>>, vector<1x1x512xf32>
    %18 = vector.shape_cast %17 : vector<1x1x512xf32> to vector<1x512xf32>
    %19 = vector.broadcast %18 : vector<1x512xf32> to vector<64x512xf32>
    %20 = arith.addf %16, %19 : vector<64x512xf32>
    %c1_20 = arith.constant 1 : index
    %c0_21 = arith.constant 0 : index
    %c0_22 = arith.constant 0 : index
    %21 = vector.load %arg5[%c1_20, %c0_21, %c0_22] : memref<2x64x512xf32, #tpu.memory_space<vmem>>, vector<1x64x512xf32>
    %22 = vector.shape_cast %21 : vector<1x64x512xf32> to vector<64x512xf32>
    %23 = vector.shape_cast %20 : vector<64x512xf32> to vector<1x64x512xf32>
    tpu.vector_store %arg5[%c1_20, %c0_21, %c0_22], %23 {strides = array<i32>} : memref<2x64x512xf32, #tpu.memory_space<vmem>>, vector<1x64x512xf32>,
    %cst_23 = arith.constant 0.000000e+00 : f32
    %24 = vector.broadcast %cst_23 : f32 to vector<8x128xf32>
    %cst_24 = arith.constant 0.000000e+00 : f32
    %25 = vector.broadcast %cst_24 : f32 to vector<8x128xf32>
    %cst_25 = arith.constant 0.000000e+00 : f32
    %26 = vector.broadcast %cst_25 : f32 to vector<8x128xf32>
    %cst_26 = arith.constant 0.000000e+00 : f32
    %27 = vector.broadcast %cst_26 : f32 to vector<8x128xf32>
    %c0_27 = arith.constant 0 : index
    %c0_28 = arith.constant 0 : index
    %c0_29 = arith.constant 0 : index
    %28 = vector.load %arg5[%c0_27, %c0_28, %c0_29] : memref<2x64x512xf32, #tpu.memory_space<vmem>>, vector<1x8x512xf32>
    %29 = vector.shape_cast %28 : vector<1x8x512xf32> to vector<8x512xf32>
    %30 = arith.truncf %24 : vector<8x128xf32> to vector<8x128xbf16>
    %c0_30 = arith.constant 0 : index
    %c16 = arith.constant 16 : index
    %c0_31 = arith.constant 0 : index
    %31 = vector.load %arg1[%c0_30, %c16, %c0_31] : memref<2x144x512xbf16, #tpu.memory_space<vmem>>, vector<1x128x512xbf16>
    %32 = vector.shape_cast %31 : vector<1x128x512xbf16> to vector<128x512xbf16>
    %cst_32 = arith.constant dense<0.000000e+00> : vector<8x512xf32>
    %33 = tpu.matmul %30, %32, %cst_32 {dimension_numbers = #tpu.dot_dimension_numbers<[1], [0], [0], [1], [0, 0, 1, 1], [], []>} : vector<8x128xbf16>, vector<128x512xbf16>, vector<8x512xf32> -> vector<8x512xf32>
    %34 = arith.addf %29, %33 : vector<8x512xf32>
    %35 = vector.extract_strided_slice %34 {offsets = [0, 0], sizes = [8, 384], strides = [1, 1]} : vector<8x512xf32> to vector<8x384xf32>
    %36 = arith.negf %35 : vector<8x384xf32>
    %37 = math.exp %36 : vector<8x384xf32>
    %cst_33 = arith.constant 1.000000e+00 : f32
    %38 = vector.broadcast %cst_33 : f32 to vector<8x384xf32>
    %39 = arith.addf %38, %37 : vector<8x384xf32>
    %40 = arith.divf %38, %39 : vector<8x384xf32>
    %41 = vector.extract_strided_slice %34 {offsets = [0, 384], sizes = [8, 128], strides = [1, 1]} : vector<8x512xf32> to vector<8x128xf32>
    %42 = math.tanh %41 : vector<8x128xf32>
    %43 = vector.extract_strided_slice %40 {offsets = [0, 128], sizes = [8, 128], strides = [1, 1]} : vector<8x384xf32> to vector<8x128xf32>
    %44 = arith.mulf %43, %26 : vector<8x128xf32>
    %45 = vector.extract_strided_slice %40 {offsets = [0, 0], sizes = [8, 128], strides = [1, 1]} : vector<8x384xf32> to vector<8x128xf32>
    %46 = arith.mulf %45, %42 : vector<8x128xf32>
    %47 = arith.addf %44, %46 : vector<8x128xf32>
    %48 = vector.extract_strided_slice %40 {offsets = [0, 256], sizes = [8, 128], strides = [1, 1]} : vector<8x384xf32> to vector<8x128xf32>
    %49 = math.tanh %47 : vector<8x128xf32>
    %50 = arith.mulf %48, %49 : vector<8x128xf32>
    %c1_34 = arith.constant 1 : index
    %c0_35 = arith.constant 0 : index
    %c0_36 = arith.constant 0 : index
    %51 = vector.load %arg5[%c1_34, %c0_35, %c0_36] : memref<2x64x512xf32, #tpu.memory_space<vmem>>, vector<1x8x512xf32>
    %52 = vector.shape_cast %51 : vector<1x8x512xf32> to vector<8x512xf32>
    %53 = arith.truncf %25 : vector<8x128xf32> to vector<8x128xbf16>
    %c1_37 = arith.constant 1 : index
    %c16_38 = arith.constant 16 : index
    %c0_39 = arith.constant 0 : index
    %54 = vector.load %arg1[%c1_37, %c16_38, %c0_39] : memref<2x144x512xbf16, #tpu.memory_space<vmem>>, vector<1x128x512xbf16>
    %55 = vector.shape_cast %54 : vector<1x128x512xbf16> to vector<128x512xbf16>
    %cst_40 = arith.constant dense<0.000000e+00> : vector<8x512xf32>
    %56 = tpu.matmul %53, %55, %cst_40 {dimension_numbers = #tpu.dot_dimension_numbers<[1], [0], [0], [1], [0, 0, 1, 1], [], []>} : vector<8x128xbf16>, vector<128x512xbf16>, vector<8x512xf32> -> vector<8x512xf32>
    %57 = arith.addf %52, %56 : vector<8x512xf32>
    %58 = vector.extract_strided_slice %57 {offsets = [0, 0], sizes = [8, 384], strides = [1, 1]} : vector<8x512xf32> to vector<8x384xf32>
    %59 = arith.negf %58 : vector<8x384xf32>
    %60 = math.exp %59 : vector<8x384xf32>
    %cst_41 = arith.constant 1.000000e+00 : f32
    %61 = vector.broadcast %cst_41 : f32 to vector<8x384xf32>
    %62 = arith.addf %61, %60 : vector<8x384xf32>
    %63 = arith.divf %61, %62 : vector<8x384xf32>
    %64 = vector.extract_strided_slice %57 {offsets = [0, 384], sizes = [8, 128], strides = [1, 1]} : vector<8x512xf32> to vector<8x128xf32>
    %65 = math.tanh %64 : vector<8x128xf32>
    %66 = vector.extract_strided_slice %63 {offsets = [0, 128], sizes = [8, 128], strides = [1, 1]} : vector<8x384xf32> to vector<8x128xf32>
    %67 = arith.mulf %66, %27 : vector<8x128xf32>
    %68 = vector.extract_strided_slice %63 {offsets = [0, 0], sizes = [8, 128], strides = [1, 1]} : vector<8x384xf32> to vector<8x128xf32>
    %69 = arith.mulf %68, %65 : vector<8x128xf32>
    %70 = arith.addf %67, %69 : vector<8x128xf32>
    %71 = vector.extract_strided_slice %63 {offsets = [0, 256], sizes = [8, 128], strides = [1, 1]} : vector<8x384xf32> to vector<8x128xf32>
    %72 = math.tanh %70 : vector<8x128xf32>
    %73 = arith.mulf %71, %72 : vector<8x128xf32>
    %c0_42 = arith.constant 0 : index
    %c8 = arith.constant 8 : index
    %c0_43 = arith.constant 0 : index
    %74 = vector.load %arg5[%c0_42, %c8, %c0_43] : memref<2x64x512xf32, #tpu.memory_space<vmem>>, vector<1x8x512xf32>
    %75 = vector.shape_cast %74 : vector<1x8x512xf32> to vector<8x512xf32>
    %76 = arith.truncf %50 : vector<8x128xf32> to vector<8x128xbf16>
    %c0_44 = arith.constant 0 : index
    %c16_45 = arith.constant 16 : index
    %c0_46 = arith.constant 0 : index
    %77 = vector.load %arg1[%c0_44, %c16_45, %c0_46] : memref<2x144x512xbf16, #tpu.memory_space<vmem>>, vector<1x128x512xbf16>
    %78 = vector.shape_cast %77 : vector<1x128x512xbf16> to vector<128x512xbf16>
    %cst_47 = arith.constant dense<0.000000e+00> : vector<8x512xf32>
    %79 = tpu.matmul %76, %78, %cst_47 {dimension_numbers = #tpu.dot_dimension_numbers<[1], [0], [0], [1], [0, 0, 1, 1], [], []>} : vector<8x128xbf16>, vector<128x512xbf16>, vector<8x512xf32> -> vector<8x512xf32>
    %80 = arith.addf %75, %79 : vector<8x512xf32>
    %81 = vector.extract_strided_slice %80 {offsets = [0, 0], sizes = [8, 384], strides = [1, 1]} : vector<8x512xf32> to vector<8x384xf32>
    %82 = arith.negf %81 : vector<8x384xf32>
    %83 = math.exp %82 : vector<8x384xf32>
    %cst_48 = arith.constant 1.000000e+00 : f32
    %84 = vector.broadcast %cst_48 : f32 to vector<8x384xf32>
    %85 = arith.addf %84, %83 : vector<8x384xf32>
    %86 = arith.divf %84, %85 : vector<8x384xf32>
    %87 = vector.extract_strided_slice %80 {offsets = [0, 384], sizes = [8, 128], strides = [1, 1]} : vector<8x512xf32> to vector<8x128xf32>
    %88 = math.tanh %87 : vector<8x128xf32>
    %89 = vector.extract_strided_slice %86 {offsets = [0, 128], sizes = [8, 128], strides = [1, 1]} : vector<8x384xf32> to vector<8x128xf32>
    %90 = arith.mulf %89, %47 : vector<8x128xf32>
    %91 = vector.extract_strided_slice %86 {offsets = [0, 0], sizes = [8, 128], strides = [1, 1]} : vector<8x384xf32> to vector<8x128xf32>
    %92 = arith.mulf %91, %88 : vector<8x128xf32>
    %93 = arith.addf %90, %92 : vector<8x128xf32>
    %94 = vector.extract_strided_slice %86 {offsets = [0, 256], sizes = [8, 128], strides = [1, 1]} : vector<8x384xf32> to vector<8x128xf32>
    %95 = math.tanh %93 : vector<8x128xf32>
    %96 = arith.mulf %94, %95 : vector<8x128xf32>
    %c1_49 = arith.constant 1 : index
    %c8_50 = arith.constant 8 : index
    %c0_51 = arith.constant 0 : index
    %97 = vector.load %arg5[%c1_49, %c8_50, %c0_51] : memref<2x64x512xf32, #tpu.memory_space<vmem>>, vector<1x8x512xf32>
    %98 = vector.shape_cast %97 : vector<1x8x512xf32> to vector<8x512xf32>
    %99 = arith.truncf %73 : vector<8x128xf32> to vector<8x128xbf16>
    %c1_52 = arith.constant 1 : index
    %c16_53 = arith.constant 16 : index
    %c0_54 = arith.constant 0 : index
    %100 = vector.load %arg1[%c1_52, %c16_53, %c0_54] : memref<2x144x512xbf16, #tpu.memory_space<vmem>>, vector<1x128x512xbf16>
    %101 = vector.shape_cast %100 : vector<1x128x512xbf16> to vector<128x512xbf16>
    %cst_55 = arith.constant dense<0.000000e+00> : vector<8x512xf32>
    %102 = tpu.matmul %99, %101, %cst_55 {dimension_numbers = #tpu.dot_dimension_numbers<[1], [0], [0], [1], [0, 0, 1, 1], [], []>} : vector<8x128xbf16>, vector<128x512xbf16>, vector<8x512xf32> -> vector<8x512xf32>
    %103 = arith.addf %98, %102 : vector<8x512xf32>
    %104 = vector.extract_strided_slice %103 {offsets = [0, 0], sizes = [8, 384], strides = [1, 1]} : vector<8x512xf32> to vector<8x384xf32>
    %105 = arith.negf %104 : vector<8x384xf32>
    %106 = math.exp %105 : vector<8x384xf32>
    %cst_56 = arith.constant 1.000000e+00 : f32
    %107 = vector.broadcast %cst_56 : f32 to vector<8x384xf32>
    %108 = arith.addf %107, %106 : vector<8x384xf32>
    %109 = arith.divf %107, %108 : vector<8x384xf32>
    %110 = vector.extract_strided_slice %103 {offsets = [0, 384], sizes = [8, 128], strides = [1, 1]} : vector<8x512xf32> to vector<8x128xf32>
    %111 = math.tanh %110 : vector<8x128xf32>
    %112 = vector.extract_strided_slice %109 {offsets = [0, 128], sizes = [8, 128], strides = [1, 1]} : vector<8x384xf32> to vector<8x128xf32>
    %113 = arith.mulf %112, %70 : vector<8x128xf32>
    %114 = vector.extract_strided_slice %109 {offsets = [0, 0], sizes = [8, 128], strides = [1, 1]} : vector<8x384xf32> to vector<8x128xf32>
    %115 = arith.mulf %114, %111 : vector<8x128xf32>
    %116 = arith.addf %113, %115 : vector<8x128xf32>
    %117 = vector.extract_strided_slice %109 {offsets = [0, 256], sizes = [8, 128], strides = [1, 1]} : vector<8x384xf32> to vector<8x128xf32>
    %118 = math.tanh %116 : vector<8x128xf32>
    %119 = arith.mulf %117, %118 : vector<8x128xf32>
    %c0_57 = arith.constant 0 : index
    %c16_58 = arith.constant 16 : index
    %c0_59 = arith.constant 0 : index
    %120 = vector.load %arg5[%c0_57, %c16_58, %c0_59] : memref<2x64x512xf32, #tpu.memory_space<vmem>>, vector<1x8x512xf32>
    %121 = vector.shape_cast %120 : vector<1x8x512xf32> to vector<8x512xf32>
    %122 = arith.truncf %96 : vector<8x128xf32> to vector<8x128xbf16>
    %c0_60 = arith.constant 0 : index
    %c16_61 = arith.constant 16 : index
    %c0_62 = arith.constant 0 : index
    %123 = vector.load %arg1[%c0_60, %c16_61, %c0_62] : memref<2x144x512xbf16, #tpu.memory_space<vmem>>, vector<1x128x512xbf16>
    %124 = vector.shape_cast %123 : vector<1x128x512xbf16> to vector<128x512xbf16>
    %cst_63 = arith.constant dense<0.000000e+00> : vector<8x512xf32>
    %125 = tpu.matmul %122, %124, %cst_63 {dimension_numbers = #tpu.dot_dimension_numbers<[1], [0], [0], [1], [0, 0, 1, 1], [], []>} : vector<8x128xbf16>, vector<128x512xbf16>, vector<8x512xf32> -> vector<8x512xf32>
    %126 = arith.addf %121, %125 : vector<8x512xf32>
    %127 = vector.extract_strided_slice %126 {offsets = [0, 0], sizes = [8, 384], strides = [1, 1]} : vector<8x512xf32> to vector<8x384xf32>
    %128 = arith.negf %127 : vector<8x384xf32>
    %129 = math.exp %128 : vector<8x384xf32>
    %cst_64 = arith.constant 1.000000e+00 : f32
    %130 = vector.broadcast %cst_64 : f32 to vector<8x384xf32>
    %131 = arith.addf %130, %129 : vector<8x384xf32>
    %132 = arith.divf %130, %131 : vector<8x384xf32>
    %133 = vector.extract_strided_slice %126 {offsets = [0, 384], sizes = [8, 128], strides = [1, 1]} : vector<8x512xf32> to vector<8x128xf32>
    %134 = math.tanh %133 : vector<8x128xf32>
    %135 = vector.extract_strided_slice %132 {offsets = [0, 128], sizes = [8, 128], strides = [1, 1]} : vector<8x384xf32> to vector<8x128xf32>
    %136 = arith.mulf %135, %93 : vector<8x128xf32>
    %137 = vector.extract_strided_slice %132 {offsets = [0, 0], sizes = [8, 128], strides = [1, 1]} : vector<8x384xf32> to vector<8x128xf32>
    %138 = arith.mulf %137, %134 : vector<8x128xf32>
    %139 = arith.addf %136, %138 : vector<8x128xf32>
    %140 = vector.extract_strided_slice %132 {offsets = [0, 256], sizes = [8, 128], strides = [1, 1]} : vector<8x384xf32> to vector<8x128xf32>
    %141 = math.tanh %139 : vector<8x128xf32>
    %142 = arith.mulf %140, %141 : vector<8x128xf32>
    %c1_65 = arith.constant 1 : index
    %c16_66 = arith.constant 16 : index
    %c0_67 = arith.constant 0 : index
    %143 = vector.load %arg5[%c1_65, %c16_66, %c0_67] : memref<2x64x512xf32, #tpu.memory_space<vmem>>, vector<1x8x512xf32>
    %144 = vector.shape_cast %143 : vector<1x8x512xf32> to vector<8x512xf32>
    %145 = arith.truncf %119 : vector<8x128xf32> to vector<8x128xbf16>
    %c1_68 = arith.constant 1 : index
    %c16_69 = arith.constant 16 : index
    %c0_70 = arith.constant 0 : index
    %146 = vector.load %arg1[%c1_68, %c16_69, %c0_70] : memref<2x144x512xbf16, #tpu.memory_space<vmem>>, vector<1x128x512xbf16>
    %147 = vector.shape_cast %146 : vector<1x128x512xbf16> to vector<128x512xbf16>
    %cst_71 = arith.constant dense<0.000000e+00> : vector<8x512xf32>
    %148 = tpu.matmul %145, %147, %cst_71 {dimension_numbers = #tpu.dot_dimension_numbers<[1], [0], [0], [1], [0, 0, 1, 1], [], []>} : vector<8x128xbf16>, vector<128x512xbf16>, vector<8x512xf32> -> vector<8x512xf32>
    %149 = arith.addf %144, %148 : vector<8x512xf32>
    %150 = vector.extract_strided_slice %149 {offsets = [0, 0], sizes = [8, 384], strides = [1, 1]} : vector<8x512xf32> to vector<8x384xf32>
    %151 = arith.negf %150 : vector<8x384xf32>
    %152 = math.exp %151 : vector<8x384xf32>
    %cst_72 = arith.constant 1.000000e+00 : f32
    %153 = vector.broadcast %cst_72 : f32 to vector<8x384xf32>
    %154 = arith.addf %153, %152 : vector<8x384xf32>
    %155 = arith.divf %153, %154 : vector<8x384xf32>
    %156 = vector.extract_strided_slice %149 {offsets = [0, 384], sizes = [8, 128], strides = [1, 1]} : vector<8x512xf32> to vector<8x128xf32>
    %157 = math.tanh %156 : vector<8x128xf32>
    %158 = vector.extract_strided_slice %155 {offsets = [0, 128], sizes = [8, 128], strides = [1, 1]} : vector<8x384xf32> to vector<8x128xf32>
    %159 = arith.mulf %158, %116 : vector<8x128xf32>
    %160 = vector.extract_strided_slice %155 {offsets = [0, 0], sizes = [8, 128], strides = [1, 1]} : vector<8x384xf32> to vector<8x128xf32>
    %161 = arith.mulf %160, %157 : vector<8x128xf32>
    %162 = arith.addf %159, %161 : vector<8x128xf32>
    %163 = vector.extract_strided_slice %155 {offsets = [0, 256], sizes = [8, 128], strides = [1, 1]} : vector<8x384xf32> to vector<8x128xf32>
    %164 = math.tanh %162 : vector<8x128xf32>
    %165 = arith.mulf %163, %164 : vector<8x128xf32>
    %c0_73 = arith.constant 0 : index
    %c24 = arith.constant 24 : index
    %c0_74 = arith.constant 0 : index
    %166 = vector.load %arg5[%c0_73, %c24, %c0_74] : memref<2x64x512xf32, #tpu.memory_space<vmem>>, vector<1x8x512xf32>
    %167 = vector.shape_cast %166 : vector<1x8x512xf32> to vector<8x512xf32>
    %168 = arith.truncf %142 : vector<8x128xf32> to vector<8x128xbf16>
    %c0_75 = arith.constant 0 : index
    %c16_76 = arith.constant 16 : index
    %c0_77 = arith.constant 0 : index
    %169 = vector.load %arg1[%c0_75, %c16_76, %c0_77] : memref<2x144x512xbf16, #tpu.memory_space<vmem>>, vector<1x128x512xbf16>
    %170 = vector.shape_cast %169 : vector<1x128x512xbf16> to vector<128x512xbf16>
    %cst_78 = arith.constant dense<0.000000e+00> : vector<8x512xf32>
    %171 = tpu.matmul %168, %170, %cst_78 {dimension_numbers = #tpu.dot_dimension_numbers<[1], [0], [0], [1], [0, 0, 1, 1], [], []>} : vector<8x128xbf16>, vector<128x512xbf16>, vector<8x512xf32> -> vector<8x512xf32>
    %172 = arith.addf %167, %171 : vector<8x512xf32>
    %173 = vector.extract_strided_slice %172 {offsets = [0, 0], sizes = [8, 384], strides = [1, 1]} : vector<8x512xf32> to vector<8x384xf32>
    %174 = arith.negf %173 : vector<8x384xf32>
    %175 = math.exp %174 : vector<8x384xf32>
    %cst_79 = arith.constant 1.000000e+00 : f32
    %176 = vector.broadcast %cst_79 : f32 to vector<8x384xf32>
    %177 = arith.addf %176, %175 : vector<8x384xf32>
    %178 = arith.divf %176, %177 : vector<8x384xf32>
    %179 = vector.extract_strided_slice %172 {offsets = [0, 384], sizes = [8, 128], strides = [1, 1]} : vector<8x512xf32> to vector<8x128xf32>
    %180 = math.tanh %179 : vector<8x128xf32>
    %181 = vector.extract_strided_slice %178 {offsets = [0, 128], sizes = [8, 128], strides = [1, 1]} : vector<8x384xf32> to vector<8x128xf32>
    %182 = arith.mulf %181, %139 : vector<8x128xf32>
    %183 = vector.extract_strided_slice %178 {offsets = [0, 0], sizes = [8, 128], strides = [1, 1]} : vector<8x384xf32> to vector<8x128xf32>
    %184 = arith.mulf %183, %180 : vector<8x128xf32>
    %185 = arith.addf %182, %184 : vector<8x128xf32>
    %186 = vector.extract_strided_slice %178 {offsets = [0, 256], sizes = [8, 128], strides = [1, 1]} : vector<8x384xf32> to vector<8x128xf32>
    %187 = math.tanh %185 : vector<8x128xf32>
    %188 = arith.mulf %186, %187 : vector<8x128xf32>
    %c1_80 = arith.constant 1 : index
    %c24_81 = arith.constant 24 : index
    %c0_82 = arith.constant 0 : index
    %189 = vector.load %arg5[%c1_80, %c24_81, %c0_82] : memref<2x64x512xf32, #tpu.memory_space<vmem>>, vector<1x8x512xf32>
    %190 = vector.shape_cast %189 : vector<1x8x512xf32> to vector<8x512xf32>
    %191 = arith.truncf %165 : vector<8x128xf32> to vector<8x128xbf16>
    %c1_83 = arith.constant 1 : index
    %c16_84 = arith.constant 16 : index
    %c0_85 = arith.constant 0 : index
    %192 = vector.load %arg1[%c1_83, %c16_84, %c0_85] : memref<2x144x512xbf16, #tpu.memory_space<vmem>>, vector<1x128x512xbf16>
    %193 = vector.shape_cast %192 : vector<1x128x512xbf16> to vector<128x512xbf16>
    %cst_86 = arith.constant dense<0.000000e+00> : vector<8x512xf32>
    %194 = tpu.matmul %191, %193, %cst_86 {dimension_numbers = #tpu.dot_dimension_numbers<[1], [0], [0], [1], [0, 0, 1, 1], [], []>} : vector<8x128xbf16>, vector<128x512xbf16>, vector<8x512xf32> -> vector<8x512xf32>
    %195 = arith.addf %190, %194 : vector<8x512xf32>
    %196 = vector.extract_strided_slice %195 {offsets = [0, 0], sizes = [8, 384], strides = [1, 1]} : vector<8x512xf32> to vector<8x384xf32>
    %197 = arith.negf %196 : vector<8x384xf32>
    %198 = math.exp %197 : vector<8x384xf32>
    %cst_87 = arith.constant 1.000000e+00 : f32
    %199 = vector.broadcast %cst_87 : f32 to vector<8x384xf32>
    %200 = arith.addf %199, %198 : vector<8x384xf32>
    %201 = arith.divf %199, %200 : vector<8x384xf32>
    %202 = vector.extract_strided_slice %195 {offsets = [0, 384], sizes = [8, 128], strides = [1, 1]} : vector<8x512xf32> to vector<8x128xf32>
    %203 = math.tanh %202 : vector<8x128xf32>
    %204 = vector.extract_strided_slice %201 {offsets = [0, 128], sizes = [8, 128], strides = [1, 1]} : vector<8x384xf32> to vector<8x128xf32>
    %205 = arith.mulf %204, %162 : vector<8x128xf32>
    %206 = vector.extract_strided_slice %201 {offsets = [0, 0], sizes = [8, 128], strides = [1, 1]} : vector<8x384xf32> to vector<8x128xf32>
    %207 = arith.mulf %206, %203 : vector<8x128xf32>
    %208 = arith.addf %205, %207 : vector<8x128xf32>
    %209 = vector.extract_strided_slice %201 {offsets = [0, 256], sizes = [8, 128], strides = [1, 1]} : vector<8x384xf32> to vector<8x128xf32>
    %210 = math.tanh %208 : vector<8x128xf32>
    %211 = arith.mulf %209, %210 : vector<8x128xf32>
    %c0_88 = arith.constant 0 : index
    %c32 = arith.constant 32 : index
    %c0_89 = arith.constant 0 : index
    %212 = vector.load %arg5[%c0_88, %c32, %c0_89] : memref<2x64x512xf32, #tpu.memory_space<vmem>>, vector<1x8x512xf32>
    %213 = vector.shape_cast %212 : vector<1x8x512xf32> to vector<8x512xf32>
    %214 = arith.truncf %188 : vector<8x128xf32> to vector<8x128xbf16>
    %c0_90 = arith.constant 0 : index
    %c16_91 = arith.constant 16 : index
    %c0_92 = arith.constant 0 : index
    %215 = vector.load %arg1[%c0_90, %c16_91, %c0_92] : memref<2x144x512xbf16, #tpu.memory_space<vmem>>, vector<1x128x512xbf16>
    %216 = vector.shape_cast %215 : vector<1x128x512xbf16> to vector<128x512xbf16>
    %cst_93 = arith.constant dense<0.000000e+00> : vector<8x512xf32>
    %217 = tpu.matmul %214, %216, %cst_93 {dimension_numbers = #tpu.dot_dimension_numbers<[1], [0], [0], [1], [0, 0, 1, 1], [], []>} : vector<8x128xbf16>, vector<128x512xbf16>, vector<8x512xf32> -> vector<8x512xf32>
    %218 = arith.addf %213, %217 : vector<8x512xf32>
    %219 = vector.extract_strided_slice %218 {offsets = [0, 0], sizes = [8, 384], strides = [1, 1]} : vector<8x512xf32> to vector<8x384xf32>
    %220 = arith.negf %219 : vector<8x384xf32>
    %221 = math.exp %220 : vector<8x384xf32>
    %cst_94 = arith.constant 1.000000e+00 : f32
    %222 = vector.broadcast %cst_94 : f32 to vector<8x384xf32>
    %223 = arith.addf %222, %221 : vector<8x384xf32>
    %224 = arith.divf %222, %223 : vector<8x384xf32>
    %225 = vector.extract_strided_slice %218 {offsets = [0, 384], sizes = [8, 128], strides = [1, 1]} : vector<8x512xf32> to vector<8x128xf32>
    %226 = math.tanh %225 : vector<8x128xf32>
    %227 = vector.extract_strided_slice %224 {offsets = [0, 128], sizes = [8, 128], strides = [1, 1]} : vector<8x384xf32> to vector<8x128xf32>
    %228 = arith.mulf %227, %185 : vector<8x128xf32>
    %229 = vector.extract_strided_slice %224 {offsets = [0, 0], sizes = [8, 128], strides = [1, 1]} : vector<8x384xf32> to vector<8x128xf32>
    %230 = arith.mulf %229, %226 : vector<8x128xf32>
    %231 = arith.addf %228, %230 : vector<8x128xf32>
    %232 = vector.extract_strided_slice %224 {offsets = [0, 256], sizes = [8, 128], strides = [1, 1]} : vector<8x384xf32> to vector<8x128xf32>
    %233 = math.tanh %231 : vector<8x128xf32>
    %234 = arith.mulf %232, %233 : vector<8x128xf32>
    %c1_95 = arith.constant 1 : index
    %c32_96 = arith.constant 32 : index
    %c0_97 = arith.constant 0 : index
    %235 = vector.load %arg5[%c1_95, %c32_96, %c0_97] : memref<2x64x512xf32, #tpu.memory_space<vmem>>, vector<1x8x512xf32>
    %236 = vector.shape_cast %235 : vector<1x8x512xf32> to vector<8x512xf32>
    %237 = arith.truncf %211 : vector<8x128xf32> to vector<8x128xbf16>
    %c1_98 = arith.constant 1 : index
    %c16_99 = arith.constant 16 : index
    %c0_100 = arith.constant 0 : index
    %238 = vector.load %arg1[%c1_98, %c16_99, %c0_100] : memref<2x144x512xbf16, #tpu.memory_space<vmem>>, vector<1x128x512xbf16>
    %239 = vector.shape_cast %238 : vector<1x128x512xbf16> to vector<128x512xbf16>
    %cst_101 = arith.constant dense<0.000000e+00> : vector<8x512xf32>
    %240 = tpu.matmul %237, %239, %cst_101 {dimension_numbers = #tpu.dot_dimension_numbers<[1], [0], [0], [1], [0, 0, 1, 1], [], []>} : vector<8x128xbf16>, vector<128x512xbf16>, vector<8x512xf32> -> vector<8x512xf32>
    %241 = arith.addf %236, %240 : vector<8x512xf32>
    %242 = vector.extract_strided_slice %241 {offsets = [0, 0], sizes = [8, 384], strides = [1, 1]} : vector<8x512xf32> to vector<8x384xf32>
    %243 = arith.negf %242 : vector<8x384xf32>
    %244 = math.exp %243 : vector<8x384xf32>
    %cst_102 = arith.constant 1.000000e+00 : f32
    %245 = vector.broadcast %cst_102 : f32 to vector<8x384xf32>
    %246 = arith.addf %245, %244 : vector<8x384xf32>
    %247 = arith.divf %245, %246 : vector<8x384xf32>
    %248 = vector.extract_strided_slice %241 {offsets = [0, 384], sizes = [8, 128], strides = [1, 1]} : vector<8x512xf32> to vector<8x128xf32>
    %249 = math.tanh %248 : vector<8x128xf32>
    %250 = vector.extract_strided_slice %247 {offsets = [0, 128], sizes = [8, 128], strides = [1, 1]} : vector<8x384xf32> to vector<8x128xf32>
    %251 = arith.mulf %250, %208 : vector<8x128xf32>
    %252 = vector.extract_strided_slice %247 {offsets = [0, 0], sizes = [8, 128], strides = [1, 1]} : vector<8x384xf32> to vector<8x128xf32>
    %253 = arith.mulf %252, %249 : vector<8x128xf32>
    %254 = arith.addf %251, %253 : vector<8x128xf32>
    %255 = vector.extract_strided_slice %247 {offsets = [0, 256], sizes = [8, 128], strides = [1, 1]} : vector<8x384xf32> to vector<8x128xf32>
    %256 = math.tanh %254 : vector<8x128xf32>
    %257 = arith.mulf %255, %256 : vector<8x128xf32>
    %c0_103 = arith.constant 0 : index
    %c40 = arith.constant 40 : index
    %c0_104 = arith.constant 0 : index
    %258 = vector.load %arg5[%c0_103, %c40, %c0_104] : memref<2x64x512xf32, #tpu.memory_space<vmem>>, vector<1x8x512xf32>
    %259 = vector.shape_cast %258 : vector<1x8x512xf32> to vector<8x512xf32>
    %260 = arith.truncf %234 : vector<8x128xf32> to vector<8x128xbf16>
    %c0_105 = arith.constant 0 : index
    %c16_106 = arith.constant 16 : index
    %c0_107 = arith.constant 0 : index
    %261 = vector.load %arg1[%c0_105, %c16_106, %c0_107] : memref<2x144x512xbf16, #tpu.memory_space<vmem>>, vector<1x128x512xbf16>
    %262 = vector.shape_cast %261 : vector<1x128x512xbf16> to vector<128x512xbf16>
    %cst_108 = arith.constant dense<0.000000e+00> : vector<8x512xf32>
    %263 = tpu.matmul %260, %262, %cst_108 {dimension_numbers = #tpu.dot_dimension_numbers<[1], [0], [0], [1], [0, 0, 1, 1], [], []>} : vector<8x128xbf16>, vector<128x512xbf16>, vector<8x512xf32> -> vector<8x512xf32>
    %264 = arith.addf %259, %263 : vector<8x512xf32>
    %265 = vector.extract_strided_slice %264 {offsets = [0, 0], sizes = [8, 384], strides = [1, 1]} : vector<8x512xf32> to vector<8x384xf32>
    %266 = arith.negf %265 : vector<8x384xf32>
    %267 = math.exp %266 : vector<8x384xf32>
    %cst_109 = arith.constant 1.000000e+00 : f32
    %268 = vector.broadcast %cst_109 : f32 to vector<8x384xf32>
    %269 = arith.addf %268, %267 : vector<8x384xf32>
    %270 = arith.divf %268, %269 : vector<8x384xf32>
    %271 = vector.extract_strided_slice %264 {offsets = [0, 384], sizes = [8, 128], strides = [1, 1]} : vector<8x512xf32> to vector<8x128xf32>
    %272 = math.tanh %271 : vector<8x128xf32>
    %273 = vector.extract_strided_slice %270 {offsets = [0, 128], sizes = [8, 128], strides = [1, 1]} : vector<8x384xf32> to vector<8x128xf32>
    %274 = arith.mulf %273, %231 : vector<8x128xf32>
    %275 = vector.extract_strided_slice %270 {offsets = [0, 0], sizes = [8, 128], strides = [1, 1]} : vector<8x384xf32> to vector<8x128xf32>
    %276 = arith.mulf %275, %272 : vector<8x128xf32>
    %277 = arith.addf %274, %276 : vector<8x128xf32>
    %278 = vector.extract_strided_slice %270 {offsets = [0, 256], sizes = [8, 128], strides = [1, 1]} : vector<8x384xf32> to vector<8x128xf32>
    %279 = math.tanh %277 : vector<8x128xf32>
    %280 = arith.mulf %278, %279 : vector<8x128xf32>
    %c1_110 = arith.constant 1 : index
    %c40_111 = arith.constant 40 : index
    %c0_112 = arith.constant 0 : index
    %281 = vector.load %arg5[%c1_110, %c40_111, %c0_112] : memref<2x64x512xf32, #tpu.memory_space<vmem>>, vector<1x8x512xf32>
    %282 = vector.shape_cast %281 : vector<1x8x512xf32> to vector<8x512xf32>
    %283 = arith.truncf %257 : vector<8x128xf32> to vector<8x128xbf16>
    %c1_113 = arith.constant 1 : index
    %c16_114 = arith.constant 16 : index
    %c0_115 = arith.constant 0 : index
    %284 = vector.load %arg1[%c1_113, %c16_114, %c0_115] : memref<2x144x512xbf16, #tpu.memory_space<vmem>>, vector<1x128x512xbf16>
    %285 = vector.shape_cast %284 : vector<1x128x512xbf16> to vector<128x512xbf16>
    %cst_116 = arith.constant dense<0.000000e+00> : vector<8x512xf32>
    %286 = tpu.matmul %283, %285, %cst_116 {dimension_numbers = #tpu.dot_dimension_numbers<[1], [0], [0], [1], [0, 0, 1, 1], [], []>} : vector<8x128xbf16>, vector<128x512xbf16>, vector<8x512xf32> -> vector<8x512xf32>
    %287 = arith.addf %282, %286 : vector<8x512xf32>
    %288 = vector.extract_strided_slice %287 {offsets = [0, 0], sizes = [8, 384], strides = [1, 1]} : vector<8x512xf32> to vector<8x384xf32>
    %289 = arith.negf %288 : vector<8x384xf32>
    %290 = math.exp %289 : vector<8x384xf32>
    %cst_117 = arith.constant 1.000000e+00 : f32
    %291 = vector.broadcast %cst_117 : f32 to vector<8x384xf32>
    %292 = arith.addf %291, %290 : vector<8x384xf32>
    %293 = arith.divf %291, %292 : vector<8x384xf32>
    %294 = vector.extract_strided_slice %287 {offsets = [0, 384], sizes = [8, 128], strides = [1, 1]} : vector<8x512xf32> to vector<8x128xf32>
    %295 = math.tanh %294 : vector<8x128xf32>
    %296 = vector.extract_strided_slice %293 {offsets = [0, 128], sizes = [8, 128], strides = [1, 1]} : vector<8x384xf32> to vector<8x128xf32>
    %297 = arith.mulf %296, %254 : vector<8x128xf32>
    %298 = vector.extract_strided_slice %293 {offsets = [0, 0], sizes = [8, 128], strides = [1, 1]} : vector<8x384xf32> to vector<8x128xf32>
    %299 = arith.mulf %298, %295 : vector<8x128xf32>
    %300 = arith.addf %297, %299 : vector<8x128xf32>
    %301 = vector.extract_strided_slice %293 {offsets = [0, 256], sizes = [8, 128], strides = [1, 1]} : vector<8x384xf32> to vector<8x128xf32>
    %302 = math.tanh %300 : vector<8x128xf32>
    %303 = arith.mulf %301, %302 : vector<8x128xf32>
    %c0_118 = arith.constant 0 : index
    %c48 = arith.constant 48 : index
    %c0_119 = arith.constant 0 : index
    %304 = vector.load %arg5[%c0_118, %c48, %c0_119] : memref<2x64x512xf32, #tpu.memory_space<vmem>>, vector<1x8x512xf32>
    %305 = vector.shape_cast %304 : vector<1x8x512xf32> to vector<8x512xf32>
    %306 = arith.truncf %280 : vector<8x128xf32> to vector<8x128xbf16>
    %c0_120 = arith.constant 0 : index
    %c16_121 = arith.constant 16 : index
    %c0_122 = arith.constant 0 : index
    %307 = vector.load %arg1[%c0_120, %c16_121, %c0_122] : memref<2x144x512xbf16, #tpu.memory_space<vmem>>, vector<1x128x512xbf16>
    %308 = vector.shape_cast %307 : vector<1x128x512xbf16> to vector<128x512xbf16>
    %cst_123 = arith.constant dense<0.000000e+00> : vector<8x512xf32>
    %309 = tpu.matmul %306, %308, %cst_123 {dimension_numbers = #tpu.dot_dimension_numbers<[1], [0], [0], [1], [0, 0, 1, 1], [], []>} : vector<8x128xbf16>, vector<128x512xbf16>, vector<8x512xf32> -> vector<8x512xf32>
    %310 = arith.addf %305, %309 : vector<8x512xf32>
    %311 = vector.extract_strided_slice %310 {offsets = [0, 0], sizes = [8, 384], strides = [1, 1]} : vector<8x512xf32> to vector<8x384xf32>
    %312 = arith.negf %311 : vector<8x384xf32>
    %313 = math.exp %312 : vector<8x384xf32>
    %cst_124 = arith.constant 1.000000e+00 : f32
    %314 = vector.broadcast %cst_124 : f32 to vector<8x384xf32>
    %315 = arith.addf %314, %313 : vector<8x384xf32>
    %316 = arith.divf %314, %315 : vector<8x384xf32>
    %317 = vector.extract_strided_slice %310 {offsets = [0, 384], sizes = [8, 128], strides = [1, 1]} : vector<8x512xf32> to vector<8x128xf32>
    %318 = math.tanh %317 : vector<8x128xf32>
    %319 = vector.extract_strided_slice %316 {offsets = [0, 128], sizes = [8, 128], strides = [1, 1]} : vector<8x384xf32> to vector<8x128xf32>
    %320 = arith.mulf %319, %277 : vector<8x128xf32>
    %321 = vector.extract_strided_slice %316 {offsets = [0, 0], sizes = [8, 128], strides = [1, 1]} : vector<8x384xf32> to vector<8x128xf32>
    %322 = arith.mulf %321, %318 : vector<8x128xf32>
    %323 = arith.addf %320, %322 : vector<8x128xf32>
    %324 = vector.extract_strided_slice %316 {offsets = [0, 256], sizes = [8, 128], strides = [1, 1]} : vector<8x384xf32> to vector<8x128xf32>
    %325 = math.tanh %323 : vector<8x128xf32>
    %326 = arith.mulf %324, %325 : vector<8x128xf32>
    %c1_125 = arith.constant 1 : index
    %c48_126 = arith.constant 48 : index
    %c0_127 = arith.constant 0 : index
    %327 = vector.load %arg5[%c1_125, %c48_126, %c0_127] : memref<2x64x512xf32, #tpu.memory_space<vmem>>, vector<1x8x512xf32>
    %328 = vector.shape_cast %327 : vector<1x8x512xf32> to vector<8x512xf32>
    %329 = arith.truncf %303 : vector<8x128xf32> to vector<8x128xbf16>
    %c1_128 = arith.constant 1 : index
    %c16_129 = arith.constant 16 : index
    %c0_130 = arith.constant 0 : index
    %330 = vector.load %arg1[%c1_128, %c16_129, %c0_130] : memref<2x144x512xbf16, #tpu.memory_space<vmem>>, vector<1x128x512xbf16>
    %331 = vector.shape_cast %330 : vector<1x128x512xbf16> to vector<128x512xbf16>
    %cst_131 = arith.constant dense<0.000000e+00> : vector<8x512xf32>
    %332 = tpu.matmul %329, %331, %cst_131 {dimension_numbers = #tpu.dot_dimension_numbers<[1], [0], [0], [1], [0, 0, 1, 1], [], []>} : vector<8x128xbf16>, vector<128x512xbf16>, vector<8x512xf32> -> vector<8x512xf32>
    %333 = arith.addf %328, %332 : vector<8x512xf32>
    %334 = vector.extract_strided_slice %333 {offsets = [0, 0], sizes = [8, 384], strides = [1, 1]} : vector<8x512xf32> to vector<8x384xf32>
    %335 = arith.negf %334 : vector<8x384xf32>
    %336 = math.exp %335 : vector<8x384xf32>
    %cst_132 = arith.constant 1.000000e+00 : f32
    %337 = vector.broadcast %cst_132 : f32 to vector<8x384xf32>
    %338 = arith.addf %337, %336 : vector<8x384xf32>
    %339 = arith.divf %337, %338 : vector<8x384xf32>
    %340 = vector.extract_strided_slice %333 {offsets = [0, 384], sizes = [8, 128], strides = [1, 1]} : vector<8x512xf32> to vector<8x128xf32>
    %341 = math.tanh %340 : vector<8x128xf32>
    %342 = vector.extract_strided_slice %339 {offsets = [0, 128], sizes = [8, 128], strides = [1, 1]} : vector<8x384xf32> to vector<8x128xf32>
    %343 = arith.mulf %342, %300 : vector<8x128xf32>
    %344 = vector.extract_strided_slice %339 {offsets = [0, 0], sizes = [8, 128], strides = [1, 1]} : vector<8x384xf32> to vector<8x128xf32>
    %345 = arith.mulf %344, %341 : vector<8x128xf32>
    %346 = arith.addf %343, %345 : vector<8x128xf32>
    %347 = vector.extract_strided_slice %339 {offsets = [0, 256], sizes = [8, 128], strides = [1, 1]} : vector<8x384xf32> to vector<8x128xf32>
    %348 = math.tanh %346 : vector<8x128xf32>
    %349 = arith.mulf %347, %348 : vector<8x128xf32>
    %c0_133 = arith.constant 0 : index
    %c56 = arith.constant 56 : index
    %c0_134 = arith.constant 0 : index
    %350 = vector.load %arg5[%c0_133, %c56, %c0_134] : memref<2x64x512xf32, #tpu.memory_space<vmem>>, vector<1x8x512xf32>
    %351 = vector.shape_cast %350 : vector<1x8x512xf32> to vector<8x512xf32>
    %352 = arith.truncf %326 : vector<8x128xf32> to vector<8x128xbf16>
    %c0_135 = arith.constant 0 : index
    %c16_136 = arith.constant 16 : index
    %c0_137 = arith.constant 0 : index
    %353 = vector.load %arg1[%c0_135, %c16_136, %c0_137] : memref<2x144x512xbf16, #tpu.memory_space<vmem>>, vector<1x128x512xbf16>
    %354 = vector.shape_cast %353 : vector<1x128x512xbf16> to vector<128x512xbf16>
    %cst_138 = arith.constant dense<0.000000e+00> : vector<8x512xf32>
    %355 = tpu.matmul %352, %354, %cst_138 {dimension_numbers = #tpu.dot_dimension_numbers<[1], [0], [0], [1], [0, 0, 1, 1], [], []>} : vector<8x128xbf16>, vector<128x512xbf16>, vector<8x512xf32> -> vector<8x512xf32>
    %356 = arith.addf %351, %355 : vector<8x512xf32>
    %357 = vector.extract_strided_slice %356 {offsets = [0, 0], sizes = [8, 384], strides = [1, 1]} : vector<8x512xf32> to vector<8x384xf32>
    %358 = arith.negf %357 : vector<8x384xf32>
    %359 = math.exp %358 : vector<8x384xf32>
    %cst_139 = arith.constant 1.000000e+00 : f32
    %360 = vector.broadcast %cst_139 : f32 to vector<8x384xf32>
    %361 = arith.addf %360, %359 : vector<8x384xf32>
    %362 = arith.divf %360, %361 : vector<8x384xf32>
    %363 = vector.extract_strided_slice %356 {offsets = [0, 384], sizes = [8, 128], strides = [1, 1]} : vector<8x512xf32> to vector<8x128xf32>
    %364 = math.tanh %363 : vector<8x128xf32>
    %365 = vector.extract_strided_slice %362 {offsets = [0, 128], sizes = [8, 128], strides = [1, 1]} : vector<8x384xf32> to vector<8x128xf32>
    %366 = arith.mulf %365, %323 : vector<8x128xf32>
    %367 = vector.extract_strided_slice %362 {offsets = [0, 0], sizes = [8, 128], strides = [1, 1]} : vector<8x384xf32> to vector<8x128xf32>
    %368 = arith.mulf %367, %364 : vector<8x128xf32>
    %369 = arith.addf %366, %368 : vector<8x128xf32>
    %370 = vector.extract_strided_slice %362 {offsets = [0, 256], sizes = [8, 128], strides = [1, 1]} : vector<8x384xf32> to vector<8x128xf32>
    %371 = math.tanh %369 : vector<8x128xf32>
    %372 = arith.mulf %370, %371 : vector<8x128xf32>
    %c1_140 = arith.constant 1 : index
    %c56_141 = arith.constant 56 : index
    %c0_142 = arith.constant 0 : index
    %373 = vector.load %arg5[%c1_140, %c56_141, %c0_142] : memref<2x64x512xf32, #tpu.memory_space<vmem>>, vector<1x8x512xf32>
    %374 = vector.shape_cast %373 : vector<1x8x512xf32> to vector<8x512xf32>
    %375 = arith.truncf %349 : vector<8x128xf32> to vector<8x128xbf16>
    %c1_143 = arith.constant 1 : index
    %c16_144 = arith.constant 16 : index
    %c0_145 = arith.constant 0 : index
    %376 = vector.load %arg1[%c1_143, %c16_144, %c0_145] : memref<2x144x512xbf16, #tpu.memory_space<vmem>>, vector<1x128x512xbf16>
    %377 = vector.shape_cast %376 : vector<1x128x512xbf16> to vector<128x512xbf16>
    %cst_146 = arith.constant dense<0.000000e+00> : vector<8x512xf32>
    %378 = tpu.matmul %375, %377, %cst_146 {dimension_numbers = #tpu.dot_dimension_numbers<[1], [0], [0], [1], [0, 0, 1, 1], [], []>} : vector<8x128xbf16>, vector<128x512xbf16>, vector<8x512xf32> -> vector<8x512xf32>
    %379 = arith.addf %374, %378 : vector<8x512xf32>
    %380 = vector.extract_strided_slice %379 {offsets = [0, 0], sizes = [8, 384], strides = [1, 1]} : vector<8x512xf32> to vector<8x384xf32>
    %381 = arith.negf %380 : vector<8x384xf32>
    %382 = math.exp %381 : vector<8x384xf32>
    %cst_147 = arith.constant 1.000000e+00 : f32
    %383 = vector.broadcast %cst_147 : f32 to vector<8x384xf32>
    %384 = arith.addf %383, %382 : vector<8x384xf32>
    %385 = arith.divf %383, %384 : vector<8x384xf32>
    %386 = vector.extract_strided_slice %379 {offsets = [0, 384], sizes = [8, 128], strides = [1, 1]} : vector<8x512xf32> to vector<8x128xf32>
    %387 = math.tanh %386 : vector<8x128xf32>
    %388 = vector.extract_strided_slice %385 {offsets = [0, 128], sizes = [8, 128], strides = [1, 1]} : vector<8x384xf32> to vector<8x128xf32>
    %389 = arith.mulf %388, %346 : vector<8x128xf32>
    %390 = vector.extract_strided_slice %385 {offsets = [0, 0], sizes = [8, 128], strides = [1, 1]} : vector<8x384xf32> to vector<8x128xf32>
    %391 = arith.mulf %390, %387 : vector<8x128xf32>
    %392 = arith.addf %389, %391 : vector<8x128xf32>
    %393 = vector.extract_strided_slice %385 {offsets = [0, 256], sizes = [8, 128], strides = [1, 1]} : vector<8x384xf32> to vector<8x128xf32>
    %394 = math.tanh %392 : vector<8x128xf32>
    %395 = arith.mulf %393, %394 : vector<8x128xf32>
    %396 = arith.truncf %372 : vector<8x128xf32> to vector<8x128xbf16>
    %c0_148 = arith.constant 0 : index
    %c0_149 = arith.constant 0 : index
    %c0_150 = arith.constant 0 : index
    %397 = vector.load %arg2[%c0_148, %c0_149, %c0_150] : memref<2x256x64xbf16, #tpu.memory_space<vmem>>, vector<1x128x64xbf16>
    %398 = vector.shape_cast %397 : vector<1x128x64xbf16> to vector<128x64xbf16>
    %cst_151 = arith.constant dense<0.000000e+00> : vector<8x64xf32>
    %399 = tpu.matmul %396, %398, %cst_151 {dimension_numbers = #tpu.dot_dimension_numbers<[1], [0], [0], [1], [0, 0, 1, 1], [], []>} : vector<8x128xbf16>, vector<128x64xbf16>, vector<8x64xf32> -> vector<8x64xf32>
    %c0_152 = arith.constant 0 : index
    %c0_153 = arith.constant 0 : index
    %c512 = arith.constant 512 : index
    %400 = vector.load %arg3[%c0_152, %c0_153, %c512] : memref<2x1x896xf32, #tpu.memory_space<vmem>>, vector<1x1x64xf32>
    %401 = vector.shape_cast %400 : vector<1x1x64xf32> to vector<1x64xf32>
    %402 = vector.broadcast %401 : vector<1x64xf32> to vector<8x64xf32>
    %403 = arith.addf %399, %402 : vector<8x64xf32>
    %cst_154 = arith.constant 0.000000e+00 : f32
    %404 = vector.broadcast %cst_154 : f32 to vector<8x64xf32>
    %405 = arith.cmpf ogt, %403, %404 : vector<8x64xf32>
    %cst_155 = arith.constant 0.00999999977 : f32
    %406 = vector.broadcast %cst_155 : f32 to vector<8x64xf32>
    %407 = arith.mulf %406, %403 : vector<8x64xf32>
    %408 = arith.select %405, %403, %407 : vector<8x64xi1>, vector<8x64xf32>
    %409 = arith.truncf %408 : vector<8x64xf32> to vector<8x64xbf16>
    %c0_156 = arith.constant 0 : index
    %c128 = arith.constant 128 : index
    %c0_157 = arith.constant 0 : index
    %410 = vector.load %arg2[%c0_156, %c128, %c0_157] : memref<2x256x64xbf16, #tpu.memory_space<vmem>>, vector<1x64x64xbf16>
    %411 = vector.shape_cast %410 : vector<1x64x64xbf16> to vector<64x64xbf16>
    %cst_158 = arith.constant dense<0.000000e+00> : vector<8x64xf32>
    %412 = tpu.matmul %409, %411, %cst_158 {dimension_numbers = #tpu.dot_dimension_numbers<[1], [0], [0], [1], [0, 0, 1, 1], [], []>} : vector<8x64xbf16>, vector<64x64xbf16>, vector<8x64xf32> -> vector<8x64xf32>
    %c0_159 = arith.constant 0 : index
    %c0_160 = arith.constant 0 : index
    %c640 = arith.constant 640 : index
    %413 = vector.load %arg3[%c0_159, %c0_160, %c640] : memref<2x1x896xf32, #tpu.memory_space<vmem>>, vector<1x1x64xf32>
    %414 = vector.shape_cast %413 : vector<1x1x64xf32> to vector<1x64xf32>
    %415 = vector.broadcast %414 : vector<1x64xf32> to vector<8x64xf32>
    %416 = arith.addf %412, %415 : vector<8x64xf32>
    %cst_161 = arith.constant 0.000000e+00 : f32
    %417 = vector.broadcast %cst_161 : f32 to vector<8x64xf32>
    %418 = arith.cmpf ogt, %416, %417 : vector<8x64xf32>
    %cst_162 = arith.constant 0.00999999977 : f32
    %419 = vector.broadcast %cst_162 : f32 to vector<8x64xf32>
    %420 = arith.mulf %419, %416 : vector<8x64xf32>
    %421 = arith.select %418, %416, %420 : vector<8x64xi1>, vector<8x64xf32>
    %422 = arith.truncf %421 : vector<8x64xf32> to vector<8x64xbf16>
    %c0_163 = arith.constant 0 : index
    %c192 = arith.constant 192 : index
    %c0_164 = arith.constant 0 : index
    %423 = vector.load %arg2[%c0_163, %c192, %c0_164] : memref<2x256x64xbf16, #tpu.memory_space<vmem>>, vector<1x64x64xbf16>
    %424 = vector.shape_cast %423 : vector<1x64x64xbf16> to vector<64x64xbf16>
    %cst_165 = arith.constant dense<0.000000e+00> : vector<8x64xf32>
    %425 = tpu.matmul %422, %424, %cst_165 {dimension_numbers = #tpu.dot_dimension_numbers<[1], [0], [0], [1], [0, 0, 1, 1], [], []>} : vector<8x64xbf16>, vector<64x64xbf16>, vector<8x64xf32> -> vector<8x64xf32>
    %c0_166 = arith.constant 0 : index
    %c0_167 = arith.constant 0 : index
    %c768 = arith.constant 768 : index
    %426 = vector.load %arg3[%c0_166, %c0_167, %c768] : memref<2x1x896xf32, #tpu.memory_space<vmem>>, vector<1x1x64xf32>
    %427 = vector.shape_cast %426 : vector<1x1x64xf32> to vector<1x64xf32>
    %428 = vector.broadcast %427 : vector<1x64xf32> to vector<8x64xf32>
    %429 = arith.addf %425, %428 : vector<8x64xf32>
    %c0_168 = arith.constant 0 : index
    %c0_169 = arith.constant 0 : index
    %c0_170 = arith.constant 0 : index
    %430 = vector.load %arg4[%c0_168, %c0_169, %c0_170] : memref<2x8x64xf32, #tpu.memory_space<vmem>>, vector<1x8x64xf32>
    %431 = vector.shape_cast %430 : vector<1x8x64xf32> to vector<8x64xf32>
    %432 = vector.shape_cast %429 : vector<8x64xf32> to vector<1x8x64xf32>
    tpu.vector_store %arg4[%c0_168, %c0_169, %c0_170], %432 {strides = array<i32>} : memref<2x8x64xf32, #tpu.memory_space<vmem>>, vector<1x8x64xf32>,
    %433 = arith.truncf %395 : vector<8x128xf32> to vector<8x128xbf16>
    %c1_171 = arith.constant 1 : index
    %c0_172 = arith.constant 0 : index
    %c0_173 = arith.constant 0 : index
    %434 = vector.load %arg2[%c1_171, %c0_172, %c0_173] : memref<2x256x64xbf16, #tpu.memory_space<vmem>>, vector<1x128x64xbf16>
    %435 = vector.shape_cast %434 : vector<1x128x64xbf16> to vector<128x64xbf16>
    %cst_174 = arith.constant dense<0.000000e+00> : vector<8x64xf32>
    %436 = tpu.matmul %433, %435, %cst_174 {dimension_numbers = #tpu.dot_dimension_numbers<[1], [0], [0], [1], [0, 0, 1, 1], [], []>} : vector<8x128xbf16>, vector<128x64xbf16>, vector<8x64xf32> -> vector<8x64xf32>
    %c1_175 = arith.constant 1 : index
    %c0_176 = arith.constant 0 : index
    %c512_177 = arith.constant 512 : index
    %437 = vector.load %arg3[%c1_175, %c0_176, %c512_177] : memref<2x1x896xf32, #tpu.memory_space<vmem>>, vector<1x1x64xf32>
    %438 = vector.shape_cast %437 : vector<1x1x64xf32> to vector<1x64xf32>
    %439 = vector.broadcast %438 : vector<1x64xf32> to vector<8x64xf32>
    %440 = arith.addf %436, %439 : vector<8x64xf32>
    %cst_178 = arith.constant 0.000000e+00 : f32
    %441 = vector.broadcast %cst_178 : f32 to vector<8x64xf32>
    %442 = arith.cmpf ogt, %440, %441 : vector<8x64xf32>
    %cst_179 = arith.constant 0.00999999977 : f32
    %443 = vector.broadcast %cst_179 : f32 to vector<8x64xf32>
    %444 = arith.mulf %443, %440 : vector<8x64xf32>
    %445 = arith.select %442, %440, %444 : vector<8x64xi1>, vector<8x64xf32>
    %446 = arith.truncf %445 : vector<8x64xf32> to vector<8x64xbf16>
    %c1_180 = arith.constant 1 : index
    %c128_181 = arith.constant 128 : index
    %c0_182 = arith.constant 0 : index
    %447 = vector.load %arg2[%c1_180, %c128_181, %c0_182] : memref<2x256x64xbf16, #tpu.memory_space<vmem>>, vector<1x64x64xbf16>
    %448 = vector.shape_cast %447 : vector<1x64x64xbf16> to vector<64x64xbf16>
    %cst_183 = arith.constant dense<0.000000e+00> : vector<8x64xf32>
    %449 = tpu.matmul %446, %448, %cst_183 {dimension_numbers = #tpu.dot_dimension_numbers<[1], [0], [0], [1], [0, 0, 1, 1], [], []>} : vector<8x64xbf16>, vector<64x64xbf16>, vector<8x64xf32> -> vector<8x64xf32>
    %c1_184 = arith.constant 1 : index
    %c0_185 = arith.constant 0 : index
    %c640_186 = arith.constant 640 : index
    %450 = vector.load %arg3[%c1_184, %c0_185, %c640_186] : memref<2x1x896xf32, #tpu.memory_space<vmem>>, vector<1x1x64xf32>
    %451 = vector.shape_cast %450 : vector<1x1x64xf32> to vector<1x64xf32>
    %452 = vector.broadcast %451 : vector<1x64xf32> to vector<8x64xf32>
    %453 = arith.addf %449, %452 : vector<8x64xf32>
    %cst_187 = arith.constant 0.000000e+00 : f32
    %454 = vector.broadcast %cst_187 : f32 to vector<8x64xf32>
    %455 = arith.cmpf ogt, %453, %454 : vector<8x64xf32>
    %cst_188 = arith.constant 0.00999999977 : f32
    %456 = vector.broadcast %cst_188 : f32 to vector<8x64xf32>
    %457 = arith.mulf %456, %453 : vector<8x64xf32>
    %458 = arith.select %455, %453, %457 : vector<8x64xi1>, vector<8x64xf32>
    %459 = arith.truncf %458 : vector<8x64xf32> to vector<8x64xbf16>
    %c1_189 = arith.constant 1 : index
    %c192_190 = arith.constant 192 : index
    %c0_191 = arith.constant 0 : index
    %460 = vector.load %arg2[%c1_189, %c192_190, %c0_191] : memref<2x256x64xbf16, #tpu.memory_space<vmem>>, vector<1x64x64xbf16>
    %461 = vector.shape_cast %460 : vector<1x64x64xbf16> to vector<64x64xbf16>
    %cst_192 = arith.constant dense<0.000000e+00> : vector<8x64xf32>
    %462 = tpu.matmul %459, %461, %cst_192 {dimension_numbers = #tpu.dot_dimension_numbers<[1], [0], [0], [1], [0, 0, 1, 1], [], []>} : vector<8x64xbf16>, vector<64x64xbf16>, vector<8x64xf32> -> vector<8x64xf32>
    %c1_193 = arith.constant 1 : index
    %c0_194 = arith.constant 0 : index
    %c768_195 = arith.constant 768 : index
    %463 = vector.load %arg3[%c1_193, %c0_194, %c768_195] : memref<2x1x896xf32, #tpu.memory_space<vmem>>, vector<1x1x64xf32>
    %464 = vector.shape_cast %463 : vector<1x1x64xf32> to vector<1x64xf32>
    %465 = vector.broadcast %464 : vector<1x64xf32> to vector<8x64xf32>
    %466 = arith.addf %462, %465 : vector<8x64xf32>
    %c1_196 = arith.constant 1 : index
    %c0_197 = arith.constant 0 : index
    %c0_198 = arith.constant 0 : index
    %467 = vector.load %arg4[%c1_196, %c0_197, %c0_198] : memref<2x8x64xf32, #tpu.memory_space<vmem>>, vector<1x8x64xf32>
    %468 = vector.shape_cast %467 : vector<1x8x64xf32> to vector<8x64xf32>
    %469 = vector.shape_cast %466 : vector<8x64xf32> to vector<1x8x64xf32>
    tpu.vector_store %arg4[%c1_196, %c0_197, %c0_198], %469 {strides = array<i32>} : memref<2x8x64xf32, #tpu.memory_space<vmem>>, vector<1x8x64xf32>,
    return
  }
}

</mosaic_0001>

<bundles_post_ra>
// kernel: rnn_forward.1
= control target key start
LH: loop header
LB: loop body
LE: loop exit
PB: predicated region body
PF: predicated region fallthrough
CT: control target
= control target key end

     0   :  { %9 = vsyncpa [#allocation4], 0  ;;  %s4284_s15 = smov [#allocation3]   ;;  %s5691_s0 = inlined_call_operand.vmem [shape: bf16[2,64,16], index: 0, kind: input, shape index: {}]   ;;  %s5692_s1 = inlined_call_operand.hbm [shape: bf16[2,144,512], index: 1, kind: input, shape index: {}]   ;;  %s5693_s2 = inlined_call_operand.vmem [shape: bf16[2,256,64], index: 2, kind: input, shape index: {}]   ;;  %s5694_s3 = inlined_call_operand.vmem [shape: f32[2,1,896], index: 3, kind: input, shape index: {}]   ;;  %s5695_s4 = inlined_call_operand.vmem [shape: f32[2,8,64], index: 4, kind: output, shape index: {}]  }
   0x1   :  { %s17_s16 = sshll.u32 %s4284_s15, 4  ;;  %s4260_s19 = scalar_lea.hbm %s5692_s1, 9216  ;;  %s18_s16 = int_to_ptr.vmem [resolvable:$true] %s17_s16 }
   0x2   :  { %p4261_p0 = scmp.ne.s32.totalorder %s5692_s1, %s4260_s19  ;;  %p4264_p1 = scmp.lt.u32.totalorder %s4260_s19, %s5692_s1 }
   0x4   :  { %p4266_p2 = pnand %p4264_p1, %p4261_p0 }
   0x6   :  { %4269 = shalt.err (!%p4266_p2)
}
   0x7   :  { %s4270_s24 = scalar_lea.vmem %s18_s16, 9216  ;;  %p4275_p4 = scmp.lt.s32.totalorder %s18_s16, %s18_s16 }
   0x8   :  { %p4271_p3 = scmp.ne.s32.totalorder %s18_s16, %s4270_s24  ;;  %p4276_p5 = scmp.lt.s32.totalorder %s4270_s24, %s4270_s24 }
   0xa   :  { %p4277_p6 = por %p4276_p5, %p4275_p4 }
   0xc   :  { %p4278_p7 = pnand %p4277_p6, %p4271_p3 }
   0xe   :  { %4281 = shalt.err (!%p4278_p7)
}
   0xf   :  { %s4285_s25 = smov 256   ;;  %s4286_s26 = smov 16  }
  0x10   :  { %23 = dma.hbm_to_vmem [thread:$0]  %s5692_s1, 9216, %s18_s16, [#allocation4], %s4285_s25, %s4285_s25, %s4286_s26  }
  0x11   :  { %4282 = dma.done.wait [#allocation4], 9216  }
  0x12   :  { %4283 = vsyncadd [#allocation4], 4294958080  ;;  %v5696_v0 = vmov 0   ;;  %v3728_v1 = vld [vmem:[#allocation3 + $0x4] ss:$16 sps:$4 sm:$0xff]   ;;  %vm106_vm0 = vcmask 130048  }
  0x13   :  { %151 = vmatprep.mubr.bf16.mxu0 %v5696_v0  ;;  %224 = vmatprep.mubr.bf16.mxu1 %v5696_v0  ;;  %v3730_v2 = vld [vmem:[#allocation3 + $0xc] ss:$16 sps:$4 sm:$0xff]   ;;  %v3732_v3 = vld [vmem:[#allocation3] ss:$16 sps:$4 sm:$0xff]   ;;  %v3733_v4 = vld [vmem:[#allocation3 + $0x8] ss:$16 sps:$4 sm:$0xff]  }
  0x14   :  { %119 = vmatprep.subr.bf16.mxu0 %v3728_v1  ;;  %192 = vmatprep.subr.bf16.mxu1 %v3730_v2  ;;  %v3734_v5 = vld [vmem:[%s5691_s0] sm:$0xff]   ;;  %v3739_v8 = vld [vmem:[#allocation3 + $0x128] ss:$16 sps:$4 sm:$0xff]   ;;  %v3741_v9 = vld [vmem:[#allocation3 + $0x12c] ss:$16 sps:$4 sm:$0xff]   ;;  %vm4289_vm1 = vmmov 0  }
  0x15   :  { %120 = vmatpush1.bf16.msra.mxu0 %v3732_v3  ;;  %193 = vmatpush1.bf16.msra.mxu1 %v3733_v4  ;;  %v3735_v6 = vld [vmem:[#allocation3 + $0x120] ss:$16 sps:$4 sm:$0xff]   ;;  %v3737_v7 = vld [vmem:[#allocation3 + $0x124] ss:$16 sps:$4 sm:$0xff]   ;;  %v3738_v10 = vld [vmem:[%s5691_s0 + $0x8] sm:$0xff]   ;;  %vm2942_vm3 = vcmask 523264  }
  0x16   :  { %386 = vmatprep.subr.bf16.mxu0 %v3737_v7  ;;  %459 = vmatprep.subr.bf16.mxu1 %v3741_v9  ;;  %v4339_v11 = vld [vmem:[#allocation3 + $0x24] ss:$16 sps:$4 sm:$0xff]   ;;  %v4341_v12 = vld [vmem:[#allocation3 + $0x2c] ss:$16 sps:$4 sm:$0xff]   ;;  %v4366_v16 = vld [vmem:[#allocation3 + $0x20] ss:$16 sps:$4 sm:$0xff]  }
  0x17   :  { %v3742_v13 = vld [vmem:[%s5691_s0 + $0x10] sm:$0xff]   ;;  %v3743_v14 = vld [vmem:[%s5691_s0 + $0x18] sm:$0xff]   ;;  %v3748_v15 = vld [vmem:[%s5691_s0 + $0x20] sm:$0xff]  }
  0x18   :  { %3373 = vmatmul.mubr.msk.bf16.vlgmr.msra.gmra.mrb[0].mxu0 %vm106_vm0, %v3734_v5  ;;  %3377 = vmatmul.mubr.msk.bf16.vlgmr.msra.gmra.mrb[0].mxu1 %vm106_vm0, %v3734_v5  ;;  %v4368_v17 = vld [vmem:[#allocation3 + $0x28] ss:$16 sps:$4 sm:$0xff]   ;;  %v4370_v18 = vld [vmem:[#allocation3 + $0x44] ss:$16 sps:$4 sm:$0xff]   ;;  %v4372_v19 = vld [vmem:[#allocation3 + $0x4c] ss:$16 sps:$4 sm:$0xff]  }
  0x19   :  { %387 = vmatpush1.bf16.msra.mxu0 %v3735_v6  ;;  %161 = vmatprep.mubr.bf16.mxu0 %v5696_v0  ;;  %v4376_v20 = vld [vmem:[#allocation3 + $0x40] ss:$16 sps:$4 sm:$0xff]   ;;  %v4378_v21 = vld [vmem:[#allocation3 + $0x48] ss:$16 sps:$4 sm:$0xff]   ;;  %v4382_v22 = vld [vmem:[#allocation3 + $0x64] ss:$16 sps:$4 sm:$0xff]  }
  0x1a   :  { %234 = vmatprep.mubr.bf16.mxu1 %v5696_v0  ;;  %460 = vmatpush1.bf16.msra.mxu1 %v3739_v8  ;;  %v4386_v23 = vld [vmem:[#allocation3 + $0x6c] ss:$16 sps:$4 sm:$0xff]   ;;  %v4393_v25 = vld [vmem:[#allocation3 + $0x60] ss:$16 sps:$4 sm:$0xff]   ;;  %v4397_v26 = vld [vmem:[#allocation3 + $0x68] ss:$16 sps:$4 sm:$0xff]  }
  0x1b   :  { %761 = vmatprep.subr.bf16.mxu0 %v4339_v11  ;;  %802 = vmatprep.subr.bf16.mxu1 %v4341_v12  ;;  %v3761_v24 = vld [vmem:[%s5691_s0 + $0x28] sm:$0xff]   ;;  %v4399_v27 = vld [vmem:[#allocation3 + $0x84] ss:$16 sps:$4 sm:$0xff]   ;;  %v4407_v29 = vld [vmem:[#allocation3 + $0x80] ss:$16 sps:$4 sm:$0xff]  }
  0x1c   :  { %v4403_v28 = vld [vmem:[#allocation3 + $0x8c] ss:$16 sps:$4 sm:$0xff]   ;;  %v4409_v30 = vld [vmem:[#allocation3 + $0x88] ss:$16 sps:$4 sm:$0xff]   ;;  %v4413_v31 = vld [vmem:[#allocation3 + $0xa4] ss:$16 sps:$4 sm:$0xff]  }
  0x1d   :  { %v4417_v32 = vld [vmem:[#allocation3 + $0xac] ss:$16 sps:$4 sm:$0xff]   ;;  %v3774_v33 = vld [vmem:[%s5691_s0 + $0x30] sm:$0xff]   ;;  %v4428_v35 = vld [vmem:[#allocation3 + $0xa8] ss:$16 sps:$4 sm:$0xff]  }
  0x1e   :  { %5781 = vst [vmem:[#allocation6_spill] sm:$0xff] %v4417_v32  ;;  %v4424_v34 = vld [vmem:[#allocation3 + $0xa0] ss:$16 sps:$4 sm:$0xff]   ;;  %5783 = vst [vmem:[#allocation8_spill] sm:$0xff] %v4428_v35  ;;  %v4430_v36 = vld [vmem:[#allocation3 + $0xc4] ss:$16 sps:$4 sm:$0xff]  }
  0x1f   :  { %5782 = vst [vmem:[#allocation7_spill] sm:$0xff] %v4424_v34  ;;  %5784 = vst [vmem:[#allocation9_spill] sm:$0xff] %v4430_v36  ;;  %v4434_v37 = vld [vmem:[#allocation3 + $0xcc] ss:$16 sps:$4 sm:$0xff]   ;;  %v4438_v38 = vld [vmem:[#allocation3 + $0xc0] ss:$16 sps:$4 sm:$0xff]  }
  0x20   :  { %3374 = vmatmul.mubr.msk.bf16.gmra.mrb[4].mxu0 %vm106_vm0, %v3738_v10  ;;  %3378 = vmatmul.mubr.msk.bf16.gmra.mrb[4].mxu1 %vm106_vm0, %v3738_v10  ;;  %5785 = vst [vmem:[#allocation10_spill] sm:$0xff] %v4434_v37  ;;  %5786 = vst [vmem:[#allocation11_spill] sm:$0xff] %v4438_v38  ;;  %v4440_v39 = vld [vmem:[#allocation3 + $0xc8] ss:$16 sps:$4 sm:$0xff]   ;;  %v4442_v40 = vld [vmem:[#allocation3 + $0xe4] ss:$16 sps:$4 sm:$0xff]  }
  0x21   :  { %171 = vmatprep.mubr.bf16.mxu0 %v5696_v0  ;;  %244 = vmatprep.mubr.bf16.mxu1 %v5696_v0  ;;  %5787 = vst [vmem:[#allocation12_spill] sm:$0xff] %v4440_v39  ;;  %5788 = vst [vmem:[#allocation13_spill] sm:$0xff] %v4442_v40  ;;  %v4446_v41 = vld [vmem:[#allocation3 + $0xec] ss:$16 sps:$4 sm:$0xff]   ;;  %v4455_v43 = vld [vmem:[#allocation3 + $0xe0] ss:$16 sps:$4 sm:$0xff]  }
  0x22   :  { %5789 = vst [vmem:[#allocation14_spill] sm:$0xff] %v4446_v41  ;;  %v3787_v42 = vld [vmem:[%s5691_s0 + $0x38] sm:$0xff]   ;;  %5790 = vst [vmem:[#allocation15_spill] sm:$0xff] %v4455_v43  ;;  %v4459_v45 = vld [vmem:[#allocation3 + $0x104] ss:$16 sps:$4 sm:$0xff]  }
  0x23   :  { %v4457_v44 = vld [vmem:[#allocation3 + $0xe8] ss:$16 sps:$4 sm:$0xff]   ;;  %5792 = vst [vmem:[#allocation17_spill] sm:$0xff] %v4459_v45  ;;  %v4461_v46 = vld [vmem:[#allocation3 + $0x10c] ss:$16 sps:$4 sm:$0xff]  }
  0x24   :  { %5791 = vst [vmem:[#allocation16_spill] sm:$0xff] %v4457_v44  ;;  %5793 = vst [vmem:[#allocation18_spill] sm:$0xff] %v4461_v46  ;;  %v4467_v47 = vld [vmem:[#allocation3 + $0x100] ss:$16 sps:$4 sm:$0xff]   ;;  %v4469_v48 = vld [vmem:[#allocation3 + $0x108] ss:$16 sps:$4 sm:$0xff]  }
  0x25   :  { %5794 = vst [vmem:[#allocation19_spill] sm:$0xff] %v4467_v47  ;;  %5795 = vst [vmem:[#allocation20_spill] sm:$0xff] %v4469_v48  ;;  %v4473_v49 = vld [vmem:[#allocation3 + $0x144] ss:$16 sps:$4 sm:$0xff]   ;;  %v4475_v50 = vld [vmem:[#allocation3 + $0x14c] ss:$16 sps:$4 sm:$0xff]  }
  0x26   :  { %5796 = vst [vmem:[#allocation21_spill] sm:$0xff] %v4473_v49  ;;  %5797 = vst [vmem:[#allocation22_spill] sm:$0xff] %v4475_v50  ;;  %v4483_v51 = vld [vmem:[#allocation3 + $0x140] ss:$16 sps:$4 sm:$0xff]   ;;  %v4485_v52 = vld [vmem:[#allocation3 + $0x148] ss:$16 sps:$4 sm:$0xff]  }
  0x27   :  { %v4487_v53 = vld [vmem:[#allocation3 + $0x164] ss:$16 sps:$4 sm:$0xff]   ;;  %v4489_v54 = vld [vmem:[#allocation3 + $0x16c] ss:$16 sps:$4 sm:$0xff]   ;;  %v4495_v55 = vld [vmem:[#allocation3 + $0x160] ss:$16 sps:$4 sm:$0xff]  }
  0x28   :  { %3375 = vmatmul.mubr.msk.bf16.gmra.mrb[8].mxu0 %vm106_vm0, %v3742_v13  ;;  %3379 = vmatmul.mubr.msk.bf16.gmra.mrb[8].mxu1 %vm106_vm0, %v3742_v13  ;;  %v4497_v56 = vld [vmem:[#allocation3 + $0x168] ss:$16 sps:$4 sm:$0xff]   ;;  %v4501_v57 = vld [vmem:[#allocation3 + $0x184] ss:$16 sps:$4 sm:$0xff]   ;;  %v4503_v58 = vld [vmem:[#allocation3 + $0x18c] ss:$16 sps:$4 sm:$0xff]  }
  0x29   :  { %181 = vmatprep.mubr.bf16.mxu0 %v5696_v0  ;;  %254 = vmatprep.mubr.bf16.mxu1 %v5696_v0  ;;  %v4509_v59 = vld [vmem:[#allocation3 + $0x180] ss:$16 sps:$4 sm:$0xff]   ;;  %v4511_v60 = vld [vmem:[#allocation3 + $0x188] ss:$16 sps:$4 sm:$0xff]   ;;  %v4515_v61 = vld [vmem:[#allocation3 + $0x1a4] ss:$16 sps:$4 sm:$0xff]  }
  0x2a   :  { %v4521_v62 = vld [vmem:[#allocation3 + $0x1ac] ss:$16 sps:$4 sm:$0xff]   ;;  %v4525_v63 = vld [vmem:[#allocation3 + $0x1a0] ss:$16 sps:$4 sm:$0xff]   ;;  %v4527_v1 = vld [vmem:[#allocation3 + $0x1a8] ss:$16 sps:$4 sm:$0xff]  }
  0x2b   :  { %v4531_v2 = vld [vmem:[#allocation3 + $0x1c4] ss:$16 sps:$4 sm:$0xff]   ;;  %v4533_v3 = vld [vmem:[#allocation3 + $0x1cc] ss:$16 sps:$4 sm:$0xff]   ;;  %v4537_v4 = vld [vmem:[#allocation3 + $0x1c0] ss:$16 sps:$4 sm:$0xff]  }
  0x2c   :  { %v4539_v5 = vld [vmem:[#allocation3 + $0x1c8] ss:$16 sps:$4 sm:$0xff]   ;;  %v4543_v6 = vld [vmem:[#allocation3 + $0x1e4] ss:$16 sps:$4 sm:$0xff]   ;;  %v4545_v7 = vld [vmem:[#allocation3 + $0x1ec] ss:$16 sps:$4 sm:$0xff]  }
  0x2d   :  { %v4549_v8 = vld [vmem:[#allocation3 + $0x1e0] ss:$16 sps:$4 sm:$0xff]   ;;  %v4551_v9 = vld [vmem:[#allocation3 + $0x1e8] ss:$16 sps:$4 sm:$0xff]   ;;  %v4555_v10 = vld [vmem:[#allocation3 + $0x204] ss:$16 sps:$4 sm:$0xff]  }
  0x2e   :  { %v4557_v13 = vld [vmem:[#allocation3 + $0x20c] ss:$16 sps:$4 sm:$0xff]  }
  0x2f   :  { %5798 = vst [vmem:[#allocation23_spill] sm:$0xff] %v4557_v13 }
  0x30   :  { %3376 = vmatmul.mubr.msk.bf16.gmra.mrb[12].mxu0 %vm106_vm0, %v3743_v14  ;;  %3380 = vmatmul.mubr.msk.bf16.gmra.mrb[12].mxu1 %vm106_vm0, %v3743_v14  ;;  %v4561_v14 = vld [vmem:[#allocation3 + $0x200] ss:$16 sps:$4 sm:$0xff]  }
  0x31   :  { %418 = vmatprep.mubr.bf16.mxu0 %v5696_v0  ;;  %491 = vmatprep.mubr.bf16.mxu1 %v5696_v0 }
  0x38   :  { %3398 = vmatmul.mubr.msk.bf16.vlgmr.msra.gmra.mrb[16].mxu0 %vm106_vm0, %v3748_v15  ;;  %3402 = vmatmul.mubr.msk.bf16.vlgmr.msra.gmra.mrb[16].mxu1 %vm106_vm0, %v3748_v15  ;;  %v4563_v15 = vld [vmem:[#allocation3 + $0x208] ss:$16 sps:$4 sm:$0xff]  }
  0x39   :  { %762 = vmatpush1.bf16.msra.mxu0 %v4366_v16  ;;  %803 = vmatpush1.bf16.msra.mxu1 %v4368_v17 }
  0x3a   :  { %763 = vmatprep.subr.bf16.mxu0 %v4370_v18  ;;  %804 = vmatprep.subr.bf16.mxu1 %v4372_v19 }
  0x3b   :  { %428 = vmatprep.mubr.bf16.mxu0 %v5696_v0  ;;  %501 = vmatprep.mubr.bf16.mxu1 %v5696_v0 }
  0x3d   :  { %764 = vmatpush1.bf16.msra.mxu0 %v4376_v20  ;;  %805 = vmatpush1.bf16.msra.mxu1 %v4378_v21 }
  0x3e   :  { %765 = vmatprep.subr.bf16.mxu0 %v4382_v22  ;;  %806 = vmatprep.subr.bf16.mxu1 %v4386_v23 }
  0x40   :  { %3399 = vmatmul.mubr.msk.bf16.gmra.mrb[20].mxu0 %vm106_vm0, %v3761_v24  ;;  %3403 = vmatmul.mubr.msk.bf16.gmra.mrb[20].mxu1 %vm106_vm0, %v3761_v24  ;;  %v4567_v24 = vld [vmem:[#allocation3 + $0x224] ss:$16 sps:$4 sm:$0xff]  }
  0x41   :  { %766 = vmatpush1.bf16.msra.mxu0 %v4393_v25  ;;  %807 = vmatpush1.bf16.msra.mxu1 %v4397_v26 }
  0x42   :  { %767 = vmatprep.subr.bf16.mxu0 %v4399_v27  ;;  %808 = vmatprep.subr.bf16.mxu1 %v4403_v28 }
  0x43   :  { %438 = vmatprep.mubr.bf16.mxu0 %v5696_v0  ;;  %511 = vmatprep.mubr.bf16.mxu1 %v5696_v0 }
  0x45   :  { %768 = vmatpush1.bf16.msra.mxu0 %v4407_v29  ;;  %809 = vmatpush1.bf16.msra.mxu1 %v4409_v30 }
  0x46   :  { %769 = vmatprep.subr.bf16.mxu0 %v4413_v31  ;;  %810 = vmatprep.subr.bf16.mxu1 %v4417_v32 }
  0x48   :  { %3400 = vmatmul.mubr.msk.bf16.gmra.mrb[24].mxu0 %vm106_vm0, %v3774_v33  ;;  %3404 = vmatmul.mubr.msk.bf16.gmra.mrb[24].mxu1 %vm106_vm0, %v3774_v33  ;;  %v4569_v33 = vld [vmem:[#allocation3 + $0x22c] ss:$16 sps:$4 sm:$0xff]  }
  0x49   :  { %770 = vmatpush1.bf16.msra.mxu0 %v4424_v34  ;;  %811 = vmatpush1.bf16.msra.mxu1 %v4428_v35 }
  0x4a   :  { %771 = vmatprep.subr.bf16.mxu0 %v4430_v36  ;;  %812 = vmatprep.subr.bf16.mxu1 %v4434_v37 }
  0x4b   :  { %448 = vmatprep.mubr.bf16.mxu0 %v5696_v0  ;;  %521 = vmatprep.mubr.bf16.mxu1 %v5696_v0 }
  0x4d   :  { %772 = vmatpush1.bf16.msra.mxu0 %v4438_v38  ;;  %813 = vmatpush1.bf16.msra.mxu1 %v4440_v39 }
  0x4e   :  { %773 = vmatprep.subr.bf16.mxu0 %v4442_v40  ;;  %814 = vmatprep.subr.bf16.mxu1 %v4446_v41 }
  0x50   :  { %3401 = vmatmul.mubr.msk.bf16.gmra.mrb[28].mxu0 %vm106_vm0, %v3787_v42  ;;  %3405 = vmatmul.mubr.msk.bf16.gmra.mrb[28].mxu1 %vm106_vm0, %v3787_v42  ;;  %v4573_v42 = vld [vmem:[#allocation3 + $0x220] ss:$16 sps:$4 sm:$0xff]  }
  0x51   :  { %774 = vmatpush1.bf16.msra.mxu0 %v4455_v43  ;;  %815 = vmatpush1.bf16.msra.mxu1 %v4457_v44 }
  0x52   :  { %775 = vmatprep.subr.bf16.mxu0 %v4459_v45  ;;  %816 = vmatprep.subr.bf16.mxu1 %v4461_v46 }
  0x53   :  { %793 = vmatprep.mubr.bf16.mxu0 %v5696_v0  ;;  %834 = vmatprep.mubr.bf16.mxu1 %v5696_v0 }
  0x55   :  { %776 = vmatpush1.bf16.msra.mxu0 %v4467_v47  ;;  %817 = vmatpush1.bf16.msra.mxu1 %v4469_v48 }
  0x56   :  { %1067 = vmatprep.subr.bf16.mxu0 %v4473_v49  ;;  %1108 = vmatprep.subr.bf16.mxu1 %v4475_v50 }
  0x58   :  { %794 = vmatmul.mubr.bf16.vlgmr.msra.gmra.mrb[32].mxu0 %v5696_v0  ;;  %835 = vmatmul.mubr.bf16.vlgmr.msra.gmra.mrb[32].mxu1 %v5696_v0 }
  0x59   :  { %1068 = vmatpush1.bf16.msra.mxu0 %v4483_v51  ;;  %1109 = vmatpush1.bf16.msra.mxu1 %v4485_v52 }
  0x5a   :  { %1069 = vmatprep.subr.bf16.mxu0 %v4487_v53  ;;  %1110 = vmatprep.subr.bf16.mxu1 %v4489_v54 }
  0x5b   :  { %1099 = vmatprep.mubr.bf16.mxu0 %v5696_v0  ;;  %1140 = vmatprep.mubr.bf16.mxu1 %v5696_v0  ;;  %v4575_v0 = vld [vmem:[#allocation3 + $0x228] ss:$16 sps:$4 sm:$0xff]  }
  0x5d   :  { %1070 = vmatpush1.bf16.msra.mxu0 %v4495_v55  ;;  %1111 = vmatpush1.bf16.msra.mxu1 %v4497_v56 }
  0x5e   :  { %1071 = vmatprep.subr.bf16.mxu0 %v4501_v57  ;;  %1112 = vmatprep.subr.bf16.mxu1 %v4503_v58 }
  0x61   :  { %1072 = vmatpush1.bf16.msra.mxu0 %v4509_v59  ;;  %1113 = vmatpush1.bf16.msra.mxu1 %v4511_v60 }
  0x62   :  { %1073 = vmatprep.subr.bf16.mxu0 %v4515_v61  ;;  %1114 = vmatprep.subr.bf16.mxu1 %v4521_v62 }
  0x65   :  { %1074 = vmatpush1.bf16.msra.mxu0 %v4525_v63  ;;  %1115 = vmatpush1.bf16.msra.mxu1 %v4527_v1 }
  0x66   :  { %1075 = vmatprep.subr.bf16.mxu0 %v4531_v2  ;;  %1116 = vmatprep.subr.bf16.mxu1 %v4533_v3 }
  0x69   :  { %1076 = vmatpush1.bf16.msra.mxu0 %v4537_v4  ;;  %1117 = vmatpush1.bf16.msra.mxu1 %v4539_v5 }
  0x6a   :  { %1077 = vmatprep.subr.bf16.mxu0 %v4543_v6  ;;  %1118 = vmatprep.subr.bf16.mxu1 %v4545_v7 }
  0x6d   :  { %1078 = vmatpush1.bf16.msra.mxu0 %v4549_v8  ;;  %1119 = vmatpush1.bf16.msra.mxu1 %v4551_v9 }
  0x6e   :  { %1079 = vmatprep.subr.bf16.mxu0 %v4555_v10  ;;  %1120 = vmatprep.subr.bf16.mxu1 %v4557_v13  ;;  %v5799_v13 = vmov 0  }
  0x71   :  { %1080 = vmatpush1.bf16.msra.mxu0 %v4561_v14  ;;  %1121 = vmatpush1.bf16.msra.mxu1 %v4563_v15 }
  0x72   :  { %1081 = vmatprep.subr.bf16.mxu0 %v4567_v24  ;;  %1122 = vmatprep.subr.bf16.mxu1 %v4569_v33 }
  0x75   :  { %1082 = vmatpush1.bf16.msra.mxu0 %v4573_v42  ;;  %1123 = vmatpush1.bf16.msra.mxu1 %v4575_v0 }
  0x76   :  { %1182 = vmatprep.subr.bf16.mxu0 %v4339_v11  ;;  %1223 = vmatprep.subr.bf16.mxu1 %v4341_v12  ;;  %v46_v11 = vlaneseq }
  0x78   :  { %1100 = vmatmul.mubr.bf16.vlgmr.msra.gmra.mrb[36].mxu0 %v5799_v13  ;;  %1141 = vmatmul.mubr.bf16.vlgmr.msra.gmra.mrb[36].mxu1 %v5799_v13  ;;  %v4619_v12 = vshrl.u32 %v46_v11, 7 }
  0x79   :  { %1183 = vmatpush1.bf16.msra.mxu0 %v4366_v16  ;;  %1224 = vmatpush1.bf16.msra.mxu1 %v4368_v17 }
  0x7a   :  { %1184 = vmatprep.subr.bf16.mxu0 %v4370_v18  ;;  %1225 = vmatprep.subr.bf16.mxu1 %v4372_v19  ;;  %v5700_v16 = vsub.s32 2, %v4619_v12  ;;  %v5704_v17 = vsub.s32 3, %v4619_v12  ;;  %v5706_v18 = vsub.s32 0, %v4619_v12  ;;  %v44_v19 = vld [vmem:[%s5694_s3] sm:$0xf] }
  0x7b   :  { %1214 = vmatprep.mubr.bf16.mxu0 %v5799_v13  ;;  %1255 = vmatprep.mubr.bf16.mxu1 %v5799_v13 }
  0x7d   :  { %1185 = vmatpush1.bf16.msra.mxu0 %v4376_v20  ;;  %1226 = vmatpush1.bf16.msra.mxu1 %v4378_v21  ;;  %v5710_v20 = vsub.s32 1, %v4619_v12  ;;  %v4630_v21 = vrot.slane %v44_v19, %v5700_v16 }
  0x7e   :  { %1186 = vmatprep.subr.bf16.mxu0 %v4382_v22  ;;  %1227 = vmatprep.subr.bf16.mxu1 %v4386_v23 }
  0x7f   :  { %v4650_v11 = vrot.slane %v44_v19, %v5710_v20 }
  0x81   :  { %1187 = vmatpush1.bf16.msra.mxu0 %v4393_v25  ;;  %1228 = vmatpush1.bf16.msra.mxu1 %v4397_v26  ;;  %v4638_v25 = vrot.slane %v44_v19, %v5704_v17  ;;  %v4642_v26 = vrot.slane %v44_v19, %v5706_v18 }
  0x82   :  { %1188 = vmatprep.subr.bf16.mxu0 %v4399_v27  ;;  %1229 = vmatprep.subr.bf16.mxu1 %v4403_v28 }
  0x85   :  { %1189 = vmatpush1.bf16.msra.mxu0 %v4407_v29  ;;  %1230 = vmatpush1.bf16.msra.mxu1 %v4409_v30 }
  0x86   :  { %1190 = vmatprep.subr.bf16.mxu0 %v4413_v31  ;;  %1231 = vmatprep.subr.bf16.mxu1 %v4417_v32 }
  0x89   :  { %1191 = vmatpush1.bf16.msra.mxu0 %v4424_v34  ;;  %1232 = vmatpush1.bf16.msra.mxu1 %v4428_v35 }
  0x8a   :  { %1192 = vmatprep.subr.bf16.mxu0 %v4430_v36  ;;  %1233 = vmatprep.subr.bf16.mxu1 %v4434_v37 }
  0x8d   :  { %1193 = vmatpush1.bf16.msra.mxu0 %v4438_v38  ;;  %1234 = vmatpush1.bf16.msra.mxu1 %v4440_v39 }
  0x8e   :  { %1194 = vmatprep.subr.bf16.mxu0 %v4442_v40  ;;  %1235 = vmatprep.subr.bf16.mxu1 %v4446_v41 }
  0x91   :  { %1195 = vmatpush1.bf16.msra.mxu0 %v4455_v43  ;;  %1236 = vmatpush1.bf16.msra.mxu1 %v4457_v44 }
  0x92   :  { %1196 = vmatprep.subr.bf16.mxu0 %v4459_v45  ;;  %1237 = vmatprep.subr.bf16.mxu1 %v4461_v46 }
  0x95   :  { %1197 = vmatpush1.bf16.msra.mxu0 %v4467_v47  ;;  %1238 = vmatpush1.bf16.msra.mxu1 %v4469_v48 }
  0x96   :  { %1297 = vmatprep.subr.bf16.mxu0 %v4473_v49  ;;  %1338 = vmatprep.subr.bf16.mxu1 %v4475_v50 }
  0xeb   :  { %v4632_v22 = vpop.f32.mrb[0].mxu0  ;;  %v4634_v23 = vpop.f32.mrb[0].mxu1 }
  0xec   :  { %v4644_v27 = vpop.f32.mrb[1].mxu0  ;;  %v4646_v28 = vpop.f32.mrb[1].mxu1 }
  0xed   :  { %v157_v16 = vpop.f32.mrb[2].mxu0  ;;  %v230_v50 = vpop.f32.mrb[2].mxu1 }
  0xee   :  { %v4653_v49 = vadd.f32 %v157_v16, %v4642_v26  ;;  %v159_v48 = vpop.f32.mrb[3].mxu0  ;;  %v4656_v17 = vadd.f32 %v230_v50, %v4630_v21  ;;  %v232_v47 = vpop.f32.mrb[3].mxu1 }
  0xef   :  { %v4659_v18 = vadd.f32 %v159_v48, %v4650_v11  ;;  %v4662_v46 = vadd.f32 %v232_v47, %v4638_v25 }
  0xf0   :  { %5800 = vst [vmem:[#allocation24_spill] sm:$0xff] %v4653_v49  ;;  %5801 = vst [vmem:[#allocation25_spill] sm:$0xff] %v4656_v17 }
  0xf1   :  { %5802 = vst [vmem:[#allocation26_spill] sm:$0xff] %v4659_v18  ;;  %5803 = vst [vmem:[#allocation27_spill] sm:$0xff] %v4662_v46 }
  0xf3   :  { %v163_v45 = vpop.f32.mrb[4].mxu0  ;;  %v236_v44 = vpop.f32.mrb[4].mxu1 }
  0xf4   :  { %v4665_v19 = vadd.f32 %v163_v45, %v4642_v26  ;;  %v165_v20 = vpop.f32.mrb[5].mxu0  ;;  %v4668_v16 = vadd.f32 %v236_v44, %v4630_v21  ;;  %v238_v49 = vpop.f32.mrb[5].mxu1 }
  0xf5   :  { %v4671_v50 = vadd.f32 %v165_v20, %v4650_v11  ;;  %v167_v17 = vpop.f32.mrb[6].mxu0  ;;  %v4674_v48 = vadd.f32 %v238_v49, %v4638_v25  ;;  %v240_v18 = vpop.f32.mrb[6].mxu1 }
  0xf6   :  { %5804 = vst [vmem:[#allocation28_spill] sm:$0xff] %v4665_v19  ;;  %5805 = vst [vmem:[#allocation29_spill] sm:$0xff] %v4668_v16  ;;  %v4677_v47 = vadd.f32 %v167_v17, %v4642_v26  ;;  %v169_v46 = vpop.f32.mrb[7].mxu0  ;;  %v4680_v45 = vadd.f32 %v240_v18, %v4630_v21  ;;  %v242_v19 = vpop.f32.mrb[7].mxu1 }
  0xf7   :  { %5806 = vst [vmem:[#allocation30_spill] sm:$0xff] %v4671_v50  ;;  %5807 = vst [vmem:[#allocation31_spill] sm:$0xff] %v4674_v48  ;;  %v4683_v44 = vadd.f32 %v169_v46, %v4650_v11  ;;  %v4686_v16 = vadd.f32 %v242_v19, %v4638_v25 }
  0xf8   :  { %5808 = vst [vmem:[#allocation32_spill] sm:$0xff] %v4677_v47  ;;  %5809 = vst [vmem:[#allocation33_spill] sm:$0xff] %v4680_v45 }
  0xf9   :  { %5810 = vst [vmem:[#allocation34_spill] sm:$0xff] %v4683_v44  ;;  %5811 = vst [vmem:[#allocation35_spill] sm:$0xff] %v4686_v16 }
  0xfb   :  { %v173_v20 = vpop.f32.mrb[8].mxu0  ;;  %v246_v50 = vpop.f32.mrb[8].mxu1 }
  0xfc   :  { %v4689_v49 = vadd.f32 %v173_v20, %v4642_v26  ;;  %v175_v48 = vpop.f32.mrb[9].mxu0  ;;  %v4692_v17 = vadd.f32 %v246_v50, %v4630_v21  ;;  %v248_v47 = vpop.f32.mrb[9].mxu1 }
  0xfd   :  { %v4695_v18 = vadd.f32 %v175_v48, %v4650_v11  ;;  %v177_v45 = vpop.f32.mrb[10].mxu0  ;;  %v4698_v46 = vadd.f32 %v248_v47, %v4638_v25  ;;  %v250_v44 = vpop.f32.mrb[10].mxu1 }
  0xfe   :  { %5812 = vst [vmem:[#allocation36_spill] sm:$0xff] %v4689_v49  ;;  %5813 = vst [vmem:[#allocation37_spill] sm:$0xff] %v4692_v17  ;;  %v4701_v19 = vadd.f32 %v177_v45, %v4642_v26  ;;  %v179_v16 = vpop.f32.mrb[11].mxu0  ;;  %v4704_v20 = vadd.f32 %v250_v44, %v4630_v21  ;;  %v252_v49 = vpop.f32.mrb[11].mxu1 }
  0xff   :  { %5814 = vst [vmem:[#allocation38_spill] sm:$0xff] %v4695_v18  ;;  %5815 = vst [vmem:[#allocation39_spill] sm:$0xff] %v4698_v46  ;;  %v4707_v50 = vadd.f32 %v179_v16, %v4650_v11  ;;  %v4710_v17 = vadd.f32 %v252_v49, %v4638_v25 }
 0x100   :  { %5816 = vst [vmem:[#allocation40_spill] sm:$0xff] %v4701_v19  ;;  %5817 = vst [vmem:[#allocation41_spill] sm:$0xff] %v4704_v20 }
 0x101   :  { %5818 = vst [vmem:[#allocation42_spill] sm:$0xff] %v4707_v50  ;;  %5819 = vst [vmem:[#allocation43_spill] sm:$0xff] %v4710_v17 }
 0x103   :  { %v183_v48 = vpop.f32.mrb[12].mxu0  ;;  %v256_v18 = vpop.f32.mrb[12].mxu1 }
 0x104   :  { %v4713_v47 = vadd.f32 %v183_v48, %v4642_v26  ;;  %v185_v46 = vpop.f32.mrb[13].mxu0  ;;  %v4716_v45 = vadd.f32 %v256_v18, %v4630_v21  ;;  %v258_v19 = vpop.f32.mrb[13].mxu1 }
 0x105   :  { %v4719_v44 = vadd.f32 %v185_v46, %v4650_v11  ;;  %v187_v20 = vpop.f32.mrb[14].mxu0  ;;  %v4722_v16 = vadd.f32 %v258_v19, %v4638_v25  ;;  %v260_v50 = vpop.f32.mrb[14].mxu1  ;;  %v3389_v46 = vld [vmem:[%s5694_s3 + $0x7] sm:$0xf]  ;;  %v5828_v19 = vsub.s32 2, %v4619_v12 }
 0x106   :  { %5820 = vst [vmem:[#allocation44_spill] sm:$0xff] %v4713_v47  ;;  %5821 = vst [vmem:[#allocation45_spill] sm:$0xff] %v4716_v45  ;;  %v4725_v49 = vadd.f32 %v187_v20, %v4642_v26  ;;  %v189_v17 = vpop.f32.mrb[15].mxu0  ;;  %v4728_v48 = vadd.f32 %v260_v50, %v4630_v21  ;;  %v262_v47 = vpop.f32.mrb[15].mxu1  ;;  %v5829_v50 = vsub.s32 3, %v4619_v12 }
 0x107   :  { %5822 = vst [vmem:[#allocation46_spill] sm:$0xff] %v4719_v44  ;;  %5823 = vst [vmem:[#allocation47_spill] sm:$0xff] %v4722_v16  ;;  %v4731_v18 = vadd.f32 %v189_v17, %v4650_v11  ;;  %v4734_v45 = vadd.f32 %v262_v47, %v4638_v25  ;;  %v4741_v16 = vrot.slane %v3389_v46, %v5828_v19  ;;  %v5830_v17 = vsub.s32 0, %v4619_v12 }
 0x108   :  { %5824 = vst [vmem:[#allocation48_spill] sm:$0xff] %v4725_v49  ;;  %5825 = vst [vmem:[#allocation49_spill] sm:$0xff] %v4728_v48  ;;  %v4749_v48 = vrot.slane %v3389_v46, %v5829_v50  ;;  %v5831_v44 = vsub.s32 1, %v4619_v12 }
 0x109   :  { %5826 = vst [vmem:[#allocation50_spill] sm:$0xff] %v4731_v18  ;;  %5827 = vst [vmem:[#allocation51_spill] sm:$0xff] %v4734_v45  ;;  %v4753_v47 = vrot.slane %v3389_v46, %v5830_v17 }
 0x10a   :  { %v4761_v19 = vrot.slane %v3389_v46, %v5831_v44 }
 0x10b   :  { %v4743_v20 = vpop.f32.mrb[16].mxu0  ;;  %v4745_v49 = vpop.f32.mrb[16].mxu1 }
 0x10c   :  { %v4755_v45 = vpop.f32.mrb[17].mxu0  ;;  %v4757_v18 = vpop.f32.mrb[17].mxu1 }
 0x10d   :  { %v424_v43 = vpop.f32.mrb[18].mxu0  ;;  %v497_v41 = vpop.f32.mrb[18].mxu1 }
 0x10e   :  { %v4764_v40 = vadd.f32 %v424_v43, %v4753_v47  ;;  %v426_v39 = vpop.f32.mrb[19].mxu0  ;;  %v4767_v50 = vadd.f32 %v497_v41, %v4741_v16  ;;  %v499_v38 = vpop.f32.mrb[19].mxu1 }
 0x10f   :  { %v4770_v17 = vadd.f32 %v426_v39, %v4761_v19  ;;  %v4773_v37 = vadd.f32 %v499_v38, %v4749_v48 }
 0x110   :  { %5832 = vst [vmem:[#allocation52_spill] sm:$0xff] %v4764_v40  ;;  %5833 = vst [vmem:[#allocation53_spill] sm:$0xff] %v4767_v50 }
 0x111   :  { %5834 = vst [vmem:[#allocation54_spill] sm:$0xff] %v4770_v17  ;;  %5835 = vst [vmem:[#allocation55_spill] sm:$0xff] %v4773_v37 }
 0x113   :  { %v430_v36 = vpop.f32.mrb[20].mxu0  ;;  %v503_v12 = vpop.f32.mrb[20].mxu1 }
 0x114   :  { %v4776_v44 = vadd.f32 %v430_v36, %v4753_v47  ;;  %v432_v46 = vpop.f32.mrb[21].mxu0  ;;  %v4779_v43 = vadd.f32 %v503_v12, %v4741_v16  ;;  %v505_v40 = vpop.f32.mrb[21].mxu1 }
 0x115   :  { %v4782_v41 = vadd.f32 %v432_v46, %v4761_v19  ;;  %v434_v50 = vpop.f32.mrb[22].mxu0  ;;  %v4785_v39 = vadd.f32 %v505_v40, %v4749_v48  ;;  %v507_v17 = vpop.f32.mrb[22].mxu1 }
 0x116   :  { %5836 = vst [vmem:[#allocation56_spill] sm:$0xff] %v4776_v44  ;;  %5837 = vst [vmem:[#allocation57_spill] sm:$0xff] %v4779_v43  ;;  %v4788_v38 = vadd.f32 %v434_v50, %v4753_v47  ;;  %v436_v37 = vpop.f32.mrb[23].mxu0  ;;  %v4791_v36 = vadd.f32 %v507_v17, %v4741_v16  ;;  %v509_v44 = vpop.f32.mrb[23].mxu1 }
 0x117   :  { %5838 = vst [vmem:[#allocation58_spill] sm:$0xff] %v4782_v41  ;;  %5839 = vst [vmem:[#allocation59_spill] sm:$0xff] %v4785_v39  ;;  %v4794_v12 = vadd.f32 %v436_v37, %v4761_v19  ;;  %v4797_v43 = vadd.f32 %v509_v44, %v4749_v48 }
 0x118   :  { %5840 = vst [vmem:[#allocation60_spill] sm:$0xff] %v4788_v38  ;;  %5841 = vst [vmem:[#allocation61_spill] sm:$0xff] %v4791_v36 }
 0x119   :  { %5842 = vst [vmem:[#allocation62_spill] sm:$0xff] %v4794_v12  ;;  %5843 = vst [vmem:[#allocation63_spill] sm:$0xff] %v4797_v43 }
 0x11b   :  { %v440_v46 = vpop.f32.mrb[24].mxu0  ;;  %v513_v41 = vpop.f32.mrb[24].mxu1 }
 0x11c   :  { %v4800_v40 = vadd.f32 %v440_v46, %v4753_v47  ;;  %v442_v39 = vpop.f32.mrb[25].mxu0  ;;  %v4803_v50 = vadd.f32 %v513_v41, %v4741_v16  ;;  %v515_v38 = vpop.f32.mrb[25].mxu1 }
 0x11d   :  { %v4806_v17 = vadd.f32 %v442_v39, %v4761_v19  ;;  %v444_v36 = vpop.f32.mrb[26].mxu0  ;;  %v4809_v37 = vadd.f32 %v515_v38, %v4749_v48  ;;  %v517_v12 = vpop.f32.mrb[26].mxu1 }
 0x11e   :  { %5844 = vst [vmem:[#allocation64_spill] sm:$0xff] %v4800_v40  ;;  %5845 = vst [vmem:[#allocation65_spill] sm:$0xff] %v4803_v50  ;;  %v4812_v44 = vadd.f32 %v444_v36, %v4753_v47  ;;  %v446_v43 = vpop.f32.mrb[27].mxu0  ;;  %v4815_v46 = vadd.f32 %v517_v12, %v4741_v16  ;;  %v519_v40 = vpop.f32.mrb[27].mxu1 }
 0x11f   :  { %5846 = vst [vmem:[#allocation66_spill] sm:$0xff] %v4806_v17  ;;  %5847 = vst [vmem:[#allocation67_spill] sm:$0xff] %v4809_v37  ;;  %v4818_v41 = vadd.f32 %v446_v43, %v4761_v19  ;;  %v4821_v50 = vadd.f32 %v519_v40, %v4749_v48 }
 0x120   :  { %5848 = vst [vmem:[#allocation68_spill] sm:$0xff] %v4812_v44  ;;  %5849 = vst [vmem:[#allocation69_spill] sm:$0xff] %v4815_v46 }
 0x121   :  { %5850 = vst [vmem:[#allocation70_spill] sm:$0xff] %v4818_v41  ;;  %5851 = vst [vmem:[#allocation71_spill] sm:$0xff] %v4821_v50 }
 0x123   :  { %v450_v39 = vpop.f32.mrb[28].mxu0  ;;  %v523_v17 = vpop.f32.mrb[28].mxu1 }
 0x124   :  { %v4824_v38 = vadd.f32 %v450_v39, %v4753_v47  ;;  %v452_v37 = vpop.f32.mrb[29].mxu0  ;;  %v4827_v36 = vadd.f32 %v523_v17, %v4741_v16  ;;  %v525_v44 = vpop.f32.mrb[29].mxu1 }
 0x125   :  { %v4830_v12 = vadd.f32 %v452_v37, %v4761_v19  ;;  %v454_v46 = vpop.f32.mrb[30].mxu0  ;;  %v4833_v43 = vadd.f32 %v525_v44, %v4749_v48  ;;  %v527_v41 = vpop.f32.mrb[30].mxu1  ;;  %v154_v37 = vadd.f32 %v4632_v22, %v4642_v26  ;;  %v227_v44 = vadd.f32 %v4634_v23, %v4630_v21 }
 0x126   :  { %5852 = vst [vmem:[#allocation72_spill] sm:$0xff] %v4824_v38  ;;  %5853 = vst [vmem:[#allocation73_spill] sm:$0xff] %v4827_v36  ;;  %v4836_v40 = vadd.f32 %v454_v46, %v4753_v47  ;;  %v456_v50 = vpop.f32.mrb[31].mxu0  ;;  %v4839_v39 = vadd.f32 %v527_v41, %v4741_v16  ;;  %v529_v38 = vpop.f32.mrb[31].mxu1  ;;  %v156_v46 = vadd.f32 %v4644_v27, %v4650_v11 }
 0x127   :  { %5854 = vst [vmem:[#allocation74_spill] sm:$0xff] %v4830_v12  ;;  %5855 = vst [vmem:[#allocation75_spill] sm:$0xff] %v4833_v43  ;;  %v4842_v17 = vadd.f32 %v456_v50, %v4761_v19  ;;  %v4845_v36 = vadd.f32 %v529_v38, %v4749_v48  ;;  %v229_v41 = vadd.f32 %v4646_v28, %v4638_v25 }
 0x128   :  { %5856 = vst [vmem:[#allocation76_spill] sm:$0xff] %v4836_v40  ;;  %5857 = vst [vmem:[#allocation77_spill] sm:$0xff] %v4839_v39 }
 0x129   :  { %5858 = vst [vmem:[#allocation78_spill] sm:$0xff] %v4842_v17  ;;  %5859 = vst [vmem:[#allocation79_spill] sm:$0xff] %v4845_v36 }
 0x12b   :  { %v795_v39 = vpop.f32.mrb[32].mxu0  ;;  %v836_v40 = vpop.f32.mrb[32].mxu1 }
 0x12c   :  { %v843_v43 = vadd.f32 %v795_v39, %v154_v37  ;;  %v845_v50 = vadd.f32 %v836_v40, %v227_v44  ;;  %v797_v17 = vpop.f32.mrb[33].mxu0  ;;  %v838_v12 = vpop.f32.mrb[33].mxu1  ;;  %v496_v44 = vadd.f32 %v4757_v18, %v4749_v48 }
 0x12d   :  { %v844_v38 = vadd.f32 %v797_v17, %v156_v46  ;;  %v846_v36 = vadd.f32 %v838_v12, %v229_v41  ;;  %v799_v35 = vpop.f32.mrb[34].mxu0  ;;  %v840_v34 = vpop.f32.mrb[34].mxu1  ;;  %v494_v17 = vadd.f32 %v4745_v49, %v4741_v16 }
 0x12e   :  { %v3438_v22 = vmul.f32 -1.442695, %v843_v43  ;;  %v800_v26 = vpop.f32.mrb[35].mxu0  ;;  %v841_v32 = vpop.f32.mrb[35].mxu1  ;;  %v3440_v23 = vmul.f32 -1.442695, %v845_v50 }
 0x12f   :  { %v3439_v21 = vmul.f32 -1.442695, %v844_v38  ;;  %v421_v32 = vadd.f32 %v4743_v20, %v4753_v47 }
 0x130   :  { %3876 = vpow2.f32 %v3438_v22 }
 0x131   :  { %3878 = vpow2.f32 %v3439_v21 }
 0x132   :  { %3880 = vtanh.f32 %v846_v36  ;;  %v423_v36 = vadd.f32 %v4755_v45, %v4761_v19 }
 0x133   :  { %3882 = vpow2.f32 %v3440_v23 }
 0x13a   :  { %v3877_v27 = vpop.eup %3876 }
 0x13b   :  { %v856_v11 = vadd.f32 1.0, %v3877_v27  ;;  %v3879_v25 = vpop.eup %3878 }
 0x13c   :  { %v857_v28 = vadd.f32 1.0, %v3879_v25  ;;  %v3881_v40 = vpop.eup %3880 }
 0x13d   :  { %3884 = vrcp.f32 %v856_v11  ;;  %v3883_v39 = vpop.eup %3882 }
 0x13e   :  { %3886 = vrcp.f32 %v857_v28  ;;  %v858_v43 = vadd.f32 1.0, %v3883_v39 }
 0x140   :  { %3888 = vrcp.f32 %v858_v43 }
 0x147   :  { %v3885_v12 = vpop.eup %3884 }
 0x148   :  { %v867_v35 = vmul.f32 %v3885_v12, %v3881_v40  ;;  %v3887_v34 = vpop.eup %3886 }
 0x149   :  { %v866_v37 = vmul.f32 0.0, %v3887_v34 }
 0x14a   :  { %v3889_v48 = vpop.eup %3888 }
 0x14b   :  { %v1101_v46 = vpop.f32.mrb[36].mxu0  ;;  %v1142_v41 = vpop.f32.mrb[36].mxu1  ;;  %v4863_v50 = vadd.f32 %v867_v35, %v866_v37 }
 0x14c   :  { %v1149_v38 = vadd.f32 %v1101_v46, %v421_v32  ;;  %v1151_v22 = vadd.f32 %v1142_v41, %v494_v17  ;;  %v1103_v26 = vpop.f32.mrb[37].mxu0  ;;  %v1144_v21 = vpop.f32.mrb[37].mxu1  ;;  %v5860_v41 = vld [vmem:[#allocation23_spill] sm:$0xff] }
 0x14d   :  { %v1150_v20 = vadd.f32 %v1103_v26, %v423_v36  ;;  %v1152_v47 = vadd.f32 %v1144_v21, %v496_v44  ;;  %v1105_v23 = vpop.f32.mrb[38].mxu0  ;;  %v1146_v16 = vpop.f32.mrb[38].mxu1  ;;  %3890 = vtanh.f32 %v4863_v50 }
 0x14e   :  { %v3473_v49 = vmul.f32 -1.442695, %v1149_v38  ;;  %v1106_v45 = vpop.f32.mrb[39].mxu0  ;;  %v1147_v19 = vpop.f32.mrb[39].mxu1  ;;  %v3475_v11 = vmul.f32 -1.442695, %v1151_v22 }
 0x14f   :  { %v3474_v27 = vmul.f32 -1.442695, %v1150_v20  ;;  %v4901_v20 = vld [vmem:[#allocation3 + $0x24] ss:$16 sps:$4 sm:$0xff]   ;;  %v4907_v23 = vld [vmem:[#allocation3 + $0x20] ss:$16 sps:$4 sm:$0xff]  }
 0x150   :  { %3892 = vpow2.f32 %v3473_v49  ;;  %v4910_v16 = vld [vmem:[#allocation3 + $0x28] ss:$16 sps:$4 sm:$0xff]   ;;  %v4913_v49 = vld [vmem:[#allocation3 + $0x44] ss:$16 sps:$4 sm:$0xff]   ;;  %v4916_v45 = vld [vmem:[#allocation3 + $0x4c] ss:$16 sps:$4 sm:$0xff]  }
 0x151   :  { %3894 = vpow2.f32 %v3474_v27  ;;  %v4921_v19 = vld [vmem:[#allocation3 + $0x40] ss:$16 sps:$4 sm:$0xff]   ;;  %v4924_v27 = vld [vmem:[#allocation3 + $0x48] ss:$16 sps:$4 sm:$0xff]  }
 0x152   :  { %3896 = vtanh.f32 %v1152_v47  ;;  %v4904_v47 = vld [vmem:[#allocation3 + $0x2c] ss:$16 sps:$4 sm:$0xff]  }
 0x153   :  { %3898 = vpow2.f32 %v3475_v11  ;;  %v4933_v11 = vld [vmem:[#allocation3 + $0x60] ss:$16 sps:$4 sm:$0xff]  }
 0x154   :  { %5861 = vst [vmem:[#allocation23_spill] sm:$0xff] %v4933_v11 }
 0x157   :  { %v3891_v18 = vpop.eup %3890 }
 0x158   :  { %v870_v25 = vmul.f32 %v3891_v18, %v3889_v48  ;;  %v4927_v48 = vld [vmem:[#allocation3 + $0x64] ss:$16 sps:$4 sm:$0xff]   ;;  %v4930_v18 = vld [vmem:[#allocation3 + $0x6c] ss:$16 sps:$4 sm:$0xff]  }
 0x15a   :  { %v3893_v28 = vpop.eup %3892  ;;  %v1181_v39 = vpack.c.bf16 %v870_v25, %v870_v25  ;;  %v4936_v25 = vld [vmem:[#allocation3 + $0x68] ss:$16 sps:$4 sm:$0xff]  }
 0x15b   :  { %v1162_v40 = vadd.f32 1.0, %v3893_v28  ;;  %v3895_v12 = vpop.eup %3894  ;;  %5862 = vst [vmem:[#allocation80_spill] sm:$0xff] %v4936_v25  ;;  %v4939_v28 = vld [vmem:[#allocation3 + $0x84] ss:$16 sps:$4 sm:$0xff]  }
 0x15c   :  { %v1163_v35 = vadd.f32 1.0, %v3895_v12  ;;  %1215 = vmatmul.mubr.bf16.vlgmr.msra.gmra.mrb[40].mxu0 %v1181_v39  ;;  %1256 = vmatmul.mubr.bf16.vlgmr.msra.gmra.mrb[40].mxu1 %v1181_v39  ;;  %v3897_v34 = vpop.eup %3896  ;;  %5863 = vst [vmem:[#allocation81_spill] sm:$0xff] %v4939_v28  ;;  %v5865_v39 = vld [vmem:[#allocation6_spill] sm:$0xff]  ;;  %v5866_v12 = vld [vmem:[#allocation7_spill] sm:$0xff] }
 0x15d   :  { %3900 = vrcp.f32 %v1162_v40  ;;  %1298 = vmatpush1.bf16.msra.mxu0 %v4483_v51  ;;  %1339 = vmatpush1.bf16.msra.mxu1 %v4485_v52  ;;  %v3899_v43 = vpop.eup %3898  ;;  %v4942_v40 = vld [vmem:[#allocation3 + $0x8c] ss:$16 sps:$4 sm:$0xff]  }
 0x15e   :  { %3902 = vrcp.f32 %v1163_v35  ;;  %1299 = vmatprep.subr.bf16.mxu0 %v4487_v53  ;;  %1340 = vmatprep.subr.bf16.mxu1 %v4489_v54  ;;  %v1164_v36 = vadd.f32 1.0, %v3899_v43  ;;  %5864 = vst [vmem:[#allocation82_spill] sm:$0xff] %v4942_v40  ;;  %v5867_v35 = vld [vmem:[#allocation8_spill] sm:$0xff]  ;;  %v5869_v43 = vld [vmem:[#allocation10_spill] sm:$0xff] }
 0x15f   :  { %1329 = vmatprep.mubr.bf16.mxu0 %v5799_v13  ;;  %1370 = vmatprep.mubr.bf16.mxu1 %v5799_v13 }
 0x160   :  { %3904 = vrcp.f32 %v1164_v36  ;;  %v5876_v36 = vld [vmem:[#allocation17_spill] sm:$0xff] }
 0x161   :  { %1300 = vmatpush1.bf16.msra.mxu0 %v4495_v55  ;;  %1341 = vmatpush1.bf16.msra.mxu1 %v4497_v56 }
 0x162   :  { %1301 = vmatprep.subr.bf16.mxu0 %v4501_v57  ;;  %1342 = vmatprep.subr.bf16.mxu1 %v4503_v58 }
 0x165   :  { %1302 = vmatpush1.bf16.msra.mxu0 %v4509_v59  ;;  %1343 = vmatpush1.bf16.msra.mxu1 %v4511_v60 }
 0x166   :  { %1303 = vmatprep.subr.bf16.mxu0 %v4515_v61  ;;  %1344 = vmatprep.subr.bf16.mxu1 %v4521_v62 }
 0x167   :  { %v3901_v32 = vpop.eup %3900 }
 0x168   :  { %v1173_v17 = vmul.f32 %v3901_v32, %v3897_v34  ;;  %v3903_v37 = vpop.eup %3902  ;;  %v5868_v34 = vld [vmem:[#allocation9_spill] sm:$0xff]  ;;  %v5870_v32 = vld [vmem:[#allocation11_spill] sm:$0xff] }
 0x169   :  { %v1172_v44 = vmul.f32 0.0, %v3903_v37  ;;  %1304 = vmatpush1.bf16.msra.mxu0 %v4525_v63  ;;  %1345 = vmatpush1.bf16.msra.mxu1 %v4527_v1  ;;  %v5872_v37 = vld [vmem:[#allocation13_spill] sm:$0xff] }
 0x16a   :  { %1305 = vmatprep.subr.bf16.mxu0 %v4531_v2  ;;  %1346 = vmatprep.subr.bf16.mxu1 %v4533_v3  ;;  %v3905_v38 = vpop.eup %3904 }
 0x16b   :  { %v4884_v46 = vadd.f32 %v1173_v17, %v1172_v44  ;;  %v5871_v17 = vld [vmem:[#allocation12_spill] sm:$0xff]  ;;  %v5877_v44 = vld [vmem:[#allocation18_spill] sm:$0xff] }
 0x16d   :  { %3906 = vtanh.f32 %v4884_v46  ;;  %1306 = vmatpush1.bf16.msra.mxu0 %v4537_v4  ;;  %1347 = vmatpush1.bf16.msra.mxu1 %v4539_v5 }
 0x16e   :  { %1307 = vmatprep.subr.bf16.mxu0 %v4543_v6  ;;  %1348 = vmatprep.subr.bf16.mxu1 %v4545_v7 }
 0x171   :  { %1308 = vmatpush1.bf16.msra.mxu0 %v4549_v8  ;;  %1349 = vmatpush1.bf16.msra.mxu1 %v4551_v9 }
 0x172   :  { %1309 = vmatprep.subr.bf16.mxu0 %v4555_v10  ;;  %1350 = vmatprep.subr.bf16.mxu1 %v5860_v41 }
 0x175   :  { %1310 = vmatpush1.bf16.msra.mxu0 %v4561_v14  ;;  %1351 = vmatpush1.bf16.msra.mxu1 %v4563_v15 }
 0x176   :  { %1311 = vmatprep.subr.bf16.mxu0 %v4567_v24  ;;  %1352 = vmatprep.subr.bf16.mxu1 %v4569_v33 }
 0x177   :  { %v3907_v22 = vpop.eup %3906 }
 0x178   :  { %v1176_v26 = vmul.f32 %v3907_v22, %v3905_v38  ;;  %v5878_v38 = vld [vmem:[#allocation19_spill] sm:$0xff]  ;;  %v5879_v22 = vld [vmem:[#allocation20_spill] sm:$0xff] }
 0x179   :  { %1312 = vmatpush1.bf16.msra.mxu0 %v4573_v42  ;;  %1353 = vmatpush1.bf16.msra.mxu1 %v4575_v0 }
 0x17a   :  { %v1296_v21 = vpack.c.bf16 %v1176_v26, %v1176_v26  ;;  %1412 = vmatprep.subr.bf16.mxu0 %v4901_v20  ;;  %1453 = vmatprep.subr.bf16.mxu1 %v4904_v47  ;;  %v5880_v26 = vld [vmem:[#allocation21_spill] sm:$0xff] }
 0x17c   :  { %1330 = vmatmul.mubr.bf16.vlgmr.msra.gmra.mrb[44].mxu0 %v1296_v21  ;;  %1371 = vmatmul.mubr.bf16.vlgmr.msra.gmra.mrb[44].mxu1 %v1296_v21  ;;  %v5881_v21 = vld [vmem:[#allocation22_spill] sm:$0xff] }
 0x17d   :  { %1413 = vmatpush1.bf16.msra.mxu0 %v4907_v23  ;;  %1454 = vmatpush1.bf16.msra.mxu1 %v4910_v16 }
 0x17e   :  { %1414 = vmatprep.subr.bf16.mxu0 %v4913_v49  ;;  %1455 = vmatprep.subr.bf16.mxu1 %v4916_v45 }
 0x17f   :  { %1444 = vmatprep.mubr.bf16.mxu0 %v5799_v13  ;;  %1485 = vmatprep.mubr.bf16.mxu1 %v5799_v13 }
 0x181   :  { %1415 = vmatpush1.bf16.msra.mxu0 %v4921_v19  ;;  %1456 = vmatpush1.bf16.msra.mxu1 %v4924_v27 }
 0x182   :  { %1416 = vmatprep.subr.bf16.mxu0 %v4927_v48  ;;  %1457 = vmatprep.subr.bf16.mxu1 %v4930_v18 }
 0x185   :  { %1417 = vmatpush1.bf16.msra.mxu0 %v4933_v11  ;;  %1458 = vmatpush1.bf16.msra.mxu1 %v4936_v25 }
 0x186   :  { %1418 = vmatprep.subr.bf16.mxu0 %v4939_v28  ;;  %1459 = vmatprep.subr.bf16.mxu1 %v4942_v40 }
 0x189   :  { %1419 = vmatpush1.bf16.msra.mxu0 %v4407_v29  ;;  %1460 = vmatpush1.bf16.msra.mxu1 %v4409_v30  ;;  %v5873_v29 = vld [vmem:[#allocation14_spill] sm:$0xff]  ;;  %v5874_v30 = vld [vmem:[#allocation15_spill] sm:$0xff] }
 0x18a   :  { %1420 = vmatprep.subr.bf16.mxu0 %v4413_v31  ;;  %1461 = vmatprep.subr.bf16.mxu1 %v5865_v39  ;;  %v5875_v31 = vld [vmem:[#allocation16_spill] sm:$0xff] }
 0x18d   :  { %1421 = vmatpush1.bf16.msra.mxu0 %v5866_v12  ;;  %1462 = vmatpush1.bf16.msra.mxu1 %v5867_v35  ;;  %v5882_v35 = vld [vmem:[#allocation24_spill] sm:$0xff] }
 0x18e   :  { %1422 = vmatprep.subr.bf16.mxu0 %v5868_v34  ;;  %1463 = vmatprep.subr.bf16.mxu1 %v5869_v43  ;;  %v5883_v43 = vld [vmem:[#allocation25_spill] sm:$0xff] }
 0x191   :  { %1423 = vmatpush1.bf16.msra.mxu0 %v5870_v32  ;;  %1464 = vmatpush1.bf16.msra.mxu1 %v5871_v17 }
 0x192   :  { %1424 = vmatprep.subr.bf16.mxu0 %v5872_v37  ;;  %1465 = vmatprep.subr.bf16.mxu1 %v5873_v29  ;;  %v5884_v29 = vld [vmem:[#allocation26_spill] sm:$0xff] }
 0x195   :  { %1425 = vmatpush1.bf16.msra.mxu0 %v5874_v30  ;;  %1466 = vmatpush1.bf16.msra.mxu1 %v5875_v31  ;;  %v5885_v31 = vld [vmem:[#allocation27_spill] sm:$0xff] }
 0x196   :  { %1426 = vmatprep.subr.bf16.mxu0 %v5876_v36  ;;  %1467 = vmatprep.subr.bf16.mxu1 %v5877_v44 }
 0x199   :  { %1427 = vmatpush1.bf16.msra.mxu0 %v5878_v38  ;;  %1468 = vmatpush1.bf16.msra.mxu1 %v5879_v22 }
 0x19a   :  { %1527 = vmatprep.subr.bf16.mxu0 %v5880_v26  ;;  %1568 = vmatprep.subr.bf16.mxu1 %v5881_v21 }
 0x22f   :  { %v1216_v39 = vpop.f32.mrb[40].mxu0  ;;  %v1257_v12 = vpop.f32.mrb[40].mxu1 }
 0x230   :  { %v1264_v34 = vadd.f32 %v1216_v39, %v5882_v35  ;;  %v1266_v32 = vadd.f32 %v1257_v12, %v5883_v43  ;;  %v1218_v17 = vpop.f32.mrb[41].mxu0  ;;  %v1259_v37 = vpop.f32.mrb[41].mxu1 }
 0x231   :  { %v1265_v30 = vadd.f32 %v1218_v17, %v5884_v29  ;;  %v1267_v36 = vadd.f32 %v1259_v37, %v5885_v31  ;;  %v1220_v44 = vpop.f32.mrb[42].mxu0  ;;  %v1261_v38 = vpop.f32.mrb[42].mxu1 }
 0x232   :  { %v3476_v40 = vmul.f32 -1.442695, %v1264_v34  ;;  %v1221_v22 = vpop.f32.mrb[43].mxu0  ;;  %v1262_v28 = vpop.f32.mrb[43].mxu1  ;;  %v3478_v21 = vmul.f32 -1.442695, %v1266_v32 }
 0x233   :  { %v3477_v26 = vmul.f32 -1.442695, %v1265_v30  ;;  %v5886_v32 = vld [vmem:[#allocation52_spill] sm:$0xff]  ;;  %v5888_v22 = vld [vmem:[#allocation54_spill] sm:$0xff] }
 0x234   :  { %3908 = vpow2.f32 %v3476_v40 }
 0x235   :  { %3910 = vpow2.f32 %v3477_v26 }
 0x236   :  { %3912 = vtanh.f32 %v1267_v36  ;;  %v5887_v36 = vld [vmem:[#allocation53_spill] sm:$0xff] }
 0x237   :  { %3914 = vpow2.f32 %v3478_v21  ;;  %v5889_v21 = vld [vmem:[#allocation55_spill] sm:$0xff] }
 0x23e   :  { %v3909_v25 = vpop.eup %3908 }
 0x23f   :  { %v1277_v11 = vadd.f32 1.0, %v3909_v25  ;;  %v3911_v39 = vpop.eup %3910 }
 0x240   :  { %v1278_v12 = vadd.f32 1.0, %v3911_v39  ;;  %v3913_v35 = vpop.eup %3912 }
 0x241   :  { %3916 = vrcp.f32 %v1277_v11  ;;  %v3915_v43 = vpop.eup %3914 }
 0x242   :  { %3918 = vrcp.f32 %v1278_v12  ;;  %v1279_v34 = vadd.f32 1.0, %v3915_v43 }
 0x244   :  { %3920 = vrcp.f32 %v1279_v34 }
 0x24b   :  { %v3917_v17 = vpop.eup %3916 }
 0x24c   :  { %v1288_v37 = vmul.f32 %v3917_v17, %v3913_v35  ;;  %v3919_v29 = vpop.eup %3918 }
 0x24d   :  { %v1287_v28 = vmul.f32 %v3919_v29, %v4863_v50 }
 0x24e   :  { %v3921_v29 = vpop.eup %3920 }
 0x24f   :  { %v1331_v30 = vpop.f32.mrb[44].mxu0  ;;  %v1372_v40 = vpop.f32.mrb[44].mxu1  ;;  %v4970_v31 = vadd.f32 %v1288_v37, %v1287_v28 }
 0x250   :  { %v1379_v25 = vadd.f32 %v1331_v30, %v5886_v32  ;;  %v1381_v44 = vadd.f32 %v1372_v40, %v5887_v36  ;;  %v1333_v38 = vpop.f32.mrb[45].mxu0  ;;  %v1374_v11 = vpop.f32.mrb[45].mxu1 }
 0x251   :  { %v1380_v26 = vadd.f32 %v1333_v38, %v5888_v22  ;;  %v1382_v39 = vadd.f32 %v1374_v11, %v5889_v21  ;;  %v1335_v12 = vpop.f32.mrb[46].mxu0  ;;  %v1376_v35 = vpop.f32.mrb[46].mxu1  ;;  %3922 = vtanh.f32 %v4970_v31  ;;  %v5080_v22 = vld [vmem:[#allocation3 + $0x108] ss:$16 sps:$4 sm:$0xff]   ;;  %v5086_v21 = vld [vmem:[#allocation3 + $0x14c] ss:$16 sps:$4 sm:$0xff]  }
 0x252   :  { %v3479_v50 = vmul.f32 -1.442695, %v1379_v25  ;;  %v1336_v43 = vpop.f32.mrb[47].mxu0  ;;  %v1377_v17 = vpop.f32.mrb[47].mxu1  ;;  %v3481_v30 = vmul.f32 -1.442695, %v1381_v44 }
 0x253   :  { %v3480_v37 = vmul.f32 -1.442695, %v1380_v26  ;;  %v5077_v44 = vld [vmem:[#allocation3 + $0x100] ss:$16 sps:$4 sm:$0xff]   ;;  %5908 = vst [vmem:[#allocation20_spill] sm:$0xff] %v5080_v22  ;;  %5910 = vst [vmem:[#allocation22_spill] sm:$0xff] %v5086_v21 }
 0x254   :  { %3924 = vpow2.f32 %v3479_v50  ;;  %5907 = vst [vmem:[#allocation19_spill] sm:$0xff] %v5077_v44  ;;  %v5083_v26 = vld [vmem:[#allocation3 + $0x144] ss:$16 sps:$4 sm:$0xff]   ;;  %v5912_v43 = vld [vmem:[#allocation29_spill] sm:$0xff] }
 0x255   :  { %3926 = vpow2.f32 %v3480_v37  ;;  %5909 = vst [vmem:[#allocation21_spill] sm:$0xff] %v5083_v26  ;;  %v5911_v35 = vld [vmem:[#allocation28_spill] sm:$0xff] }
 0x256   :  { %3928 = vtanh.f32 %v1382_v39 }
 0x257   :  { %3930 = vpow2.f32 %v3481_v30 }
 0x25b   :  { %v3923_v28 = vpop.eup %3922 }
 0x25c   :  { %v1291_v40 = vmul.f32 %v3923_v28, %v3921_v29  ;;  %v5913_v28 = vld [vmem:[#allocation30_spill] sm:$0xff] }
 0x25e   :  { %v3925_v32 = vpop.eup %3924  ;;  %v1411_v36 = vpack.c.bf16 %v1291_v40, %v1291_v40  ;;  %v5914_v40 = vld [vmem:[#allocation31_spill] sm:$0xff] }
 0x25f   :  { %v1392_v34 = vadd.f32 1.0, %v3925_v32  ;;  %v3927_v38 = vpop.eup %3926 }
 0x260   :  { %v1393_v11 = vadd.f32 1.0, %v3927_v38  ;;  %1445 = vmatmul.mubr.bf16.vlgmr.msra.gmra.mrb[48].mxu0 %v1411_v36  ;;  %1486 = vmatmul.mubr.bf16.vlgmr.msra.gmra.mrb[48].mxu1 %v1411_v36 }
 0x261   :  { %3932 = vrcp.f32 %v1392_v34  ;;  %1528 = vmatpush1.bf16.msra.mxu0 %v4483_v51  ;;  %1569 = vmatpush1.bf16.msra.mxu1 %v4485_v52  ;;  %v3929_v51 = vpop.eup %3928 }
 0x262   :  { %3934 = vrcp.f32 %v1393_v11  ;;  %1529 = vmatprep.subr.bf16.mxu0 %v4487_v53  ;;  %1570 = vmatprep.subr.bf16.mxu1 %v4489_v54  ;;  %v3931_v25 = vpop.eup %3930 }
 0x263   :  { %1559 = vmatprep.mubr.bf16.mxu0 %v5799_v13  ;;  %1600 = vmatprep.mubr.bf16.mxu1 %v5799_v13 }
 0x265   :  { %1530 = vmatpush1.bf16.msra.mxu0 %v4495_v55  ;;  %1571 = vmatpush1.bf16.msra.mxu1 %v4497_v56  ;;  %v1394_v55 = vadd.f32 1.0, %v3931_v25 }
 0x266   :  { %1531 = vmatprep.subr.bf16.mxu0 %v4501_v57  ;;  %1572 = vmatprep.subr.bf16.mxu1 %v4503_v58 }
 0x267   :  { %3936 = vrcp.f32 %v1394_v55 }
 0x269   :  { %1532 = vmatpush1.bf16.msra.mxu0 %v4509_v59  ;;  %1573 = vmatpush1.bf16.msra.mxu1 %v4511_v60 }
 0x26a   :  { %1533 = vmatprep.subr.bf16.mxu0 %v4515_v61  ;;  %1574 = vmatprep.subr.bf16.mxu1 %v4521_v62  ;;  %v5891_v62 = vld [vmem:[#allocation80_spill] sm:$0xff] }
 0x26b   :  { %v3933_v52 = vpop.eup %3932 }
 0x26c   :  { %v1403_v53 = vmul.f32 %v3933_v52, %v3929_v51  ;;  %v3935_v54 = vpop.eup %3934 }
 0x26d   :  { %v1402_v56 = vmul.f32 %v3935_v54, %v4884_v46  ;;  %1534 = vmatpush1.bf16.msra.mxu0 %v4525_v63  ;;  %1575 = vmatpush1.bf16.msra.mxu1 %v4527_v1  ;;  %v5892_v63 = vld [vmem:[#allocation81_spill] sm:$0xff]  ;;  %v5893_v1 = vld [vmem:[#allocation82_spill] sm:$0xff] }
 0x26e   :  { %1535 = vmatprep.subr.bf16.mxu0 %v4531_v2  ;;  %1576 = vmatprep.subr.bf16.mxu1 %v4533_v3  ;;  %v5029_v2 = vld [vmem:[#allocation3 + $0x80] ss:$16 sps:$4 sm:$0xff]   ;;  %v5032_v3 = vld [vmem:[#allocation3 + $0x88] ss:$16 sps:$4 sm:$0xff]   ;;  %v5071_v46 = vld [vmem:[#allocation3 + $0x104] ss:$16 sps:$4 sm:$0xff]  }
 0x26f   :  { %v4996_v57 = vadd.f32 %v1403_v53, %v1402_v56  ;;  %5905 = vst [vmem:[#allocation17_spill] sm:$0xff] %v5071_v46 }
 0x271   :  { %3938 = vtanh.f32 %v4996_v57  ;;  %1536 = vmatpush1.bf16.msra.mxu0 %v4537_v4  ;;  %1577 = vmatpush1.bf16.msra.mxu1 %v4539_v5  ;;  %v3937_v58 = vpop.eup %3936  ;;  %v5035_v4 = vld [vmem:[#allocation3 + $0xa4] ss:$16 sps:$4 sm:$0xff]   ;;  %v5038_v5 = vld [vmem:[#allocation3 + $0xac] ss:$16 sps:$4 sm:$0xff]  }
 0x272   :  { %1537 = vmatprep.subr.bf16.mxu0 %v4543_v6  ;;  %1578 = vmatprep.subr.bf16.mxu1 %v4545_v7  ;;  %5894 = vst [vmem:[#allocation6_spill] sm:$0xff] %v5038_v5  ;;  %v5041_v6 = vld [vmem:[#allocation3 + $0xa0] ss:$16 sps:$4 sm:$0xff]   ;;  %v5044_v7 = vld [vmem:[#allocation3 + $0xa8] ss:$16 sps:$4 sm:$0xff]  }
 0x273   :  { %5895 = vst [vmem:[#allocation7_spill] sm:$0xff] %v5041_v6  ;;  %5896 = vst [vmem:[#allocation8_spill] sm:$0xff] %v5044_v7 }
 0x275   :  { %1538 = vmatpush1.bf16.msra.mxu0 %v4549_v8  ;;  %1579 = vmatpush1.bf16.msra.mxu1 %v4551_v9  ;;  %v5047_v8 = vld [vmem:[#allocation3 + $0xc4] ss:$16 sps:$4 sm:$0xff]   ;;  %v5050_v9 = vld [vmem:[#allocation3 + $0xcc] ss:$16 sps:$4 sm:$0xff]  }
 0x276   :  { %1539 = vmatprep.subr.bf16.mxu0 %v4555_v10  ;;  %1580 = vmatprep.subr.bf16.mxu1 %v5860_v41  ;;  %5897 = vst [vmem:[#allocation9_spill] sm:$0xff] %v5047_v8  ;;  %5898 = vst [vmem:[#allocation10_spill] sm:$0xff] %v5050_v9  ;;  %v5053_v10 = vld [vmem:[#allocation3 + $0xc0] ss:$16 sps:$4 sm:$0xff]   ;;  %v5074_v41 = vld [vmem:[#allocation3 + $0x10c] ss:$16 sps:$4 sm:$0xff]  }
 0x277   :  { %5899 = vst [vmem:[#allocation11_spill] sm:$0xff] %v5053_v10  ;;  %5906 = vst [vmem:[#allocation18_spill] sm:$0xff] %v5074_v41 }
 0x279   :  { %1540 = vmatpush1.bf16.msra.mxu0 %v4561_v14  ;;  %1581 = vmatpush1.bf16.msra.mxu1 %v4563_v15  ;;  %v5056_v14 = vld [vmem:[#allocation3 + $0xc8] ss:$16 sps:$4 sm:$0xff]   ;;  %v5059_v15 = vld [vmem:[#allocation3 + $0xe4] ss:$16 sps:$4 sm:$0xff]  }
 0x27a   :  { %1541 = vmatprep.subr.bf16.mxu0 %v4567_v24  ;;  %1582 = vmatprep.subr.bf16.mxu1 %v4569_v33  ;;  %5900 = vst [vmem:[#allocation12_spill] sm:$0xff] %v5056_v14  ;;  %5901 = vst [vmem:[#allocation13_spill] sm:$0xff] %v5059_v15  ;;  %v5062_v24 = vld [vmem:[#allocation3 + $0xec] ss:$16 sps:$4 sm:$0xff]   ;;  %v5065_v33 = vld [vmem:[#allocation3 + $0xe0] ss:$16 sps:$4 sm:$0xff]  }
 0x27b   :  { %v3939_v59 = vpop.eup %3938  ;;  %5902 = vst [vmem:[#allocation14_spill] sm:$0xff] %v5062_v24  ;;  %5903 = vst [vmem:[#allocation15_spill] sm:$0xff] %v5065_v33 }
 0x27c   :  { %v1406_v60 = vmul.f32 %v3939_v59, %v3937_v58 }
 0x27d   :  { %1542 = vmatpush1.bf16.msra.mxu0 %v4573_v42  ;;  %1583 = vmatpush1.bf16.msra.mxu1 %v4575_v0  ;;  %v5890_v0 = vld [vmem:[#allocation23_spill] sm:$0xff] }
 0x27e   :  { %v1526_v61 = vpack.c.bf16 %v1406_v60, %v1406_v60  ;;  %1642 = vmatprep.subr.bf16.mxu0 %v4901_v20  ;;  %1683 = vmatprep.subr.bf16.mxu1 %v4904_v47  ;;  %v5068_v42 = vld [vmem:[#allocation3 + $0xe8] ss:$16 sps:$4 sm:$0xff]  }
 0x27f   :  { %5904 = vst [vmem:[#allocation16_spill] sm:$0xff] %v5068_v42 }
 0x280   :  { %1560 = vmatmul.mubr.bf16.vlgmr.msra.gmra.mrb[52].mxu0 %v1526_v61  ;;  %1601 = vmatmul.mubr.bf16.vlgmr.msra.gmra.mrb[52].mxu1 %v1526_v61 }
 0x281   :  { %1643 = vmatpush1.bf16.msra.mxu0 %v4907_v23  ;;  %1684 = vmatpush1.bf16.msra.mxu1 %v4910_v16 }
 0x282   :  { %1644 = vmatprep.subr.bf16.mxu0 %v4913_v49  ;;  %1685 = vmatprep.subr.bf16.mxu1 %v4916_v45 }
 0x283   :  { %1674 = vmatprep.mubr.bf16.mxu0 %v5799_v13  ;;  %1715 = vmatprep.mubr.bf16.mxu1 %v5799_v13 }
 0x285   :  { %1645 = vmatpush1.bf16.msra.mxu0 %v4921_v19  ;;  %1686 = vmatpush1.bf16.msra.mxu1 %v4924_v27 }
 0x286   :  { %1646 = vmatprep.subr.bf16.mxu0 %v4927_v48  ;;  %1687 = vmatprep.subr.bf16.mxu1 %v4930_v18 }
 0x289   :  { %1647 = vmatpush1.bf16.msra.mxu0 %v5890_v0  ;;  %1688 = vmatpush1.bf16.msra.mxu1 %v5891_v62 }
 0x28a   :  { %1648 = vmatprep.subr.bf16.mxu0 %v5892_v63  ;;  %1689 = vmatprep.subr.bf16.mxu1 %v5893_v1 }
 0x28d   :  { %1649 = vmatpush1.bf16.msra.mxu0 %v5029_v2  ;;  %1690 = vmatpush1.bf16.msra.mxu1 %v5032_v3 }
 0x28e   :  { %1650 = vmatprep.subr.bf16.mxu0 %v5035_v4  ;;  %1691 = vmatprep.subr.bf16.mxu1 %v5038_v5 }
 0x291   :  { %1651 = vmatpush1.bf16.msra.mxu0 %v5041_v6  ;;  %1692 = vmatpush1.bf16.msra.mxu1 %v5044_v7 }
 0x292   :  { %1652 = vmatprep.subr.bf16.mxu0 %v5047_v8  ;;  %1693 = vmatprep.subr.bf16.mxu1 %v5050_v9 }
 0x295   :  { %1653 = vmatpush1.bf16.msra.mxu0 %v5053_v10  ;;  %1694 = vmatpush1.bf16.msra.mxu1 %v5056_v14 }
 0x296   :  { %1654 = vmatprep.subr.bf16.mxu0 %v5059_v15  ;;  %1695 = vmatprep.subr.bf16.mxu1 %v5062_v24 }
 0x299   :  { %1655 = vmatpush1.bf16.msra.mxu0 %v5065_v33  ;;  %1696 = vmatpush1.bf16.msra.mxu1 %v5068_v42 }
 0x29a   :  { %1656 = vmatprep.subr.bf16.mxu0 %v5071_v46  ;;  %1697 = vmatprep.subr.bf16.mxu1 %v5074_v41 }
 0x29d   :  { %1657 = vmatpush1.bf16.msra.mxu0 %v5077_v44  ;;  %1698 = vmatpush1.bf16.msra.mxu1 %v5080_v22 }
 0x29e   :  { %1757 = vmatprep.subr.bf16.mxu0 %v5083_v26  ;;  %1798 = vmatprep.subr.bf16.mxu1 %v5086_v21 }
 0x333   :  { %v1446_v39 = vpop.f32.mrb[48].mxu0  ;;  %v1487_v12 = vpop.f32.mrb[48].mxu1 }
 0x334   :  { %v1494_v50 = vadd.f32 %v1446_v39, %v5911_v35  ;;  %v1496_v17 = vadd.f32 %v1487_v12, %v5912_v43  ;;  %v1448_v37 = vpop.f32.mrb[49].mxu0  ;;  %v1489_v29 = vpop.f32.mrb[49].mxu1 }
 0x335   :  { %v1495_v30 = vadd.f32 %v1448_v37, %v5913_v28  ;;  %v1497_v32 = vadd.f32 %v1489_v29, %v5914_v40  ;;  %v1450_v34 = vpop.f32.mrb[50].mxu0  ;;  %v1491_v36 = vpop.f32.mrb[50].mxu1  ;;  %v5916_v28 = vld [vmem:[#allocation57_spill] sm:$0xff] }
 0x336   :  { %v3482_v38 = vmul.f32 -1.442695, %v1494_v50  ;;  %v1451_v11 = vpop.f32.mrb[51].mxu0  ;;  %v1492_v51 = vpop.f32.mrb[51].mxu1  ;;  %v3484_v52 = vmul.f32 -1.442695, %v1496_v17 }
 0x337   :  { %v3483_v25 = vmul.f32 -1.442695, %v1495_v30  ;;  %v5915_v17 = vld [vmem:[#allocation56_spill] sm:$0xff]  ;;  %v5917_v34 = vld [vmem:[#allocation58_spill] sm:$0xff] }
 0x338   :  { %3940 = vpow2.f32 %v3482_v38  ;;  %v5918_v38 = vld [vmem:[#allocation59_spill] sm:$0xff] }
 0x339   :  { %3942 = vpow2.f32 %v3483_v25 }
 0x33a   :  { %3944 = vtanh.f32 %v1497_v32 }
 0x33b   :  { %3946 = vpow2.f32 %v3484_v52 }
 0x342   :  { %v3941_v53 = vpop.eup %3940 }
 0x343   :  { %v1507_v54 = vadd.f32 1.0, %v3941_v53  ;;  %v3943_v55 = vpop.eup %3942 }
 0x344   :  { %v1508_v56 = vadd.f32 1.0, %v3943_v55  ;;  %v3945_v58 = vpop.eup %3944 }
 0x345   :  { %3948 = vrcp.f32 %v1507_v54  ;;  %v3947_v59 = vpop.eup %3946 }
 0x346   :  { %3950 = vrcp.f32 %v1508_v56  ;;  %v1509_v12 = vadd.f32 1.0, %v3947_v59 }
 0x348   :  { %3952 = vrcp.f32 %v1509_v12 }
 0x34f   :  { %v3949_v60 = vpop.eup %3948 }
 0x350   :  { %v1518_v61 = vmul.f32 %v3949_v60, %v3945_v58  ;;  %v3951_v39 = vpop.eup %3950 }
 0x351   :  { %v1517_v35 = vmul.f32 %v3951_v39, %v4970_v31 }
 0x352   :  { %v3953_v55 = vpop.eup %3952 }
 0x353   :  { %v1561_v50 = vpop.f32.mrb[52].mxu0  ;;  %v1602_v43 = vpop.f32.mrb[52].mxu1  ;;  %v5094_v37 = vadd.f32 %v1518_v61, %v1517_v35 }
 0x354   :  { %v1609_v29 = vadd.f32 %v1561_v50, %v5915_v17  ;;  %v1611_v30 = vadd.f32 %v1602_v43, %v5916_v28  ;;  %v1563_v40 = vpop.f32.mrb[53].mxu0  ;;  %v1604_v32 = vpop.f32.mrb[53].mxu1  ;;  %v5101_v50 = vld [vmem:[#allocation3 + $0x140] ss:$16 sps:$4 sm:$0xff]   ;;  %v5104_v43 = vld [vmem:[#allocation3 + $0x148] ss:$16 sps:$4 sm:$0xff]  }
 0x355   :  { %v1610_v36 = vadd.f32 %v1563_v40, %v5917_v34  ;;  %v1612_v11 = vadd.f32 %v1604_v32, %v5918_v38  ;;  %v1565_v51 = vpop.f32.mrb[54].mxu0  ;;  %v1606_v25 = vpop.f32.mrb[54].mxu1  ;;  %3954 = vtanh.f32 %v5094_v37  ;;  %v5107_v17 = vld [vmem:[#allocation3 + $0x164] ss:$16 sps:$4 sm:$0xff]   ;;  %v5115_v28 = vld [vmem:[#allocation3 + $0x160] ss:$16 sps:$4 sm:$0xff]  }
 0x356   :  { %v3485_v31 = vmul.f32 -1.442695, %v1609_v29  ;;  %v1566_v52 = vpop.f32.mrb[55].mxu0  ;;  %v1607_v53 = vpop.f32.mrb[55].mxu1  ;;  %v3487_v58 = vmul.f32 -1.442695, %v1611_v30 }
 0x357   :  { %v3486_v54 = vmul.f32 -1.442695, %v1610_v36  ;;  %v5110_v29 = vld [vmem:[#allocation3 + $0x16c] ss:$16 sps:$4 sm:$0xff]   ;;  %v5118_v30 = vld [vmem:[#allocation3 + $0x168] ss:$16 sps:$4 sm:$0xff]  }
 0x358   :  { %3956 = vpow2.f32 %v3485_v31  ;;  %v5121_v40 = vld [vmem:[#allocation3 + $0x184] ss:$16 sps:$4 sm:$0xff]   ;;  %v5124_v32 = vld [vmem:[#allocation3 + $0x18c] ss:$16 sps:$4 sm:$0xff]   ;;  %v5127_v38 = vld [vmem:[#allocation3 + $0x180] ss:$16 sps:$4 sm:$0xff]  }
 0x359   :  { %3958 = vpow2.f32 %v3486_v54  ;;  %v5133_v25 = vld [vmem:[#allocation3 + $0x1a4] ss:$16 sps:$4 sm:$0xff]   ;;  %v5136_v31 = vld [vmem:[#allocation3 + $0x1ac] ss:$16 sps:$4 sm:$0xff]  }
 0x35a   :  { %3960 = vtanh.f32 %v1612_v11  ;;  %v5130_v11 = vld [vmem:[#allocation3 + $0x188] ss:$16 sps:$4 sm:$0xff]  }
 0x35b   :  { %3962 = vpow2.f32 %v3487_v58  ;;  %v5143_v58 = vld [vmem:[#allocation3 + $0x1a8] ss:$16 sps:$4 sm:$0xff]  }
 0x35f   :  { %v3955_v56 = vpop.eup %3954 }
 0x360   :  { %v1521_v59 = vmul.f32 %v3955_v56, %v3953_v55  ;;  %v5140_v56 = vld [vmem:[#allocation3 + $0x1a0] ss:$16 sps:$4 sm:$0xff]  }
 0x362   :  { %v3957_v60 = vpop.eup %3956  ;;  %v1641_v39 = vpack.c.bf16 %v1521_v59, %v1521_v59  ;;  %v5146_v59 = vld [vmem:[#allocation3 + $0x1c4] ss:$16 sps:$4 sm:$0xff]  }
 0x363   :  { %v1622_v61 = vadd.f32 1.0, %v3957_v60  ;;  %v3959_v12 = vpop.eup %3958  ;;  %v5149_v60 = vld [vmem:[#allocation3 + $0x1cc] ss:$16 sps:$4 sm:$0xff]  }
 0x364   :  { %v1623_v35 = vadd.f32 1.0, %v3959_v12  ;;  %1675 = vmatmul.mubr.bf16.vlgmr.msra.gmra.mrb[56].mxu0 %v1641_v39  ;;  %1716 = vmatmul.mubr.bf16.vlgmr.msra.gmra.mrb[56].mxu1 %v1641_v39  ;;  %v3961_v34 = vpop.eup %3960  ;;  %v5158_v39 = vld [vmem:[#allocation3 + $0x1c8] ss:$16 sps:$4 sm:$0xff]   ;;  %v5161_v12 = vld [vmem:[#allocation3 + $0x1e4] ss:$16 sps:$4 sm:$0xff]  }
 0x365   :  { %3964 = vrcp.f32 %v1622_v61  ;;  %1758 = vmatpush1.bf16.msra.mxu0 %v5101_v50  ;;  %1799 = vmatpush1.bf16.msra.mxu1 %v5104_v43  ;;  %v3963_v36 = vpop.eup %3962 }
 0x366   :  { %3966 = vrcp.f32 %v1623_v35  ;;  %1759 = vmatprep.subr.bf16.mxu0 %v5107_v17  ;;  %1800 = vmatprep.subr.bf16.mxu1 %v5110_v29  ;;  %v1624_v54 = vadd.f32 1.0, %v3963_v36  ;;  %v5164_v35 = vld [vmem:[#allocation3 + $0x1ec] ss:$16 sps:$4 sm:$0xff]   ;;  %v5170_v36 = vld [vmem:[#allocation3 + $0x1e8] ss:$16 sps:$4 sm:$0xff]  }
 0x367   :  { %1789 = vmatprep.mubr.bf16.mxu0 %v5799_v13  ;;  %1830 = vmatprep.mubr.bf16.mxu1 %v5799_v13  ;;  %5919 = vst [vmem:[#allocation24_spill] sm:$0xff] %v5164_v35  ;;  %5921 = vst [vmem:[#allocation26_spill] sm:$0xff] %v5170_v36 }
 0x368   :  { %3968 = vrcp.f32 %v1624_v54  ;;  %v5182_v54 = vld [vmem:[#allocation3 + $0x208] ss:$16 sps:$4 sm:$0xff]  }
 0x369   :  { %1760 = vmatpush1.bf16.msra.mxu0 %v5115_v28  ;;  %1801 = vmatpush1.bf16.msra.mxu1 %v5118_v30  ;;  %5925 = vst [vmem:[#allocation54_spill] sm:$0xff] %v5182_v54 }
 0x36a   :  { %1761 = vmatprep.subr.bf16.mxu0 %v5121_v40  ;;  %1802 = vmatprep.subr.bf16.mxu1 %v5124_v32 }
 0x36d   :  { %1762 = vmatpush1.bf16.msra.mxu0 %v5127_v38  ;;  %1803 = vmatpush1.bf16.msra.mxu1 %v5130_v11 }
 0x36e   :  { %1763 = vmatprep.subr.bf16.mxu0 %v5133_v25  ;;  %1804 = vmatprep.subr.bf16.mxu1 %v5136_v31 }
 0x36f   :  { %v3965_v51 = vpop.eup %3964 }
 0x370   :  { %v1633_v52 = vmul.f32 %v3965_v51, %v3961_v34  ;;  %v3967_v53 = vpop.eup %3966  ;;  %v5167_v34 = vld [vmem:[#allocation3 + $0x1e0] ss:$16 sps:$4 sm:$0xff]   ;;  %v5173_v51 = vld [vmem:[#allocation3 + $0x204] ss:$16 sps:$4 sm:$0xff]  }
 0x371   :  { %v1632_v55 = vmul.f32 %v3967_v53, %v4996_v57  ;;  %1764 = vmatpush1.bf16.msra.mxu0 %v5140_v56  ;;  %1805 = vmatpush1.bf16.msra.mxu1 %v5143_v58  ;;  %v5155_v57 = vld [vmem:[#allocation3 + $0x1c0] ss:$16 sps:$4 sm:$0xff]   ;;  %5920 = vst [vmem:[#allocation25_spill] sm:$0xff] %v5167_v34  ;;  %5922 = vst [vmem:[#allocation27_spill] sm:$0xff] %v5173_v51 }
 0x372   :  { %1765 = vmatprep.subr.bf16.mxu0 %v5146_v59  ;;  %1806 = vmatprep.subr.bf16.mxu1 %v5149_v60  ;;  %v5179_v53 = vld [vmem:[#allocation3 + $0x200] ss:$16 sps:$4 sm:$0xff]  }
 0x373   :  { %v5152_v61 = vadd.f32 %v1633_v52, %v1632_v55  ;;  %v5176_v52 = vld [vmem:[#allocation3 + $0x20c] ss:$16 sps:$4 sm:$0xff]   ;;  %5924 = vst [vmem:[#allocation53_spill] sm:$0xff] %v5179_v53  ;;  %v3969_v55 = vpop.eup %3968 }
 0x374   :  { %5923 = vst [vmem:[#allocation52_spill] sm:$0xff] %v5176_v52 }
 0x375   :  { %3970 = vtanh.f32 %v5152_v61  ;;  %1766 = vmatpush1.bf16.msra.mxu0 %v5155_v57  ;;  %1807 = vmatpush1.bf16.msra.mxu1 %v5158_v39 }
 0x376   :  { %1767 = vmatprep.subr.bf16.mxu0 %v5161_v12  ;;  %1808 = vmatprep.subr.bf16.mxu1 %v5164_v35 }
 0x379   :  { %1768 = vmatpush1.bf16.msra.mxu0 %v5167_v34  ;;  %1809 = vmatpush1.bf16.msra.mxu1 %v5170_v36  ;;  %v5185_v34 = vld [vmem:[#allocation3 + $0x224] ss:$16 sps:$4 sm:$0xff]   ;;  %v5188_v36 = vld [vmem:[#allocation3 + $0x22c] ss:$16 sps:$4 sm:$0xff]  }
 0x37a   :  { %1769 = vmatprep.subr.bf16.mxu0 %v5173_v51  ;;  %1810 = vmatprep.subr.bf16.mxu1 %v5176_v52  ;;  %v5191_v52 = vld [vmem:[#allocation3 + $0x220] ss:$16 sps:$4 sm:$0xff]  }
 0x37d   :  { %1770 = vmatpush1.bf16.msra.mxu0 %v5179_v53  ;;  %1811 = vmatpush1.bf16.msra.mxu1 %v5182_v54  ;;  %v5194_v53 = vld [vmem:[#allocation3 + $0x228] ss:$16 sps:$4 sm:$0xff]  }
 0x37e   :  { %1771 = vmatprep.subr.bf16.mxu0 %v5185_v34  ;;  %1812 = vmatprep.subr.bf16.mxu1 %v5188_v36 }
 0x37f   :  { %v3971_v51 = vpop.eup %3970 }
 0x380   :  { %v1636_v35 = vmul.f32 %v3971_v51, %v3969_v55 }
 0x381   :  { %1772 = vmatpush1.bf16.msra.mxu0 %v5191_v52  ;;  %1813 = vmatpush1.bf16.msra.mxu1 %v5194_v53 }
 0x382   :  { %v1756_v54 = vpack.c.bf16 %v1636_v35, %v1636_v35  ;;  %1872 = vmatprep.subr.bf16.mxu0 %v4901_v20  ;;  %1913 = vmatprep.subr.bf16.mxu1 %v4904_v47 }
 0x384   :  { %1790 = vmatmul.mubr.bf16.vlgmr.msra.gmra.mrb[60].mxu0 %v1756_v54  ;;  %1831 = vmatmul.mubr.bf16.vlgmr.msra.gmra.mrb[60].mxu1 %v1756_v54  ;;  %v5926_v54 = vld [vmem:[#allocation32_spill] sm:$0xff] }
 0x385   :  { %1873 = vmatpush1.bf16.msra.mxu0 %v4907_v23  ;;  %1914 = vmatpush1.bf16.msra.mxu1 %v4910_v16 }
 0x386   :  { %1874 = vmatprep.subr.bf16.mxu0 %v4913_v49  ;;  %1915 = vmatprep.subr.bf16.mxu1 %v4916_v45 }
 0x387   :  { %1904 = vmatprep.mubr.bf16.mxu0 %v5799_v13  ;;  %1945 = vmatprep.mubr.bf16.mxu1 %v5799_v13 }
 0x389   :  { %1875 = vmatpush1.bf16.msra.mxu0 %v4921_v19  ;;  %1916 = vmatpush1.bf16.msra.mxu1 %v4924_v27 }
 0x38a   :  { %1876 = vmatprep.subr.bf16.mxu0 %v4927_v48  ;;  %1917 = vmatprep.subr.bf16.mxu1 %v4930_v18 }
 0x38d   :  { %1877 = vmatpush1.bf16.msra.mxu0 %v5890_v0  ;;  %1918 = vmatpush1.bf16.msra.mxu1 %v5891_v62 }
 0x38e   :  { %1878 = vmatprep.subr.bf16.mxu0 %v5892_v63  ;;  %1919 = vmatprep.subr.bf16.mxu1 %v5893_v1 }
 0x391   :  { %1879 = vmatpush1.bf16.msra.mxu0 %v5029_v2  ;;  %1920 = vmatpush1.bf16.msra.mxu1 %v5032_v3 }
 0x392   :  { %1880 = vmatprep.subr.bf16.mxu0 %v5035_v4  ;;  %1921 = vmatprep.subr.bf16.mxu1 %v5038_v5 }
 0x395   :  { %1881 = vmatpush1.bf16.msra.mxu0 %v5041_v6  ;;  %1922 = vmatpush1.bf16.msra.mxu1 %v5044_v7 }
 0x396   :  { %1882 = vmatprep.subr.bf16.mxu0 %v5047_v8  ;;  %1923 = vmatprep.subr.bf16.mxu1 %v5050_v9 }
 0x399   :  { %1883 = vmatpush1.bf16.msra.mxu0 %v5053_v10  ;;  %1924 = vmatpush1.bf16.msra.mxu1 %v5056_v14  ;;  %v5928_v14 = vld [vmem:[#allocation34_spill] sm:$0xff]  ;;  %v5929_v10 = vld [vmem:[#allocation35_spill] sm:$0xff] }
 0x39a   :  { %1884 = vmatprep.subr.bf16.mxu0 %v5059_v15  ;;  %1925 = vmatprep.subr.bf16.mxu1 %v5062_v24  ;;  %v5927_v24 = vld [vmem:[#allocation33_spill] sm:$0xff] }
 0x39d   :  { %1885 = vmatpush1.bf16.msra.mxu0 %v5065_v33  ;;  %1926 = vmatpush1.bf16.msra.mxu1 %v5068_v42 }
 0x39e   :  { %1886 = vmatprep.subr.bf16.mxu0 %v5071_v46  ;;  %1927 = vmatprep.subr.bf16.mxu1 %v5074_v41 }
 0x3a1   :  { %1887 = vmatpush1.bf16.msra.mxu0 %v5077_v44  ;;  %1928 = vmatpush1.bf16.msra.mxu1 %v5080_v22 }
 0x3a2   :  { %1987 = vmatprep.subr.bf16.mxu0 %v5083_v26  ;;  %2028 = vmatprep.subr.bf16.mxu1 %v5086_v21 }
 0x437   :  { %v1676_v35 = vpop.f32.mrb[56].mxu0  ;;  %v1717_v51 = vpop.f32.mrb[56].mxu1 }
 0x438   :  { %v1724_v55 = vadd.f32 %v1676_v35, %v5926_v54  ;;  %v1726_v33 = vadd.f32 %v1717_v51, %v5927_v24  ;;  %v1678_v15 = vpop.f32.mrb[57].mxu0  ;;  %v1719_v42 = vpop.f32.mrb[57].mxu1  ;;  %v5932_v51 = vld [vmem:[#allocation62_spill] sm:$0xff] }
 0x439   :  { %v1725_v46 = vadd.f32 %v1678_v15, %v5928_v14  ;;  %v1727_v41 = vadd.f32 %v1719_v42, %v5929_v10  ;;  %v1680_v9 = vpop.f32.mrb[58].mxu0  ;;  %v1721_v44 = vpop.f32.mrb[58].mxu1 }
 0x43a   :  { %v3488_v8 = vmul.f32 -1.442695, %v1724_v55  ;;  %v1681_v22 = vpop.f32.mrb[59].mxu0  ;;  %v1722_v7 = vpop.f32.mrb[59].mxu1  ;;  %v3490_v21 = vmul.f32 -1.442695, %v1726_v33 }
 0x43b   :  { %v3489_v26 = vmul.f32 -1.442695, %v1725_v46  ;;  %v5930_v33 = vld [vmem:[#allocation60_spill] sm:$0xff]  ;;  %v5933_v55 = vld [vmem:[#allocation63_spill] sm:$0xff] }
 0x43c   :  { %3972 = vpow2.f32 %v3488_v8 }
 0x43d   :  { %3974 = vpow2.f32 %v3489_v26 }
 0x43e   :  { %3976 = vtanh.f32 %v1727_v41  ;;  %v5931_v41 = vld [vmem:[#allocation61_spill] sm:$0xff] }
 0x43f   :  { %3978 = vpow2.f32 %v3490_v21 }
 0x446   :  { %v3973_v6 = vpop.eup %3972 }
 0x447   :  { %v1737_v5 = vadd.f32 1.0, %v3973_v6  ;;  %v3975_v35 = vpop.eup %3974 }
 0x448   :  { %v1738_v24 = vadd.f32 1.0, %v3975_v35  ;;  %v3977_v14 = vpop.eup %3976 }
 0x449   :  { %3980 = vrcp.f32 %v1737_v5  ;;  %v3979_v15 = vpop.eup %3978 }
 0x44a   :  { %3982 = vrcp.f32 %v1738_v24  ;;  %v1739_v44 = vadd.f32 1.0, %v3979_v15 }
 0x44c   :  { %3984 = vrcp.f32 %v1739_v44 }
 0x453   :  { %v3981_v10 = vpop.eup %3980 }
 0x454   :  { %v1748_v9 = vmul.f32 %v3981_v10, %v3977_v14  ;;  %v3983_v42 = vpop.eup %3982 }
 0x455   :  { %v1747_v7 = vmul.f32 %v3983_v42, %v5094_v37 }
 0x456   :  { %v3985_v42 = vpop.eup %3984 }
 0x457   :  { %v1791_v46 = vpop.f32.mrb[60].mxu0  ;;  %v1832_v8 = vpop.f32.mrb[60].mxu1  ;;  %v5238_v22 = vadd.f32 %v1748_v9, %v1747_v7 }
 0x458   :  { %v1839_v6 = vadd.f32 %v1791_v46, %v5930_v33  ;;  %v1841_v26 = vadd.f32 %v1832_v8, %v5931_v41  ;;  %v1793_v21 = vpop.f32.mrb[61].mxu0  ;;  %v1834_v5 = vpop.f32.mrb[61].mxu1 }
 0x459   :  { %v1840_v54 = vadd.f32 %v1793_v21, %v5932_v51  ;;  %v1842_v35 = vadd.f32 %v1834_v5, %v5933_v55  ;;  %v1795_v24 = vpop.f32.mrb[62].mxu0  ;;  %v1836_v14 = vpop.f32.mrb[62].mxu1  ;;  %3986 = vtanh.f32 %v5238_v22 }
 0x45a   :  { %v3491_v37 = vmul.f32 -1.442695, %v1839_v6  ;;  %v1796_v15 = vpop.f32.mrb[63].mxu0  ;;  %v1837_v10 = vpop.f32.mrb[63].mxu1  ;;  %v3493_v46 = vmul.f32 -1.442695, %v1841_v26 }
 0x45b   :  { %v3492_v9 = vmul.f32 -1.442695, %v1840_v54  ;;  %v5936_v15 = vld [vmem:[#allocation26_spill] sm:$0xff]  ;;  %v5937_v10 = vld [vmem:[#allocation27_spill] sm:$0xff] }
 0x45c   :  { %3988 = vpow2.f32 %v3491_v37  ;;  %v5935_v37 = vld [vmem:[#allocation25_spill] sm:$0xff] }
 0x45d   :  { %3990 = vpow2.f32 %v3492_v9  ;;  %v5938_v9 = vld [vmem:[#allocation52_spill] sm:$0xff] }
 0x45e   :  { %3992 = vtanh.f32 %v1842_v35 }
 0x45f   :  { %3994 = vpow2.f32 %v3493_v46 }
 0x463   :  { %v3987_v7 = vpop.eup %3986 }
 0x464   :  { %v1751_v8 = vmul.f32 %v3987_v7, %v3985_v42  ;;  %v5939_v42 = vld [vmem:[#allocation53_spill] sm:$0xff]  ;;  %v5940_v7 = vld [vmem:[#allocation54_spill] sm:$0xff] }
 0x466   :  { %v3989_v33 = vpop.eup %3988  ;;  %v1871_v41 = vpack.c.bf16 %v1751_v8, %v1751_v8 }
 0x467   :  { %v1852_v44 = vadd.f32 1.0, %v3989_v33  ;;  %v3991_v21 = vpop.eup %3990 }
 0x468   :  { %v1853_v5 = vadd.f32 1.0, %v3991_v21  ;;  %1905 = vmatmul.mubr.bf16.vlgmr.msra.gmra.mrb[64].mxu0 %v1871_v41  ;;  %1946 = vmatmul.mubr.bf16.vlgmr.msra.gmra.mrb[64].mxu1 %v1871_v41  ;;  %v3993_v6 = vpop.eup %3992  ;;  %v5955_v41 = vld [vmem:[#allocation20_spill] sm:$0xff]  ;;  %v5956_v21 = vld [vmem:[#allocation21_spill] sm:$0xff] }
 0x469   :  { %3996 = vrcp.f32 %v1852_v44  ;;  %1988 = vmatpush1.bf16.msra.mxu0 %v5101_v50  ;;  %2029 = vmatpush1.bf16.msra.mxu1 %v5104_v43  ;;  %v3995_v26 = vpop.eup %3994 }
 0x46a   :  { %3998 = vrcp.f32 %v1853_v5  ;;  %1989 = vmatprep.subr.bf16.mxu0 %v5107_v17  ;;  %2030 = vmatprep.subr.bf16.mxu1 %v5110_v29  ;;  %v1854_v35 = vadd.f32 1.0, %v3995_v26  ;;  %v5957_v5 = vld [vmem:[#allocation22_spill] sm:$0xff] }
 0x46b   :  { %2019 = vmatprep.mubr.bf16.mxu0 %v5799_v13  ;;  %2060 = vmatprep.mubr.bf16.mxu1 %v5799_v13 }
 0x46c   :  { %4000 = vrcp.f32 %v1854_v35 }
 0x46d   :  { %1990 = vmatpush1.bf16.msra.mxu0 %v5115_v28  ;;  %2031 = vmatpush1.bf16.msra.mxu1 %v5118_v30 }
 0x46e   :  { %1991 = vmatprep.subr.bf16.mxu0 %v5121_v40  ;;  %2032 = vmatprep.subr.bf16.mxu1 %v5124_v32 }
 0x471   :  { %1992 = vmatpush1.bf16.msra.mxu0 %v5127_v38  ;;  %2033 = vmatpush1.bf16.msra.mxu1 %v5130_v11 }
 0x472   :  { %1993 = vmatprep.subr.bf16.mxu0 %v5133_v25  ;;  %2034 = vmatprep.subr.bf16.mxu1 %v5136_v31 }
 0x473   :  { %v3997_v51 = vpop.eup %3996 }
 0x474   :  { %v1863_v54 = vmul.f32 %v3997_v51, %v3993_v6  ;;  %v3999_v55 = vpop.eup %3998  ;;  %v5958_v51 = vld [vmem:[#allocation36_spill] sm:$0xff] }
 0x475   :  { %v1862_v24 = vmul.f32 %v3999_v55, %v5152_v61  ;;  %1994 = vmatpush1.bf16.msra.mxu0 %v5140_v56  ;;  %2035 = vmatpush1.bf16.msra.mxu1 %v5143_v58  ;;  %v5934_v61 = vld [vmem:[#allocation24_spill] sm:$0xff]  ;;  %v5959_v55 = vld [vmem:[#allocation37_spill] sm:$0xff] }
 0x476   :  { %1995 = vmatprep.subr.bf16.mxu0 %v5146_v59  ;;  %2036 = vmatprep.subr.bf16.mxu1 %v5149_v60  ;;  %v4001_v46 = vpop.eup %4000 }
 0x477   :  { %v5264_v14 = vadd.f32 %v1863_v54, %v1862_v24 }
 0x479   :  { %4002 = vtanh.f32 %v5264_v14  ;;  %1996 = vmatpush1.bf16.msra.mxu0 %v5155_v57  ;;  %2037 = vmatpush1.bf16.msra.mxu1 %v5158_v39 }
 0x47a   :  { %1997 = vmatprep.subr.bf16.mxu0 %v5161_v12  ;;  %2038 = vmatprep.subr.bf16.mxu1 %v5934_v61 }
 0x47d   :  { %1998 = vmatpush1.bf16.msra.mxu0 %v5935_v37  ;;  %2039 = vmatpush1.bf16.msra.mxu1 %v5936_v15 }
 0x47e   :  { %1999 = vmatprep.subr.bf16.mxu0 %v5937_v10  ;;  %2040 = vmatprep.subr.bf16.mxu1 %v5938_v9 }
 0x481   :  { %2000 = vmatpush1.bf16.msra.mxu0 %v5939_v42  ;;  %2041 = vmatpush1.bf16.msra.mxu1 %v5940_v7 }
 0x482   :  { %2001 = vmatprep.subr.bf16.mxu0 %v5185_v34  ;;  %2042 = vmatprep.subr.bf16.mxu1 %v5188_v36 }
 0x483   :  { %v4003_v8 = vpop.eup %4002 }
 0x484   :  { %v1866_v33 = vmul.f32 %v4003_v8, %v4001_v46  ;;  %v5960_v8 = vld [vmem:[#allocation38_spill] sm:$0xff] }
 0x485   :  { %2002 = vmatpush1.bf16.msra.mxu0 %v5191_v52  ;;  %2043 = vmatpush1.bf16.msra.mxu1 %v5194_v53 }
 0x486   :  { %v1986_v44 = vpack.c.bf16 %v1866_v33, %v1866_v33  ;;  %2102 = vmatprep.subr.bf16.mxu0 %v4901_v20  ;;  %2143 = vmatprep.subr.bf16.mxu1 %v4904_v47  ;;  %v5941_v20 = vld [vmem:[#allocation6_spill] sm:$0xff]  ;;  %v5942_v47 = vld [vmem:[#allocation7_spill] sm:$0xff] }
 0x488   :  { %2020 = vmatmul.mubr.bf16.vlgmr.msra.gmra.mrb[68].mxu0 %v1986_v44  ;;  %2061 = vmatmul.mubr.bf16.vlgmr.msra.gmra.mrb[68].mxu1 %v1986_v44  ;;  %v5961_v44 = vld [vmem:[#allocation39_spill] sm:$0xff] }
 0x489   :  { %2103 = vmatpush1.bf16.msra.mxu0 %v4907_v23  ;;  %2144 = vmatpush1.bf16.msra.mxu1 %v4910_v16  ;;  %v5943_v23 = vld [vmem:[#allocation8_spill] sm:$0xff]  ;;  %v5944_v16 = vld [vmem:[#allocation9_spill] sm:$0xff] }
 0x48a   :  { %2104 = vmatprep.subr.bf16.mxu0 %v4913_v49  ;;  %2145 = vmatprep.subr.bf16.mxu1 %v4916_v45  ;;  %v5945_v49 = vld [vmem:[#allocation10_spill] sm:$0xff]  ;;  %v5946_v45 = vld [vmem:[#allocation11_spill] sm:$0xff] }
 0x48b   :  { %2134 = vmatprep.mubr.bf16.mxu0 %v5799_v13  ;;  %2175 = vmatprep.mubr.bf16.mxu1 %v5799_v13 }
 0x48d   :  { %2105 = vmatpush1.bf16.msra.mxu0 %v4921_v19  ;;  %2146 = vmatpush1.bf16.msra.mxu1 %v4924_v27  ;;  %v5947_v19 = vld [vmem:[#allocation12_spill] sm:$0xff]  ;;  %v5948_v27 = vld [vmem:[#allocation13_spill] sm:$0xff] }
 0x48e   :  { %2106 = vmatprep.subr.bf16.mxu0 %v4927_v48  ;;  %2147 = vmatprep.subr.bf16.mxu1 %v4930_v18  ;;  %v5949_v48 = vld [vmem:[#allocation14_spill] sm:$0xff]  ;;  %v5950_v18 = vld [vmem:[#allocation15_spill] sm:$0xff] }
 0x491   :  { %2107 = vmatpush1.bf16.msra.mxu0 %v5890_v0  ;;  %2148 = vmatpush1.bf16.msra.mxu1 %v5891_v62  ;;  %v5951_v0 = vld [vmem:[#allocation16_spill] sm:$0xff]  ;;  %v5952_v62 = vld [vmem:[#allocation17_spill] sm:$0xff] }
 0x492   :  { %2108 = vmatprep.subr.bf16.mxu0 %v5892_v63  ;;  %2149 = vmatprep.subr.bf16.mxu1 %v5893_v1  ;;  %v5953_v63 = vld [vmem:[#allocation18_spill] sm:$0xff]  ;;  %v5954_v1 = vld [vmem:[#allocation19_spill] sm:$0xff] }
 0x495   :  { %2109 = vmatpush1.bf16.msra.mxu0 %v5029_v2  ;;  %2150 = vmatpush1.bf16.msra.mxu1 %v5032_v3 }
 0x496   :  { %2110 = vmatprep.subr.bf16.mxu0 %v5035_v4  ;;  %2151 = vmatprep.subr.bf16.mxu1 %v5941_v20 }
 0x499   :  { %2111 = vmatpush1.bf16.msra.mxu0 %v5942_v47  ;;  %2152 = vmatpush1.bf16.msra.mxu1 %v5943_v23 }
 0x49a   :  { %2112 = vmatprep.subr.bf16.mxu0 %v5944_v16  ;;  %2153 = vmatprep.subr.bf16.mxu1 %v5945_v49 }
 0x49d   :  { %2113 = vmatpush1.bf16.msra.mxu0 %v5946_v45  ;;  %2154 = vmatpush1.bf16.msra.mxu1 %v5947_v19 }
 0x49e   :  { %2114 = vmatprep.subr.bf16.mxu0 %v5948_v27  ;;  %2155 = vmatprep.subr.bf16.mxu1 %v5949_v48 }
 0x4a1   :  { %2115 = vmatpush1.bf16.msra.mxu0 %v5950_v18  ;;  %2156 = vmatpush1.bf16.msra.mxu1 %v5951_v0 }
 0x4a2   :  { %2116 = vmatprep.subr.bf16.mxu0 %v5952_v62  ;;  %2157 = vmatprep.subr.bf16.mxu1 %v5953_v63 }
 0x4a5   :  { %2117 = vmatpush1.bf16.msra.mxu0 %v5954_v1  ;;  %2158 = vmatpush1.bf16.msra.mxu1 %v5955_v41 }
 0x4a6   :  { %2217 = vmatprep.subr.bf16.mxu0 %v5956_v21  ;;  %2258 = vmatprep.subr.bf16.mxu1 %v5957_v5 }
 0x53b   :  { %v1906_v6 = vpop.f32.mrb[64].mxu0  ;;  %v1947_v26 = vpop.f32.mrb[64].mxu1 }
 0x53c   :  { %v1954_v54 = vadd.f32 %v1906_v6, %v5958_v51  ;;  %v1956_v35 = vadd.f32 %v1947_v26, %v5959_v55  ;;  %v1908_v24 = vpop.f32.mrb[65].mxu0  ;;  %v1949_v46 = vpop.f32.mrb[65].mxu1 }
 0x53d   :  { %v1955_v33 = vadd.f32 %v1908_v24, %v5960_v8  ;;  %v1957_v63 = vadd.f32 %v1949_v46, %v5961_v44  ;;  %v1910_v62 = vpop.f32.mrb[66].mxu0  ;;  %v1951_v1 = vpop.f32.mrb[66].mxu1  ;;  %v5964_v8 = vld [vmem:[#allocation66_spill] sm:$0xff]  ;;  %v5965_v44 = vld [vmem:[#allocation67_spill] sm:$0xff] }
 0x53e   :  { %v3494_v0 = vmul.f32 -1.442695, %v1954_v54  ;;  %v1911_v41 = vpop.f32.mrb[67].mxu0  ;;  %v1952_v18 = vpop.f32.mrb[67].mxu1  ;;  %v3496_v5 = vmul.f32 -1.442695, %v1956_v35 }
 0x53f   :  { %v3495_v21 = vmul.f32 -1.442695, %v1955_v33  ;;  %v5962_v35 = vld [vmem:[#allocation64_spill] sm:$0xff] }
 0x540   :  { %4004 = vpow2.f32 %v3494_v0 }
 0x541   :  { %4006 = vpow2.f32 %v3495_v21 }
 0x542   :  { %4008 = vtanh.f32 %v1957_v63  ;;  %v5963_v63 = vld [vmem:[#allocation65_spill] sm:$0xff] }
 0x543   :  { %4010 = vpow2.f32 %v3496_v5 }
 0x54a   :  { %v4005_v48 = vpop.eup %4004 }
 0x54b   :  { %v1967_v27 = vadd.f32 1.0, %v4005_v48  ;;  %v4007_v6 = vpop.eup %4006 }
 0x54c   :  { %v1968_v26 = vadd.f32 1.0, %v4007_v6  ;;  %v4009_v51 = vpop.eup %4008 }
 0x54d   :  { %4012 = vrcp.f32 %v1967_v27  ;;  %v4011_v55 = vpop.eup %4010 }
 0x54e   :  { %4014 = vrcp.f32 %v1968_v26  ;;  %v1969_v54 = vadd.f32 1.0, %v4011_v55 }
 0x550   :  { %4016 = vrcp.f32 %v1969_v54 }
 0x557   :  { %v4013_v24 = vpop.eup %4012 }
 0x558   :  { %v1978_v62 = vmul.f32 %v4013_v24, %v4009_v51  ;;  %v4015_v1 = vpop.eup %4014 }
 0x559   :  { %v1977_v18 = vmul.f32 %v4015_v1, %v5238_v22 }
 0x55a   :  { %v4017_v1 = vpop.eup %4016 }
 0x55b   :  { %v2021_v41 = vpop.f32.mrb[68].mxu0  ;;  %v2062_v0 = vpop.f32.mrb[68].mxu1  ;;  %v5322_v21 = vadd.f32 %v1978_v62, %v1977_v18 }
 0x55c   :  { %v2069_v48 = vadd.f32 %v2021_v41, %v5962_v35  ;;  %v2071_v46 = vadd.f32 %v2062_v0, %v5963_v63  ;;  %v2023_v5 = vpop.f32.mrb[69].mxu0  ;;  %v2064_v27 = vpop.f32.mrb[69].mxu1 }
 0x55d   :  { %v2070_v33 = vadd.f32 %v2023_v5, %v5964_v8  ;;  %v2072_v6 = vadd.f32 %v2064_v27, %v5965_v44  ;;  %v2025_v26 = vpop.f32.mrb[70].mxu0  ;;  %v2066_v51 = vpop.f32.mrb[70].mxu1  ;;  %4018 = vtanh.f32 %v5322_v21 }
 0x55e   :  { %v3497_v22 = vmul.f32 -1.442695, %v2069_v48  ;;  %v2026_v55 = vpop.f32.mrb[71].mxu0  ;;  %v2067_v24 = vpop.f32.mrb[71].mxu1  ;;  %v3499_v41 = vmul.f32 -1.442695, %v2071_v46 }
 0x55f   :  { %v3498_v62 = vmul.f32 -1.442695, %v2070_v33 }
 0x560   :  { %4020 = vpow2.f32 %v3497_v22 }
 0x561   :  { %4022 = vpow2.f32 %v3498_v62  ;;  %v5365_v62 = vld [vmem:[#allocation3 + $0x24] ss:$16 sps:$4 sm:$0xff]  }
 0x562   :  { %4024 = vtanh.f32 %v2072_v6 }
 0x563   :  { %4026 = vpow2.f32 %v3499_v41  ;;  %v5374_v41 = vld [vmem:[#allocation3 + $0x28] ss:$16 sps:$4 sm:$0xff]  }
 0x567   :  { %v4019_v18 = vpop.eup %4018 }
 0x568   :  { %v1981_v0 = vmul.f32 %v4019_v18, %v4017_v1  ;;  %v5368_v1 = vld [vmem:[#allocation3 + $0x2c] ss:$16 sps:$4 sm:$0xff]   ;;  %v5371_v18 = vld [vmem:[#allocation3 + $0x20] ss:$16 sps:$4 sm:$0xff]  }
 0x56a   :  { %v4021_v35 = vpop.eup %4020  ;;  %v2101_v63 = vpack.c.bf16 %v1981_v0, %v1981_v0  ;;  %v5377_v0 = vld [vmem:[#allocation3 + $0x44] ss:$16 sps:$4 sm:$0xff]  }
 0x56b   :  { %v2082_v54 = vadd.f32 1.0, %v4021_v35  ;;  %v4023_v5 = vpop.eup %4022  ;;  %v5380_v35 = vld [vmem:[#allocation3 + $0x4c] ss:$16 sps:$4 sm:$0xff]  }
 0x56c   :  { %v2083_v27 = vadd.f32 1.0, %v4023_v5  ;;  %2135 = vmatmul.mubr.bf16.vlgmr.msra.gmra.mrb[72].mxu0 %v2101_v63  ;;  %2176 = vmatmul.mubr.bf16.vlgmr.msra.gmra.mrb[72].mxu1 %v2101_v63  ;;  %v4025_v48 = vpop.eup %4024  ;;  %v5388_v63 = vld [vmem:[#allocation3 + $0x48] ss:$16 sps:$4 sm:$0xff]   ;;  %v5391_v5 = vld [vmem:[#allocation3 + $0x64] ss:$16 sps:$4 sm:$0xff]  }
 0x56d   :  { %4028 = vrcp.f32 %v2082_v54  ;;  %2218 = vmatpush1.bf16.msra.mxu0 %v5101_v50  ;;  %2259 = vmatpush1.bf16.msra.mxu1 %v5104_v43  ;;  %v4027_v46 = vpop.eup %4026  ;;  %v5385_v54 = vld [vmem:[#allocation3 + $0x40] ss:$16 sps:$4 sm:$0xff]  }
 0x56e   :  { %4030 = vrcp.f32 %v2083_v27  ;;  %2219 = vmatprep.subr.bf16.mxu0 %v5107_v17  ;;  %2260 = vmatprep.subr.bf16.mxu1 %v5110_v29  ;;  %v2084_v6 = vadd.f32 1.0, %v4027_v46  ;;  %v5394_v27 = vld [vmem:[#allocation3 + $0x6c] ss:$16 sps:$4 sm:$0xff]   ;;  %v5400_v46 = vld [vmem:[#allocation3 + $0x68] ss:$16 sps:$4 sm:$0xff]  }
 0x56f   :  { %2249 = vmatprep.mubr.bf16.mxu0 %v5799_v13  ;;  %2290 = vmatprep.mubr.bf16.mxu1 %v5799_v13  ;;  %5967 = vst [vmem:[#allocation23_spill] sm:$0xff] %v5400_v46 }
 0x570   :  { %4032 = vrcp.f32 %v2084_v6 }
 0x571   :  { %2220 = vmatpush1.bf16.msra.mxu0 %v5115_v28  ;;  %2261 = vmatpush1.bf16.msra.mxu1 %v5118_v30 }
 0x572   :  { %2221 = vmatprep.subr.bf16.mxu0 %v5121_v40  ;;  %2262 = vmatprep.subr.bf16.mxu1 %v5124_v32 }
 0x575   :  { %2222 = vmatpush1.bf16.msra.mxu0 %v5127_v38  ;;  %2263 = vmatpush1.bf16.msra.mxu1 %v5130_v11 }
 0x576   :  { %2223 = vmatprep.subr.bf16.mxu0 %v5133_v25  ;;  %2264 = vmatprep.subr.bf16.mxu1 %v5136_v31 }
 0x577   :  { %v4029_v8 = vpop.eup %4028 }
 0x578   :  { %v2093_v33 = vmul.f32 %v4029_v8, %v4025_v48  ;;  %v4031_v44 = vpop.eup %4030  ;;  %v5397_v48 = vld [vmem:[#allocation3 + $0x60] ss:$16 sps:$4 sm:$0xff]   ;;  %v5403_v8 = vld [vmem:[#allocation3 + $0x84] ss:$16 sps:$4 sm:$0xff]  }
 0x579   :  { %v2092_v26 = vmul.f32 %v4031_v44, %v5264_v14  ;;  %2224 = vmatpush1.bf16.msra.mxu0 %v5140_v56  ;;  %2265 = vmatpush1.bf16.msra.mxu1 %v5143_v58  ;;  %5966 = vst [vmem:[#allocation55_spill] sm:$0xff] %v5397_v48  ;;  %5968 = vst [vmem:[#allocation80_spill] sm:$0xff] %v5403_v8  ;;  %v5970_v44 = vld [vmem:[#allocation13_spill] sm:$0xff] }
 0x57a   :  { %2225 = vmatprep.subr.bf16.mxu0 %v5146_v59  ;;  %2266 = vmatprep.subr.bf16.mxu1 %v5149_v60  ;;  %v4033_v14 = vpop.eup %4032 }
 0x57b   :  { %v5348_v51 = vadd.f32 %v2093_v33, %v2092_v26  ;;  %v5406_v33 = vld [vmem:[#allocation3 + $0x8c] ss:$16 sps:$4 sm:$0xff]   ;;  %v5980_v26 = vld [vmem:[#allocation40_spill] sm:$0xff] }
 0x57c   :  { %5969 = vst [vmem:[#allocation81_spill] sm:$0xff] %v5406_v33 }
 0x57d   :  { %4034 = vtanh.f32 %v5348_v51  ;;  %2226 = vmatpush1.bf16.msra.mxu0 %v5155_v57  ;;  %2267 = vmatpush1.bf16.msra.mxu1 %v5158_v39 }
 0x57e   :  { %2227 = vmatprep.subr.bf16.mxu0 %v5161_v12  ;;  %2268 = vmatprep.subr.bf16.mxu1 %v5934_v61 }
 0x581   :  { %2228 = vmatpush1.bf16.msra.mxu0 %v5935_v37  ;;  %2269 = vmatpush1.bf16.msra.mxu1 %v5936_v15 }
 0x582   :  { %2229 = vmatprep.subr.bf16.mxu0 %v5937_v10  ;;  %2270 = vmatprep.subr.bf16.mxu1 %v5938_v9 }
 0x585   :  { %2230 = vmatpush1.bf16.msra.mxu0 %v5939_v42  ;;  %2271 = vmatpush1.bf16.msra.mxu1 %v5940_v7 }
 0x586   :  { %2231 = vmatprep.subr.bf16.mxu0 %v5185_v34  ;;  %2272 = vmatprep.subr.bf16.mxu1 %v5188_v36 }
 0x587   :  { %v4035_v22 = vpop.eup %4034 }
 0x588   :  { %v2096_v55 = vmul.f32 %v4035_v22, %v4033_v14  ;;  %v5981_v22 = vld [vmem:[#allocation41_spill] sm:$0xff] }
 0x589   :  { %2232 = vmatpush1.bf16.msra.mxu0 %v5191_v52  ;;  %2273 = vmatpush1.bf16.msra.mxu1 %v5194_v53 }
 0x58a   :  { %v2216_v24 = vpack.c.bf16 %v2096_v55, %v2096_v55  ;;  %2332 = vmatprep.subr.bf16.mxu0 %v5365_v62  ;;  %2373 = vmatprep.subr.bf16.mxu1 %v5368_v1 }
 0x58c   :  { %2250 = vmatmul.mubr.bf16.vlgmr.msra.gmra.mrb[76].mxu0 %v2216_v24  ;;  %2291 = vmatmul.mubr.bf16.vlgmr.msra.gmra.mrb[76].mxu1 %v2216_v24 }
 0x58d   :  { %2333 = vmatpush1.bf16.msra.mxu0 %v5371_v18  ;;  %2374 = vmatpush1.bf16.msra.mxu1 %v5374_v41 }
 0x58e   :  { %2334 = vmatprep.subr.bf16.mxu0 %v5377_v0  ;;  %2375 = vmatprep.subr.bf16.mxu1 %v5380_v35 }
 0x58f   :  { %2364 = vmatprep.mubr.bf16.mxu0 %v5799_v13  ;;  %2405 = vmatprep.mubr.bf16.mxu1 %v5799_v13 }
 0x591   :  { %2335 = vmatpush1.bf16.msra.mxu0 %v5385_v54  ;;  %2376 = vmatpush1.bf16.msra.mxu1 %v5388_v63 }
 0x592   :  { %2336 = vmatprep.subr.bf16.mxu0 %v5391_v5  ;;  %2377 = vmatprep.subr.bf16.mxu1 %v5394_v27 }
 0x595   :  { %2337 = vmatpush1.bf16.msra.mxu0 %v5397_v48  ;;  %2378 = vmatpush1.bf16.msra.mxu1 %v5400_v46 }
 0x596   :  { %2338 = vmatprep.subr.bf16.mxu0 %v5403_v8  ;;  %2379 = vmatprep.subr.bf16.mxu1 %v5406_v33 }
 0x599   :  { %2339 = vmatpush1.bf16.msra.mxu0 %v5029_v2  ;;  %2380 = vmatpush1.bf16.msra.mxu1 %v5032_v3  ;;  %v5971_v2 = vld [vmem:[#allocation14_spill] sm:$0xff]  ;;  %v5972_v3 = vld [vmem:[#allocation15_spill] sm:$0xff] }
 0x59a   :  { %2340 = vmatprep.subr.bf16.mxu0 %v5035_v4  ;;  %2381 = vmatprep.subr.bf16.mxu1 %v5941_v20  ;;  %v5973_v4 = vld [vmem:[#allocation16_spill] sm:$0xff]  ;;  %v5974_v20 = vld [vmem:[#allocation17_spill] sm:$0xff] }
 0x59d   :  { %2341 = vmatpush1.bf16.msra.mxu0 %v5942_v47  ;;  %2382 = vmatpush1.bf16.msra.mxu1 %v5943_v23  ;;  %v5975_v47 = vld [vmem:[#allocation18_spill] sm:$0xff]  ;;  %v5976_v23 = vld [vmem:[#allocation19_spill] sm:$0xff] }
 0x59e   :  { %2342 = vmatprep.subr.bf16.mxu0 %v5944_v16  ;;  %2383 = vmatprep.subr.bf16.mxu1 %v5945_v49  ;;  %v5977_v16 = vld [vmem:[#allocation20_spill] sm:$0xff]  ;;  %v5978_v49 = vld [vmem:[#allocation21_spill] sm:$0xff] }
 0x5a1   :  { %2343 = vmatpush1.bf16.msra.mxu0 %v5946_v45  ;;  %2384 = vmatpush1.bf16.msra.mxu1 %v5947_v19  ;;  %v5979_v45 = vld [vmem:[#allocation22_spill] sm:$0xff] }
 0x5a2   :  { %2344 = vmatprep.subr.bf16.mxu0 %v5970_v44  ;;  %2385 = vmatprep.subr.bf16.mxu1 %v5971_v2  ;;  %v5982_v2 = vld [vmem:[#allocation42_spill] sm:$0xff] }
 0x5a5   :  { %2345 = vmatpush1.bf16.msra.mxu0 %v5972_v3  ;;  %2386 = vmatpush1.bf16.msra.mxu1 %v5973_v4  ;;  %v5983_v4 = vld [vmem:[#allocation43_spill] sm:$0xff] }
 0x5a6   :  { %2346 = vmatprep.subr.bf16.mxu0 %v5974_v20  ;;  %2387 = vmatprep.subr.bf16.mxu1 %v5975_v47 }
 0x5a9   :  { %2347 = vmatpush1.bf16.msra.mxu0 %v5976_v23  ;;  %2388 = vmatpush1.bf16.msra.mxu1 %v5977_v16 }
 0x5aa   :  { %2447 = vmatprep.subr.bf16.mxu0 %v5978_v49  ;;  %2488 = vmatprep.subr.bf16.mxu1 %v5979_v45 }
 0x63f   :  { %v2136_v19 = vpop.f32.mrb[72].mxu0  ;;  %v2177_v6 = vpop.f32.mrb[72].mxu1 }
 0x640   :  { %v2184_v14 = vadd.f32 %v2136_v19, %v5980_v26  ;;  %v2186_v55 = vadd.f32 %v2177_v6, %v5981_v22  ;;  %v2138_v24 = vpop.f32.mrb[73].mxu0  ;;  %v2179_v44 = vpop.f32.mrb[73].mxu1 }
 0x641   :  { %v2185_v3 = vadd.f32 %v2138_v24, %v5982_v2  ;;  %v2187_v20 = vadd.f32 %v2179_v44, %v5983_v4  ;;  %v2140_v47 = vpop.f32.mrb[74].mxu0  ;;  %v2181_v23 = vpop.f32.mrb[74].mxu1 }
 0x642   :  { %v3500_v33 = vmul.f32 -1.442695, %v2184_v14  ;;  %v2141_v16 = vpop.f32.mrb[75].mxu0  ;;  %v2182_v8 = vpop.f32.mrb[75].mxu1  ;;  %v3502_v45 = vmul.f32 -1.442695, %v2186_v55 }
 0x643   :  { %v3501_v49 = vmul.f32 -1.442695, %v2185_v3  ;;  %v5984_v55 = vld [vmem:[#allocation68_spill] sm:$0xff]  ;;  %v5986_v16 = vld [vmem:[#allocation70_spill] sm:$0xff] }
 0x644   :  { %4036 = vpow2.f32 %v3500_v33 }
 0x645   :  { %4038 = vpow2.f32 %v3501_v49 }
 0x646   :  { %4040 = vtanh.f32 %v2187_v20  ;;  %v5985_v20 = vld [vmem:[#allocation69_spill] sm:$0xff] }
 0x647   :  { %4042 = vpow2.f32 %v3502_v45  ;;  %v5987_v45 = vld [vmem:[#allocation71_spill] sm:$0xff] }
 0x64e   :  { %v4037_v46 = vpop.eup %4036 }
 0x64f   :  { %v2197_v48 = vadd.f32 1.0, %v4037_v46  ;;  %v4039_v19 = vpop.eup %4038 }
 0x650   :  { %v2198_v6 = vadd.f32 1.0, %v4039_v19  ;;  %v4041_v26 = vpop.eup %4040 }
 0x651   :  { %4044 = vrcp.f32 %v2197_v48  ;;  %v4043_v22 = vpop.eup %4042 }
 0x652   :  { %4046 = vrcp.f32 %v2198_v6  ;;  %v2199_v14 = vadd.f32 1.0, %v4043_v22 }
 0x654   :  { %4048 = vrcp.f32 %v2199_v14 }
 0x65b   :  { %v4045_v24 = vpop.eup %4044 }
 0x65c   :  { %v2208_v44 = vmul.f32 %v4045_v24, %v4041_v26  ;;  %v4047_v2 = vpop.eup %4046 }
 0x65d   :  { %v2207_v8 = vmul.f32 %v4047_v2, %v5322_v21 }
 0x65e   :  { %v4049_v2 = vpop.eup %4048 }
 0x65f   :  { %v2251_v3 = vpop.f32.mrb[76].mxu0  ;;  %v2292_v33 = vpop.f32.mrb[76].mxu1  ;;  %v5434_v4 = vadd.f32 %v2208_v44, %v2207_v8 }
 0x660   :  { %v2299_v46 = vadd.f32 %v2251_v3, %v5984_v55  ;;  %v2301_v47 = vadd.f32 %v2292_v33, %v5985_v20  ;;  %v2253_v23 = vpop.f32.mrb[77].mxu0  ;;  %v2294_v48 = vpop.f32.mrb[77].mxu1 }
 0x661   :  { %v2300_v49 = vadd.f32 %v2253_v23, %v5986_v16  ;;  %v2302_v19 = vadd.f32 %v2294_v48, %v5987_v45  ;;  %v2255_v6 = vpop.f32.mrb[78].mxu0  ;;  %v2296_v26 = vpop.f32.mrb[78].mxu1  ;;  %4050 = vtanh.f32 %v5434_v4 }
 0x662   :  { %v3503_v21 = vmul.f32 -1.442695, %v2299_v46  ;;  %v2256_v22 = vpop.f32.mrb[79].mxu0  ;;  %v2297_v24 = vpop.f32.mrb[79].mxu1  ;;  %v3505_v3 = vmul.f32 -1.442695, %v2301_v47 }
 0x663   :  { %v3504_v44 = vmul.f32 -1.442695, %v2300_v49  ;;  %v5994_v49 = vld [vmem:[#allocation46_spill] sm:$0xff] }
 0x664   :  { %4052 = vpow2.f32 %v3503_v21 }
 0x665   :  { %4054 = vpow2.f32 %v3504_v44 }
 0x666   :  { %4056 = vtanh.f32 %v2302_v19  ;;  %v5995_v19 = vld [vmem:[#allocation47_spill] sm:$0xff] }
 0x667   :  { %4058 = vpow2.f32 %v3505_v3 }
 0x66b   :  { %v4051_v8 = vpop.eup %4050 }
 0x66c   :  { %v2211_v33 = vmul.f32 %v4051_v8, %v4049_v2 }
 0x66e   :  { %v4053_v55 = vpop.eup %4052  ;;  %v2331_v20 = vpack.c.bf16 %v2211_v33, %v2211_v33 }
 0x66f   :  { %v2312_v14 = vadd.f32 1.0, %v4053_v55  ;;  %v4055_v23 = vpop.eup %4054 }
 0x670   :  { %v2313_v48 = vadd.f32 1.0, %v4055_v23  ;;  %2365 = vmatmul.mubr.bf16.vlgmr.msra.gmra.mrb[80].mxu0 %v2331_v20  ;;  %2406 = vmatmul.mubr.bf16.vlgmr.msra.gmra.mrb[80].mxu1 %v2331_v20 }
 0x671   :  { %4060 = vrcp.f32 %v2312_v14  ;;  %2448 = vmatpush1.bf16.msra.mxu0 %v5101_v50  ;;  %2489 = vmatpush1.bf16.msra.mxu1 %v5104_v43  ;;  %v4057_v50 = vpop.eup %4056 }
 0x672   :  { %4062 = vrcp.f32 %v2313_v48  ;;  %2449 = vmatprep.subr.bf16.mxu0 %v5107_v17  ;;  %2490 = vmatprep.subr.bf16.mxu1 %v5110_v29  ;;  %v4059_v46 = vpop.eup %4058 }
 0x673   :  { %2479 = vmatprep.mubr.bf16.mxu0 %v5799_v13  ;;  %2520 = vmatprep.mubr.bf16.mxu1 %v5799_v13 }
 0x675   :  { %2450 = vmatpush1.bf16.msra.mxu0 %v5115_v28  ;;  %2491 = vmatpush1.bf16.msra.mxu1 %v5118_v30  ;;  %v2314_v28 = vadd.f32 1.0, %v4059_v46 }
 0x676   :  { %2451 = vmatprep.subr.bf16.mxu0 %v5121_v40  ;;  %2492 = vmatprep.subr.bf16.mxu1 %v5124_v32 }
 0x677   :  { %4064 = vrcp.f32 %v2314_v28 }
 0x679   :  { %2452 = vmatpush1.bf16.msra.mxu0 %v5127_v38  ;;  %2493 = vmatpush1.bf16.msra.mxu1 %v5130_v11 }
 0x67a   :  { %2453 = vmatprep.subr.bf16.mxu0 %v5133_v25  ;;  %2494 = vmatprep.subr.bf16.mxu1 %v5136_v31  ;;  %v5988_v31 = vld [vmem:[#allocation55_spill] sm:$0xff] }
 0x67b   :  { %v4061_v43 = vpop.eup %4060 }
 0x67c   :  { %v2323_v17 = vmul.f32 %v4061_v43, %v4057_v50  ;;  %v4063_v29 = vpop.eup %4062 }
 0x67d   :  { %v2322_v30 = vmul.f32 %v4063_v29, %v5348_v51  ;;  %2454 = vmatpush1.bf16.msra.mxu0 %v5140_v56  ;;  %2495 = vmatpush1.bf16.msra.mxu1 %v5143_v58  ;;  %v5989_v56 = vld [vmem:[#allocation23_spill] sm:$0xff]  ;;  %v5990_v58 = vld [vmem:[#allocation80_spill] sm:$0xff] }
 0x67e   :  { %2455 = vmatprep.subr.bf16.mxu0 %v5146_v59  ;;  %2496 = vmatprep.subr.bf16.mxu1 %v5149_v60  ;;  %v5991_v59 = vld [vmem:[#allocation81_spill] sm:$0xff]  ;;  %v4210_v60 = vld [vmem:[#allocation3 + $0x80] ss:$16 sps:$4 sm:$0xff]  }
 0x67f   :  { %v5460_v40 = vadd.f32 %v2323_v17, %v2322_v30  ;;  %v4225_v51 = vld [vmem:[#allocation3 + $0x10c] ss:$16 sps:$4 sm:$0xff]  }
 0x681   :  { %4066 = vtanh.f32 %v5460_v40  ;;  %2456 = vmatpush1.bf16.msra.mxu0 %v5155_v57  ;;  %2497 = vmatpush1.bf16.msra.mxu1 %v5158_v39  ;;  %v4065_v32 = vpop.eup %4064  ;;  %v4211_v57 = vld [vmem:[#allocation3 + $0x88] ss:$16 sps:$4 sm:$0xff]   ;;  %v4212_v39 = vld [vmem:[#allocation3 + $0xa4] ss:$16 sps:$4 sm:$0xff]  }
 0x682   :  { %2457 = vmatprep.subr.bf16.mxu0 %v5161_v12  ;;  %2498 = vmatprep.subr.bf16.mxu1 %v5934_v61  ;;  %v4213_v12 = vld [vmem:[#allocation3 + $0xac] ss:$16 sps:$4 sm:$0xff]   ;;  %v4218_v61 = vld [vmem:[#allocation3 + $0xc0] ss:$16 sps:$4 sm:$0xff]  }
 0x685   :  { %2458 = vmatpush1.bf16.msra.mxu0 %v5935_v37  ;;  %2499 = vmatpush1.bf16.msra.mxu1 %v5936_v15  ;;  %v4219_v37 = vld [vmem:[#allocation3 + $0xc8] ss:$16 sps:$4 sm:$0xff]   ;;  %v4220_v15 = vld [vmem:[#allocation3 + $0xe4] ss:$16 sps:$4 sm:$0xff]  }
 0x686   :  { %2459 = vmatprep.subr.bf16.mxu0 %v5937_v10  ;;  %2500 = vmatprep.subr.bf16.mxu1 %v5938_v9  ;;  %v4221_v10 = vld [vmem:[#allocation3 + $0xec] ss:$16 sps:$4 sm:$0xff]   ;;  %v4222_v9 = vld [vmem:[#allocation3 + $0xe0] ss:$16 sps:$4 sm:$0xff]  }
 0x689   :  { %2460 = vmatpush1.bf16.msra.mxu0 %v5939_v42  ;;  %2501 = vmatpush1.bf16.msra.mxu1 %v5940_v7  ;;  %v4223_v42 = vld [vmem:[#allocation3 + $0xe8] ss:$16 sps:$4 sm:$0xff]   ;;  %v4224_v7 = vld [vmem:[#allocation3 + $0x104] ss:$16 sps:$4 sm:$0xff]  }
 0x68a   :  { %2461 = vmatprep.subr.bf16.mxu0 %v5185_v34  ;;  %2502 = vmatprep.subr.bf16.mxu1 %v5188_v36  ;;  %v4214_v34 = vld [vmem:[#allocation3 + $0xa0] ss:$16 sps:$4 sm:$0xff]   ;;  %v4215_v36 = vld [vmem:[#allocation3 + $0xa8] ss:$16 sps:$4 sm:$0xff]  }
 0x68b   :  { %v4067_v38 = vpop.eup %4066 }
 0x68c   :  { %v2326_v11 = vmul.f32 %v4067_v38, %v4065_v32  ;;  %v5996_v32 = vld [vmem:[#allocation72_spill] sm:$0xff] }
 0x68d   :  { %2462 = vmatpush1.bf16.msra.mxu0 %v5191_v52  ;;  %2503 = vmatpush1.bf16.msra.mxu1 %v5194_v53  ;;  %v4216_v52 = vld [vmem:[#allocation3 + $0xc4] ss:$16 sps:$4 sm:$0xff]   ;;  %v4217_v53 = vld [vmem:[#allocation3 + $0xcc] ss:$16 sps:$4 sm:$0xff]  }
 0x68e   :  { %v2446_v25 = vpack.c.bf16 %v2326_v11, %v2326_v11  ;;  %2562 = vmatprep.subr.bf16.mxu0 %v5365_v62  ;;  %2603 = vmatprep.subr.bf16.mxu1 %v5368_v1  ;;  %v4226_v62 = vld [vmem:[#allocation3 + $0x100] ss:$16 sps:$4 sm:$0xff]   ;;  %v4227_v1 = vld [vmem:[#allocation3 + $0x108] ss:$16 sps:$4 sm:$0xff]  }
 0x68f   :  { %v5997_v11 = vld [vmem:[#allocation73_spill] sm:$0xff] }
 0x690   :  { %2480 = vmatmul.mubr.bf16.vlgmr.msra.gmra.mrb[84].mxu0 %v2446_v25  ;;  %2521 = vmatmul.mubr.bf16.vlgmr.msra.gmra.mrb[84].mxu1 %v2446_v25 }
 0x691   :  { %2563 = vmatpush1.bf16.msra.mxu0 %v5371_v18  ;;  %2604 = vmatpush1.bf16.msra.mxu1 %v5374_v41  ;;  %v4228_v18 = vld [vmem:[#allocation3 + $0x144] ss:$16 sps:$4 sm:$0xff]   ;;  %v4229_v41 = vld [vmem:[#allocation3 + $0x14c] ss:$16 sps:$4 sm:$0xff]  }
 0x692   :  { %2564 = vmatprep.subr.bf16.mxu0 %v5377_v0  ;;  %2605 = vmatprep.subr.bf16.mxu1 %v5380_v35 }
 0x693   :  { %2594 = vmatprep.mubr.bf16.mxu0 %v5799_v13  ;;  %2635 = vmatprep.mubr.bf16.mxu1 %v5799_v13 }
 0x695   :  { %2565 = vmatpush1.bf16.msra.mxu0 %v5385_v54  ;;  %2606 = vmatpush1.bf16.msra.mxu1 %v5388_v63  ;;  %v5992_v54 = vld [vmem:[#allocation44_spill] sm:$0xff] }
 0x696   :  { %2566 = vmatprep.subr.bf16.mxu0 %v5391_v5  ;;  %2607 = vmatprep.subr.bf16.mxu1 %v5394_v27  ;;  %v5993_v5 = vld [vmem:[#allocation45_spill] sm:$0xff] }
 0x699   :  { %2567 = vmatpush1.bf16.msra.mxu0 %v5988_v31  ;;  %2608 = vmatpush1.bf16.msra.mxu1 %v5989_v56 }
 0x69a   :  { %2568 = vmatprep.subr.bf16.mxu0 %v5990_v58  ;;  %2609 = vmatprep.subr.bf16.mxu1 %v5991_v59  ;;  %v5998_v58 = vld [vmem:[#allocation74_spill] sm:$0xff] }
 0x69d   :  { %2569 = vmatpush1.bf16.msra.mxu0 %v4210_v60  ;;  %2610 = vmatpush1.bf16.msra.mxu1 %v4211_v57  ;;  %v5999_v60 = vld [vmem:[#allocation75_spill] sm:$0xff] }
 0x69e   :  { %2570 = vmatprep.subr.bf16.mxu0 %v4212_v39  ;;  %2611 = vmatprep.subr.bf16.mxu1 %v4213_v12 }
 0x6a1   :  { %2571 = vmatpush1.bf16.msra.mxu0 %v4214_v34  ;;  %2612 = vmatpush1.bf16.msra.mxu1 %v4215_v36 }
 0x6a2   :  { %2572 = vmatprep.subr.bf16.mxu0 %v4216_v52  ;;  %2613 = vmatprep.subr.bf16.mxu1 %v4217_v53 }
 0x6a5   :  { %2573 = vmatpush1.bf16.msra.mxu0 %v4218_v61  ;;  %2614 = vmatpush1.bf16.msra.mxu1 %v4219_v37 }
 0x6a6   :  { %2574 = vmatprep.subr.bf16.mxu0 %v4220_v15  ;;  %2615 = vmatprep.subr.bf16.mxu1 %v4221_v10 }
 0x6a9   :  { %2575 = vmatpush1.bf16.msra.mxu0 %v4222_v9  ;;  %2616 = vmatpush1.bf16.msra.mxu1 %v4223_v42 }
 0x6aa   :  { %2576 = vmatprep.subr.bf16.mxu0 %v4224_v7  ;;  %2617 = vmatprep.subr.bf16.mxu1 %v4225_v51 }
 0x6ad   :  { %2577 = vmatpush1.bf16.msra.mxu0 %v4226_v62  ;;  %2618 = vmatpush1.bf16.msra.mxu1 %v4227_v1  ;;  %v4230_v62 = vld [vmem:[#allocation3 + $0x140] ss:$16 sps:$4 sm:$0xff]   ;;  %v4231_v1 = vld [vmem:[#allocation3 + $0x148] ss:$16 sps:$4 sm:$0xff]  }
 0x6ae   :  { %2677 = vmatprep.subr.bf16.mxu0 %v4228_v18  ;;  %2718 = vmatprep.subr.bf16.mxu1 %v4229_v41  ;;  %v4232_v18 = vld [vmem:[#allocation3 + $0x164] ss:$16 sps:$4 sm:$0xff]   ;;  %v4233_v41 = vld [vmem:[#allocation3 + $0x16c] ss:$16 sps:$4 sm:$0xff]  }
 0x743   :  { %v2366_v0 = vpop.f32.mrb[80].mxu0  ;;  %v2407_v35 = vpop.f32.mrb[80].mxu1 }
 0x744   :  { %v2414_v63 = vadd.f32 %v2366_v0, %v5992_v54  ;;  %v2416_v27 = vadd.f32 %v2407_v35, %v5993_v5  ;;  %v2368_v47 = vpop.f32.mrb[81].mxu0  ;;  %v2409_v16 = vpop.f32.mrb[81].mxu1  ;;  %v4234_v0 = vld [vmem:[#allocation3 + $0x160] ss:$16 sps:$4 sm:$0xff]   ;;  %v4235_v35 = vld [vmem:[#allocation3 + $0x168] ss:$16 sps:$4 sm:$0xff]  }
 0x745   :  { %v2415_v45 = vadd.f32 %v2368_v47, %v5994_v49  ;;  %v2417_v6 = vadd.f32 %v2409_v16, %v5995_v19  ;;  %v2370_v26 = vpop.f32.mrb[82].mxu0  ;;  %v2411_v21 = vpop.f32.mrb[82].mxu1  ;;  %v4236_v54 = vld [vmem:[#allocation3 + $0x184] ss:$16 sps:$4 sm:$0xff]   ;;  %v4238_v47 = vld [vmem:[#allocation3 + $0x180] ss:$16 sps:$4 sm:$0xff]  }
 0x746   :  { %v3506_v22 = vmul.f32 -1.442695, %v2414_v63  ;;  %v2371_v24 = vpop.f32.mrb[83].mxu0  ;;  %v2412_v44 = vpop.f32.mrb[83].mxu1  ;;  %v3508_v8 = vmul.f32 -1.442695, %v2416_v27 }
 0x747   :  { %v3507_v2 = vmul.f32 -1.442695, %v2415_v45  ;;  %v4237_v63 = vld [vmem:[#allocation3 + $0x18c] ss:$16 sps:$4 sm:$0xff]   ;;  %v4239_v16 = vld [vmem:[#allocation3 + $0x188] ss:$16 sps:$4 sm:$0xff]  }
 0x748   :  { %4068 = vpow2.f32 %v3506_v22  ;;  %v4240_v45 = vld [vmem:[#allocation3 + $0x1a4] ss:$16 sps:$4 sm:$0xff]   ;;  %v4241_v19 = vld [vmem:[#allocation3 + $0x1ac] ss:$16 sps:$4 sm:$0xff]   ;;  %v4242_v22 = vld [vmem:[#allocation3 + $0x1a0] ss:$16 sps:$4 sm:$0xff]  }
 0x749   :  { %4070 = vpow2.f32 %v3507_v2  ;;  %v4243_v24 = vld [vmem:[#allocation3 + $0x1a8] ss:$16 sps:$4 sm:$0xff]   ;;  %v4244_v44 = vld [vmem:[#allocation3 + $0x1c4] ss:$16 sps:$4 sm:$0xff]   ;;  %v4245_v2 = vld [vmem:[#allocation3 + $0x1cc] ss:$16 sps:$4 sm:$0xff]  }
 0x74a   :  { %4072 = vtanh.f32 %v2417_v6 }
 0x74b   :  { %4074 = vpow2.f32 %v3508_v8 }
 0x752   :  { %v4069_v3 = vpop.eup %4068 }
 0x753   :  { %v2427_v33 = vadd.f32 1.0, %v4069_v3  ;;  %v4071_v55 = vpop.eup %4070  ;;  %v4246_v3 = vld [vmem:[#allocation3 + $0x1c0] ss:$16 sps:$4 sm:$0xff]  }
 0x754   :  { %v2428_v14 = vadd.f32 1.0, %v4071_v55  ;;  %v4073_v20 = vpop.eup %4072  ;;  %v4248_v55 = vld [vmem:[#allocation3 + $0x1e4] ss:$16 sps:$4 sm:$0xff]  }
 0x755   :  { %4076 = vrcp.f32 %v2427_v33  ;;  %v4075_v23 = vpop.eup %4074  ;;  %v4247_v33 = vld [vmem:[#allocation3 + $0x1c8] ss:$16 sps:$4 sm:$0xff]  }
 0x756   :  { %4078 = vrcp.f32 %v2428_v14  ;;  %v2429_v43 = vadd.f32 1.0, %v4075_v23  ;;  %v4250_v14 = vld [vmem:[#allocation3 + $0x1e0] ss:$16 sps:$4 sm:$0xff]   ;;  %v4252_v23 = vld [vmem:[#allocation3 + $0x204] ss:$16 sps:$4 sm:$0xff]  }
 0x758   :  { %4080 = vrcp.f32 %v2429_v43 }
 0x75f   :  { %v4077_v48 = vpop.eup %4076 }
 0x760   :  { %v2438_v50 = vmul.f32 %v4077_v48, %v4073_v20  ;;  %v4079_v46 = vpop.eup %4078  ;;  %v4251_v20 = vld [vmem:[#allocation3 + $0x1e8] ss:$16 sps:$4 sm:$0xff]   ;;  %v4253_v48 = vld [vmem:[#allocation3 + $0x20c] ss:$16 sps:$4 sm:$0xff]  }
 0x761   :  { %v2437_v17 = vmul.f32 %v4079_v46, %v5434_v4  ;;  %v4255_v46 = vld [vmem:[#allocation3 + $0x208] ss:$16 sps:$4 sm:$0xff]  }
 0x762   :  { %v4081_v53 = vpop.eup %4080 }
 0x763   :  { %v2481_v29 = vpop.f32.mrb[84].mxu0  ;;  %v2522_v28 = vpop.f32.mrb[84].mxu1  ;;  %v5498_v30 = vadd.f32 %v2438_v50, %v2437_v17  ;;  %v4254_v50 = vld [vmem:[#allocation3 + $0x200] ss:$16 sps:$4 sm:$0xff]   ;;  %v4256_v17 = vld [vmem:[#allocation3 + $0x224] ss:$16 sps:$4 sm:$0xff]  }
 0x764   :  { %v2529_v38 = vadd.f32 %v2481_v29, %v5996_v32  ;;  %v2531_v25 = vadd.f32 %v2522_v28, %v5997_v11  ;;  %v2483_v31 = vpop.f32.mrb[85].mxu0  ;;  %v2524_v56 = vpop.f32.mrb[85].mxu1  ;;  %v4257_v29 = vld [vmem:[#allocation3 + $0x22c] ss:$16 sps:$4 sm:$0xff]   ;;  %v4259_v11 = vld [vmem:[#allocation3 + $0x228] ss:$16 sps:$4 sm:$0xff]  }
 0x765   :  { %v2530_v59 = vadd.f32 %v2483_v31, %v5998_v58  ;;  %v2532_v57 = vadd.f32 %v2524_v56, %v5999_v60  ;;  %v2485_v39 = vpop.f32.mrb[86].mxu0  ;;  %v2526_v12 = vpop.f32.mrb[86].mxu1  ;;  %4082 = vtanh.f32 %v5498_v30  ;;  %v3844_v31 = vld [vmem:[%s5693_s2] sm:$0xff]   ;;  %v4288_v56 = vmov 0.0   ;;  %v3845_v58 = vld [vmem:[%s5693_s2 + $0x8] sm:$0xff]   ;;  %v3847_v60 = vld [vmem:[%s5693_s2 + $0x18] sm:$0xff]  }
 0x766   :  { %v3509_v4 = vmul.f32 -1.442695, %v2529_v38  ;;  %v2486_v34 = vpop.f32.mrb[87].mxu0  ;;  %v2527_v36 = vpop.f32.mrb[87].mxu1  ;;  %v3511_v37 = vmul.f32 -1.442695, %v2531_v25 }
 0x767   :  { %v3510_v52 = vmul.f32 -1.442695, %v2530_v59  ;;  %v4258_v38 = vld [vmem:[#allocation3 + $0x220] ss:$16 sps:$4 sm:$0xff]   ;;  %v3849_v39 = vld [vmem:[%s5693_s2 + $0x28] sm:$0xff]  }
 0x768   :  { %4084 = vpow2.f32 %v3509_v4  ;;  %v3846_v59 = vld [vmem:[%s5693_s2 + $0x10] sm:$0xff]   ;;  %v3851_v4 = vld [vmem:[%s5693_s2 + $0x38] sm:$0xff]   ;;  %v3860_v34 = vld [vmem:[%s5693_s2 + $0x40] sm:$0xff]  }
 0x769   :  { %4086 = vpow2.f32 %v3510_v52  ;;  %v3850_v12 = vld [vmem:[%s5693_s2 + $0x30] sm:$0xff]   ;;  %v3861_v36 = vld [vmem:[%s5693_s2 + $0x48] sm:$0xff]  }
 0x76a   :  { %4088 = vtanh.f32 %v2532_v57  ;;  %v3848_v57 = vld [vmem:[%s5693_s2 + $0x20] sm:$0xff]  }
 0x76b   :  { %4090 = vpow2.f32 %v3511_v37 }
 0x76f   :  { %v4083_v61 = vpop.eup %4082 }
 0x770   :  { %v2441_v15 = vmul.f32 %v4083_v61, %v4081_v53  ;;  %v6000_v61 = vld [vmem:[#allocation48_spill] sm:$0xff] }
 0x772   :  { %v4085_v10 = vpop.eup %4084  ;;  %v2561_v42 = vpack.c.bf16 %v2441_v15, %v2441_v15  ;;  %v6001_v15 = vld [vmem:[#allocation49_spill] sm:$0xff] }
 0x773   :  { %v2542_v9 = vadd.f32 1.0, %v4085_v10  ;;  %v4087_v7 = vpop.eup %4086 }
 0x774   :  { %v2543_v51 = vadd.f32 1.0, %v4087_v7  ;;  %2595 = vmatmul.mubr.bf16.vlgmr.msra.gmra.mrb[88].mxu0 %v2561_v42  ;;  %2636 = vmatmul.mubr.bf16.vlgmr.msra.gmra.mrb[88].mxu1 %v2561_v42  ;;  %v4089_v5 = vpop.eup %4088  ;;  %v6002_v7 = vld [vmem:[#allocation50_spill] sm:$0xff] }
 0x775   :  { %4092 = vrcp.f32 %v2542_v9  ;;  %2678 = vmatpush1.bf16.msra.mxu0 %v4230_v62  ;;  %2719 = vmatpush1.bf16.msra.mxu1 %v4231_v1  ;;  %v4091_v27 = vpop.eup %4090  ;;  %v6003_v62 = vld [vmem:[#allocation51_spill] sm:$0xff] }
 0x776   :  { %4094 = vrcp.f32 %v2543_v51  ;;  %2679 = vmatprep.subr.bf16.mxu0 %v4232_v18  ;;  %2720 = vmatprep.subr.bf16.mxu1 %v4233_v41  ;;  %v2544_v26 = vadd.f32 1.0, %v4091_v27 }
 0x777   :  { %2709 = vmatprep.mubr.bf16.mxu0 %v5799_v13  ;;  %2750 = vmatprep.mubr.bf16.mxu1 %v5799_v13 }
 0x778   :  { %4096 = vrcp.f32 %v2544_v26 }
 0x779   :  { %2680 = vmatpush1.bf16.msra.mxu0 %v4234_v0  ;;  %2721 = vmatpush1.bf16.msra.mxu1 %v4235_v35 }
 0x77a   :  { %2681 = vmatprep.subr.bf16.mxu0 %v4236_v54  ;;  %2722 = vmatprep.subr.bf16.mxu1 %v4237_v63 }
 0x77d   :  { %2682 = vmatpush1.bf16.msra.mxu0 %v4238_v47  ;;  %2723 = vmatpush1.bf16.msra.mxu1 %v4239_v16 }
 0x77e   :  { %2683 = vmatprep.subr.bf16.mxu0 %v4240_v45  ;;  %2724 = vmatprep.subr.bf16.mxu1 %v4241_v19 }
 0x77f   :  { %v4093_v49 = vpop.eup %4092 }
 0x780   :  { %v2553_v13 = vmul.f32 %v4093_v49, %v4089_v5  ;;  %v4095_v6 = vpop.eup %4094 }
 0x781   :  { %v2552_v21 = vmul.f32 %v4095_v6, %v5460_v40  ;;  %2684 = vmatpush1.bf16.msra.mxu0 %v4242_v22  ;;  %2725 = vmatpush1.bf16.msra.mxu1 %v4243_v24  ;;  %v4249_v40 = vld [vmem:[#allocation3 + $0x1ec] ss:$16 sps:$4 sm:$0xff]  }
 0x782   :  { %2685 = vmatprep.subr.bf16.mxu0 %v4244_v44  ;;  %2726 = vmatprep.subr.bf16.mxu1 %v4245_v2  ;;  %v4097_v43 = vpop.eup %4096 }
 0x783   :  { %v5508_v8 = vadd.f32 %v2553_v13, %v2552_v21 }
 0x785   :  { %4098 = vtanh.f32 %v5508_v8  ;;  %2686 = vmatpush1.bf16.msra.mxu0 %v4246_v3  ;;  %2727 = vmatpush1.bf16.msra.mxu1 %v4247_v33  ;;  %v6004_v3 = vld [vmem:[#allocation76_spill] sm:$0xff] }
 0x786   :  { %2687 = vmatprep.subr.bf16.mxu0 %v4248_v55  ;;  %2728 = vmatprep.subr.bf16.mxu1 %v4249_v40  ;;  %v6005_v55 = vld [vmem:[#allocation77_spill] sm:$0xff] }
 0x789   :  { %2688 = vmatpush1.bf16.msra.mxu0 %v4250_v14  ;;  %2729 = vmatpush1.bf16.msra.mxu1 %v4251_v20 }
 0x78a   :  { %2689 = vmatprep.subr.bf16.mxu0 %v4252_v23  ;;  %2730 = vmatprep.subr.bf16.mxu1 %v4253_v48  ;;  %v6006_v23 = vld [vmem:[#allocation78_spill] sm:$0xff] }
 0x78d   :  { %2690 = vmatpush1.bf16.msra.mxu0 %v4254_v50  ;;  %2731 = vmatpush1.bf16.msra.mxu1 %v4255_v46  ;;  %v6007_v50 = vld [vmem:[#allocation79_spill] sm:$0xff] }
 0x78e   :  { %2691 = vmatprep.subr.bf16.mxu0 %v4256_v17  ;;  %2732 = vmatprep.subr.bf16.mxu1 %v4257_v29 }
 0x78f   :  { %v4099_v28 = vpop.eup %4098 }
 0x790   :  { %v2556_v32 = vmul.f32 %v4099_v28, %v4097_v43 }
 0x791   :  { %2692 = vmatpush1.bf16.msra.mxu0 %v4258_v38  ;;  %2733 = vmatpush1.bf16.msra.mxu1 %v4259_v11 }
 0x792   :  { %v2676_v25 = vpack.c.bf16 %v2556_v32, %v2556_v32  ;;  %3634 = vmatprep.subr.bf16.mxu0 %v4288_v56  ;;  %3654 = vmatprep.subr.bf16.mxu1 %v4288_v56 }
 0x794   :  { %2710 = vmatmul.mubr.bf16.vlgmr.msra.gmra.mrb[92].mxu0 %v2676_v25  ;;  %2751 = vmatmul.mubr.bf16.vlgmr.msra.gmra.mrb[92].mxu1 %v2676_v25 }
 0x795   :  { %3635 = vmatpush3.bf16.msra.mxu0 %v3844_v31  ;;  %3650 = vmatprep.mubr.msk.bf16.mxu0 %vm4289_vm1, %v4288_v56 }
 0x796   :  { %3636 = vmatprep.subr.bf16.mxu0 %v4288_v56  ;;  %3662 = vmatprep.mubr.msk.bf16.mxu1 %vm4289_vm1, %v4288_v56 }
 0x797   :  { %3655 = vmatpush3.bf16.msra.mxu1 %v3860_v34  ;;  %v3854_v34 = vld [vmem:[%s5693_s2 + $0x90] sm:$0xff]  }
 0x798   :  { %3656 = vmatprep.subr.bf16.mxu1 %v4288_v56 }
 0x799   :  { %3637 = vmatpush3.bf16.msra.mxu0 %v3845_v58 }
 0x79a   :  { %3638 = vmatprep.subr.bf16.mxu0 %v4288_v56 }
 0x79b   :  { %3657 = vmatpush3.bf16.msra.mxu1 %v3861_v36 }
 0x79c   :  { %3658 = vmatprep.subr.bf16.mxu1 %v4288_v56 }
 0x79d   :  { %3639 = vmatpush3.bf16.msra.mxu0 %v3846_v59  ;;  %v3852_v59 = vld [vmem:[%s5693_s2 + $0x80] sm:$0xff]  }
 0x79e   :  { %3640 = vmatprep.subr.bf16.mxu0 %v4288_v56 }
 0x7a1   :  { %3641 = vmatpush3.bf16.msra.mxu0 %v3847_v60 }
 0x7a2   :  { %3642 = vmatprep.subr.bf16.mxu0 %v4288_v56 }
 0x7a5   :  { %3643 = vmatpush3.bf16.msra.mxu0 %v3848_v57 }
 0x7a6   :  { %3644 = vmatprep.subr.bf16.mxu0 %v4288_v56 }
 0x7a9   :  { %3645 = vmatpush3.bf16.msra.mxu0 %v3849_v39 }
 0x7aa   :  { %3646 = vmatprep.subr.bf16.mxu0 %v4288_v56 }
 0x7ad   :  { %3647 = vmatpush3.bf16.msra.mxu0 %v3850_v12 }
 0x7ae   :  { %3648 = vmatprep.subr.bf16.mxu0 %v4288_v56 }
 0x7b1   :  { %3649 = vmatpush3.bf16.msra.mxu0 %v3851_v4  ;;  %v3853_v4 = vld [vmem:[%s5693_s2 + $0x88] sm:$0xff]  }
 0x7b2   :  { %3678 = vmatprep.subr.bf16.mxu0 %v4288_v56 }
 0x847   :  { %v2596_v52 = vpop.f32.mrb[88].mxu0  ;;  %v2637_v53 = vpop.f32.mrb[88].mxu1 }
 0x848   :  { %v2644_v37 = vadd.f32 %v2596_v52, %v6000_v61  ;;  %v2646_v10 = vadd.f32 %v2637_v53, %v6001_v15  ;;  %v2598_v9 = vpop.f32.mrb[89].mxu0  ;;  %v2639_v42 = vpop.f32.mrb[89].mxu1  ;;  %v3855_v53 = vld [vmem:[%s5693_s2 + $0x98] sm:$0xff]  }
 0x849   :  { %v2645_v51 = vadd.f32 %v2598_v9, %v6002_v7  ;;  %v2647_v1 = vadd.f32 %v2639_v42, %v6003_v62  ;;  %v2600_v18 = vpop.f32.mrb[90].mxu0  ;;  %v2641_v41 = vpop.f32.mrb[90].mxu1  ;;  %v3856_v42 = vld [vmem:[%s5693_s2 + $0xa0] sm:$0xff]   ;;  %v3859_v62 = vld [vmem:[%s5693_s2 + $0xb8] sm:$0xff]  }
 0x84a   :  { %v3512_v0 = vmul.f32 -1.442695, %v2644_v37  ;;  %v2601_v35 = vpop.f32.mrb[91].mxu0  ;;  %v2642_v54 = vpop.f32.mrb[91].mxu1  ;;  %v3514_v5 = vmul.f32 -1.442695, %v2646_v10 }
 0x84b   :  { %v3513_v63 = vmul.f32 -1.442695, %v2645_v51  ;;  %v3857_v51 = vld [vmem:[%s5693_s2 + $0xa8] sm:$0xff]   ;;  %v3862_v35 = vld [vmem:[%s5693_s2 + $0x50] sm:$0xff]   ;;  %v3863_v54 = vld [vmem:[%s5693_s2 + $0x58] sm:$0xff]  }
 0x84c   :  { %4100 = vpow2.f32 %v3512_v0  ;;  %3659 = vmatpush3.bf16.msra.mxu1 %v3862_v35 }
 0x84d   :  { %4102 = vpow2.f32 %v3513_v63  ;;  %3660 = vmatprep.subr.bf16.mxu1 %v4288_v56  ;;  %v3518_v63 = vld [vmem:[%s5694_s3 + $0x4] ss:$0 sm:$0xff] }
 0x84e   :  { %4104 = vtanh.f32 %v2647_v1 }
 0x84f   :  { %4106 = vpow2.f32 %v3514_v5 }
 0x850   :  { %3661 = vmatpush3.bf16.msra.mxu1 %v3863_v54 }
 0x851   :  { %3666 = vmatprep.subr.bf16.mxu1 %v4288_v56 }
 0x856   :  { %v4101_v27 = vpop.eup %4100 }
 0x857   :  { %v2657_v47 = vadd.f32 1.0, %v4101_v27  ;;  %v4103_v16 = vpop.eup %4102 }
 0x858   :  { %v2658_v49 = vadd.f32 1.0, %v4103_v16  ;;  %v4105_v45 = vpop.eup %4104 }
 0x859   :  { %4108 = vrcp.f32 %v2657_v47  ;;  %v4107_v19 = vpop.eup %4106 }
 0x85a   :  { %4110 = vrcp.f32 %v2658_v49  ;;  %v2659_v21 = vadd.f32 1.0, %v4107_v19 }
 0x85c   :  { %4112 = vrcp.f32 %v2659_v21 }
 0x863   :  { %v4109_v13 = vpop.eup %4108 }
 0x864   :  { %v2668_v6 = vmul.f32 %v4109_v13, %v4105_v45  ;;  %v4111_v26 = vpop.eup %4110  ;;  %v3864_v13 = vld [vmem:[%s5693_s2 + $0x60] sm:$0xff]  }
 0x865   :  { %v2667_v22 = vmul.f32 %v4111_v26, %v5498_v30  ;;  %v3865_v26 = vld [vmem:[%s5693_s2 + $0x68] sm:$0xff]  }
 0x866   :  { %v4113_v38 = vpop.eup %4112 }
 0x867   :  { %v2711_v24 = vpop.f32.mrb[92].mxu0  ;;  %v2752_v44 = vpop.f32.mrb[92].mxu1  ;;  %v2669_v2 = vadd.f32 %v2668_v6, %v2667_v22 }
 0x868   :  { %v2759_v33 = vadd.f32 %v2711_v24, %v6004_v3  ;;  %v2761_v40 = vadd.f32 %v2752_v44, %v6005_v55  ;;  %v2713_v14 = vpop.f32.mrb[93].mxu0  ;;  %v2754_v20 = vpop.f32.mrb[93].mxu1  ;;  %v3867_v3 = vld [vmem:[%s5693_s2 + $0x78] sm:$0xff]  }
 0x869   :  { %v2760_v48 = vadd.f32 %v2713_v14, %v6006_v23  ;;  %v2762_v46 = vadd.f32 %v2754_v20, %v6007_v50  ;;  %v2715_v43 = vpop.f32.mrb[94].mxu0  ;;  %v2756_v17 = vpop.f32.mrb[94].mxu1  ;;  %4114 = vtanh.f32 %v2669_v2  ;;  %v3866_v2 = vld [vmem:[%s5693_s2 + $0x70] sm:$0xff]  }
 0x86a   :  { %v3515_v29 = vmul.f32 -1.442695, %v2759_v33  ;;  %v2716_v28 = vpop.f32.mrb[95].mxu0  ;;  %v2757_v30 = vpop.f32.mrb[95].mxu1  ;;  %v3517_v25 = vmul.f32 -1.442695, %v2761_v40 }
 0x86b   :  { %v3516_v32 = vmul.f32 -1.442695, %v2760_v48  ;;  %v3527_v33 = vld [vmem:[%s5694_s3 + $0x5] ss:$0 sm:$0xff]  ;;  %v3556_v17 = vld [vmem:[%s5694_s3 + $0xb] ss:$0 sm:$0xff] }
 0x86c   :  { %4116 = vpow2.f32 %v3515_v29  ;;  %v3869_v29 = vld [vmem:[%s5693_s2 + $0xc8] sm:$0xff]   ;;  %v3870_v30 = vld [vmem:[%s5693_s2 + $0xd0] sm:$0xff]  }
 0x86d   :  { %4118 = vpow2.f32 %v3516_v32 }
 0x86e   :  { %4120 = vtanh.f32 %v2762_v46  ;;  %v3868_v46 = vld [vmem:[%s5693_s2 + $0xc0] sm:$0xff]  }
 0x86f   :  { %4122 = vpow2.f32 %v3517_v25 }
 0x873   :  { %v4115_v11 = vpop.eup %4114 }
 0x874   :  { %v2671_v31 = vmul.f32 %v4115_v11, %v4113_v38  ;;  %v3871_v38 = vld [vmem:[%s5693_s2 + $0xd8] sm:$0xff]  }
 0x876   :  { %v4117_v58 = vpop.eup %4116  ;;  %v2787_v57 = vpack.c.bf16 %v2671_v31, %v2671_v31  ;;  %v3872_v31 = vld [vmem:[%s5693_s2 + $0xe0] sm:$0xff]  }
 0x877   :  { %v2772_v60 = vadd.f32 1.0, %v4117_v58  ;;  %v4119_v39 = vpop.eup %4118  ;;  %v3873_v58 = vld [vmem:[%s5693_s2 + $0xe8] sm:$0xff]  }
 0x878   :  { %v2773_v12 = vadd.f32 1.0, %v4119_v39  ;;  %3651 = vmatmul.mubr.bf16.vlgmr.msra.gmra.mrb[96].mxu0 %v2787_v57  ;;  %v4121_v36 = vpop.eup %4120  ;;  %v3533_v57 = vld [vmem:[%s5694_s3 + $0x6] ss:$0 sm:$0xff] }
 0x879   :  { %4124 = vrcp.f32 %v2772_v60  ;;  %3679 = vmatpush3.bf16.msra.mxu0 %v3852_v59  ;;  %3694 = vmatprep.mubr.msk.bf16.mxu0 %vm4289_vm1, %v4288_v56  ;;  %v4123_v52 = vpop.eup %4122  ;;  %v3874_v59 = vld [vmem:[%s5693_s2 + $0xf0] sm:$0xff]   ;;  %v3875_v60 = vld [vmem:[%s5693_s2 + $0xf8] sm:$0xff]  }
 0x87a   :  { %4126 = vrcp.f32 %v2773_v12  ;;  %3680 = vmatprep.subr.bf16.mxu0 %v4288_v56  ;;  %v2774_v10 = vadd.f32 1.0, %v4123_v52 }
 0x87c   :  { %4128 = vrcp.f32 %v2774_v10 }
 0x87d   :  { %3681 = vmatpush3.bf16.msra.mxu0 %v3853_v4 }
 0x87e   :  { %3682 = vmatprep.subr.bf16.mxu0 %v4288_v56 }
 0x881   :  { %3683 = vmatpush3.bf16.msra.mxu0 %v3854_v34 }
 0x882   :  { %3684 = vmatprep.subr.bf16.mxu0 %v4288_v56 }
 0x883   :  { %v4125_v61 = vpop.eup %4124 }
 0x884   :  { %v2783_v37 = vmul.f32 %v4125_v61, %v4121_v36  ;;  %v4127_v15 = vpop.eup %4126 }
 0x885   :  { %v2782_v9 = vmul.f32 %v4127_v15, %v5508_v8  ;;  %3685 = vmatpush3.bf16.msra.mxu0 %v3855_v53  ;;  %v3858_v8 = vld [vmem:[%s5693_s2 + $0xb0] sm:$0xff]  }
 0x886   :  { %3686 = vmatprep.subr.bf16.mxu0 %v4288_v56  ;;  %v4129_v1 = vpop.eup %4128 }
 0x887   :  { %v2784_v7 = vadd.f32 %v2783_v37, %v2782_v9 }
 0x889   :  { %4130 = vtanh.f32 %v2784_v7  ;;  %3687 = vmatpush3.bf16.msra.mxu0 %v3856_v42  ;;  %v3589_v7 = vld [vmem:[%s5694_s3 + $0xd] ss:$0 sm:$0xff] }
 0x88a   :  { %3688 = vmatprep.subr.bf16.mxu0 %v4288_v56 }
 0x88d   :  { %3689 = vmatpush3.bf16.msra.mxu0 %v3857_v51 }
 0x88e   :  { %3690 = vmatprep.subr.bf16.mxu0 %v4288_v56 }
 0x891   :  { %3691 = vmatpush3.bf16.msra.mxu0 %v3858_v8 }
 0x892   :  { %3692 = vmatprep.subr.bf16.mxu0 %v4288_v56 }
 0x893   :  { %v4131_v18 = vpop.eup %4130 }
 0x894   :  { %v2786_v41 = vmul.f32 %v4131_v18, %v4129_v1 }
 0x895   :  { %3693 = vmatpush3.bf16.msra.mxu0 %v3859_v62 }
 0x896   :  { %v3073_v0 = vpack.c.bf16 %v2786_v41, %v2786_v41 }
 0x898   :  { %3695 = vmatmul.mubr.bf16.vlgmr.msra.gmra.mrb[100].mxu0 %v3073_v0 }
 0x94b   :  { %v2893_v5 = vpop.f32.mrb[96].mxu0 }
 0x94c   :  { %v2894_v27 = vadd.f32 %v3518_v63, %v2893_v5  ;;  %v3652_v47 = vpop.f32.mrb[97].mxu0 }
 0x94d   :  { %v2896_v16 = vpop.f32.mrb[98].mxu0 }
 0x94e   :  { %vm2899_vm2 = vcmp.gt.f32.partialorder %v2894_v27, 0.0  ;;  %v2900_v49 = vmul.f32 0.01, %v2894_v27  ;;  %v3653_v45 = vpop.f32.mrb[99].mxu0 }
 0x950   :  { %v2901_v19 = vsel %vm2899_vm2, %v2894_v27, %v2900_v49 }
 0x951   :  { %v2902_v6 = vpack.c.bf16 %v2901_v19, %v2901_v19 }
 0x953   :  { %3663 = vmatmul.mubr.msk.bf16.vlgmr.msra.gmra.mrb[96].mxu1 %vm2942_vm3, %v2902_v6 }
 0x954   :  { %3667 = vmatpush3.bf16.msra.mxu1 %v3864_v13  ;;  %3674 = vmatprep.mubr.msk.bf16.mxu1 %vm4289_vm1, %v4288_v56 }
 0x955   :  { %3668 = vmatprep.subr.bf16.mxu1 %v4288_v56 }
 0x958   :  { %3669 = vmatpush3.bf16.msra.mxu1 %v3865_v26 }
 0x959   :  { %3670 = vmatprep.subr.bf16.mxu1 %v4288_v56 }
 0x95c   :  { %3671 = vmatpush3.bf16.msra.mxu1 %v3866_v2 }
 0x95d   :  { %3672 = vmatprep.subr.bf16.mxu1 %v4288_v56 }
 0x960   :  { %3673 = vmatpush3.bf16.msra.mxu1 %v3867_v3 }
 0x961   :  { %3698 = vmatprep.subr.bf16.mxu1 %v4288_v56 }
 0x96b   :  { %v3180_v21 = vpop.f32.mrb[100].mxu0 }
 0x96c   :  { %v3696_v22 = vpop.f32.mrb[101].mxu0  ;;  %v3181_v28 = vadd.f32 %v3556_v17, %v3180_v21 }
 0x96d   :  { %v3183_v24 = vpop.f32.mrb[102].mxu0 }
 0x96e   :  { %v3697_v44 = vpop.f32.mrb[103].mxu0  ;;  %v3187_v32 = vmul.f32 0.01, %v3181_v28  ;;  %vm3186_vm5 = vcmp.gt.f32.partialorder %v3181_v28, 0.0 }
 0x970   :  { %v3188_v11 = vsel %vm3186_vm5, %v3181_v28, %v3187_v32 }
 0x971   :  { %v3189_v25 = vpack.c.bf16 %v3188_v11, %v3188_v11 }
 0xa26   :  { %v2980_v55 = vpop.f32.mrb[96].mxu1 }
 0xa27   :  { %v2981_v40 = vadd.f32 %v3527_v33, %v2980_v55  ;;  %v3664_v14 = vpop.f32.mrb[97].mxu1 }
 0xa28   :  { %v2983_v20 = vpop.f32.mrb[98].mxu1 }
 0xa29   :  { %vm2986_vm4 = vcmp.gt.f32.partialorder %v2981_v40, 0.0  ;;  %v2987_v23 = vmul.f32 0.01, %v2981_v40  ;;  %v3665_v48 = vpop.f32.mrb[99].mxu1 }
 0xa2b   :  { %v2988_v50 = vsel %vm2986_vm4, %v2981_v40, %v2987_v23 }
 0xa2c   :  { %v2989_v43 = vpack.c.bf16 %v2988_v50, %v2988_v50 }
 0xa2e   :  { %3675 = vmatmul.mubr.msk.bf16.vlgmr.msra.gmra.mrb[100].mxu1 %vm2942_vm3, %v2989_v43 }
 0xa2f   :  { %3699 = vmatpush3.bf16.msra.mxu1 %v3868_v46  ;;  %3706 = vmatprep.mubr.msk.bf16.mxu1 %vm4289_vm1, %v4288_v56 }
 0xa30   :  { %3700 = vmatprep.subr.bf16.mxu1 %v4288_v56 }
 0xa33   :  { %3701 = vmatpush3.bf16.msra.mxu1 %v3869_v29 }
 0xa34   :  { %3702 = vmatprep.subr.bf16.mxu1 %v4288_v56 }
 0xa37   :  { %3703 = vmatpush3.bf16.msra.mxu1 %v3870_v30 }
 0xa38   :  { %3704 = vmatprep.subr.bf16.mxu1 %v4288_v56 }
 0xa3b   :  { %3705 = vmatpush3.bf16.msra.mxu1 %v3871_v38 }
 0xa3c   :  { %3710 = vmatprep.subr.bf16.mxu1 %v4288_v56 }
 0xa3e   :  { %3707 = vmatmul.mubr.msk.bf16.vlgmr.msra.gmra.mrb[104].mxu1 %vm2942_vm3, %v3189_v25 }
 0xa3f   :  { %3718 = vmatprep.mubr.msk.bf16.mxu1 %vm4289_vm1, %v4288_v56  ;;  %3711 = vmatpush3.bf16.msra.mxu1 %v3872_v31 }
 0xa40   :  { %3712 = vmatprep.subr.bf16.mxu1 %v4288_v56 }
 0xa43   :  { %3713 = vmatpush3.bf16.msra.mxu1 %v3873_v58 }
 0xa44   :  { %3714 = vmatprep.subr.bf16.mxu1 %v4288_v56 }
 0xa47   :  { %3715 = vmatpush3.bf16.msra.mxu1 %v3874_v59 }
 0xa48   :  { %3716 = vmatprep.subr.bf16.mxu1 %v4288_v56  ;;  %v3574_v56 = vld [vmem:[%s5694_s3 + $0xc] ss:$0 sm:$0xff] }
 0xa4b   :  { %3717 = vmatpush3.bf16.msra.mxu1 %v3875_v60 }
 0xb01   :  { %v3066_v39 = vpop.f32.mrb[100].mxu1 }
 0xb02   :  { %v3067_v12 = vadd.f32 %v3533_v57, %v3066_v39  ;;  %v3676_v4 = vpop.f32.mrb[101].mxu1 }
 0xb03   :  { %v3069_v34 = vpop.f32.mrb[102].mxu1 }
 0xb04   :  { %3072 = vst.msk [vmem:[%s5695_s4] sm:$0xff] %vm2942_vm3, %v3067_v12  ;;  %v3677_v36 = vpop.f32.mrb[103].mxu1 }
 0xb11   :  { %v3266_v52 = vpop.f32.mrb[104].mxu1 }
 0xb12   :  { %v3267_v53 = vadd.f32 %v3574_v56, %v3266_v52  ;;  %v3708_v61 = vpop.f32.mrb[105].mxu1 }
 0xb13   :  { %v3269_v37 = vpop.f32.mrb[106].mxu1 }
 0xb14   :  { %vm3272_vm6 = vcmp.gt.f32.partialorder %v3267_v53, 0.0  ;;  %v3273_v15 = vmul.f32 0.01, %v3267_v53  ;;  %v3709_v10 = vpop.f32.mrb[107].mxu1 }
 0xb16   :  { %v3274_v9 = vsel %vm3272_vm6, %v3267_v53, %v3273_v15 }
 0xb17   :  { %v3275_v42 = vpack.c.bf16 %v3274_v9, %v3274_v9 }
 0xb19   :  { %3719 = vmatmul.mubr.msk.bf16.vlgmr.msra.gmra.mrb[108].mxu1 %vm2942_vm3, %v3275_v42 }
 0xbec   :  { %v3352_v51 = vpop.f32.mrb[108].mxu1 }
 0xbed   :  { %v3353_v8 = vadd.f32 %v3589_v7, %v3352_v51  ;;  %v3720_v62 = vpop.f32.mrb[109].mxu1 }
 0xbee   :  { %v3355_v1 = vpop.f32.mrb[110].mxu1 }
 0xbef   :  { %3595 = vst.msk [vmem:[%s5695_s4 + $0x8] sm:$0xff] %vm2942_vm3, %v3353_v8  ;;  %v3721_v18 = vpop.f32.mrb[111].mxu1 }
 0xbf0   :  { %3364 = vsyncpa [#allocation4], 1 }

</bundles_post_ra>
